<compile_context>
chip_gen: v5e
topology: v5e:2x2
jax: 0.10.0
libtpu: 0.0.40
codegen_flags: <defaults>
</compile_context>

<pallas_src>
import functools

import jax
import jax.numpy as jnp
import numpy as np
from jax.experimental import pallas as pl
from jax.experimental.pallas import tpu as pltpu


_LANE = 128          # pad channel dims to this multiple (lane-dense stores/MXU)


def _round_up(v, m):
    return ((v + m - 1) // m) * m


def _pad_axis(a, axis, target):
    pad = target - a.shape[axis]
    if pad == 0:
        return a
    widths = [(0, 0)] * a.ndim
    widths[axis] = (0, pad)
    return jnp.pad(a, widths)


# ----------------------------- Pallas kernel ----------------------------------

def _bottleneck_kernel(x_ref, w1_ref, b1_ref, w2_ref, b2_ref, w3_ref, b3_ref,
                       o_ref, pad_ref, acc_ref, *, H, W, MB, TOP, BOT):
    """Fused Bottleneck for a tile of B images (M = B*H*W rows).

    x_ref:   (MB, Cin_p)        activations, compute dtype, channels padded
    w1_ref:  (Cin_p, C0_p)      folded (bn-scale * conv1) weights
    w2_ref:  (3, 3*C0_p, C1_p)  folded conv2 weights, kw taps stacked along K
    w3_ref:  (C1_p, C2_p)       folded conv3 weights
    b*_ref:  (1, C*_p) fp32     folded BN bias
    o_ref:   (MB, C2_p)         output in compute dtype
    pad_ref: (TOP + MB + BOT, C0_p) zero-halo buffer for the conv1 output
    acc_ref: (MB, C1_p) fp32    conv2 accumulator
    """
    cdt = pad_ref.dtype
    c0p = pad_ref.shape[1]
    base = TOP
    x = x_ref[...]                                   # (MB, Cin_p)

    # ---- conv1 (1x1) + folded bn1 + relu -> halo buffer ----------------------
    o1 = jnp.dot(x, w1_ref[...], preferred_element_type=jnp.float32)
    o1 = jnp.maximum(o1 + b1_ref[...], 0.0)
    # Zero only the halo rows (not the whole buffer), then write the interior.
    pad_ref[0:base, :] = jnp.zeros((base, c0p), cdt)
    pad_ref[base + MB:base + MB + BOT, :] = jnp.zeros((BOT, c0p), cdt)
    pad_ref[base:base + MB, :] = o1.astype(cdt)

    # ---- in-kernel boundary masks (no HBM operand) ---------------------------
    # g = flattened (image, row, col) index of the output row within the tile.
    g = jax.lax.broadcasted_iota(jnp.int32, (MB, 1), 0)
    j = g % W                                        # column within a row
    im = g % (H * W)                                 # position within an image
    left = (j > 0).astype(cdt)                       # valid when reading col j-1
    right = (j < W - 1).astype(cdt)                  # valid when reading col j+1
    top_v = (im >= W).astype(cdt)                    # valid when reading row i-1
    bot_v = (im < (H - 1) * W).astype(cdt)           # valid when reading row i+1

    # ---- conv2 (3x3, stride 1, pad 1) + folded bn2 + relu ---------------------
    # Three K=3*C0p matmuls (one per kh); kw taps are concatenated along K.
    for kh in range(3):
        start = base + (kh - 1) * W
        c_m1 = pad_ref[start - 1:start - 1 + MB, :] * left    # kw = 0
        c_00 = pad_ref[start:start + MB, :]                   # kw = 1
        c_p1 = pad_ref[start + 1:start + 1 + MB, :] * right   # kw = 2
        cat = jnp.concatenate([c_m1, c_00, c_p1], axis=1)     # (MB, 3*C0p)
        if kh == 0:
            cat = cat * top_v
        elif kh == 2:
            cat = cat * bot_v
        contrib = jnp.dot(cat, w2_ref[kh], preferred_element_type=jnp.float32)
        if kh == 0:
            acc_ref[...] = contrib                   # init with '=' (no zero fill)
        else:
            acc_ref[...] += contrib
    o2 = jnp.maximum(acc_ref[...] + b2_ref[...], 0.0).astype(w3_ref.dtype)

    # ---- conv3 (1x1) + folded bn3 + identity residual + relu ------------------
    o3 = jnp.dot(o2, w3_ref[...], preferred_element_type=jnp.float32)
    o3 = o3 + b3_ref[...] + x.astype(jnp.float32)
    o_ref[...] = jnp.maximum(o3, 0.0).astype(o_ref.dtype)


# --------------------------- parameter folding ---------------------------------

def fold_bottleneck_params(params, eps=1e-5, compute_dtype=jnp.bfloat16):
    """Fold inference BN into the conv weights / a per-channel bias; pad to 128."""
    c0, cin = params["w1"].shape[:2]
    c1 = params["w2"].shape[0]
    c2 = params["w3"].shape[0]
    cinp, c0p, c1p, c2p = (_round_up(c, _LANE) for c in (cin, c0, c1, c2))

    def fold(bn):
        gamma, beta, mean, var = bn
        scale = gamma / jnp.sqrt(var + eps)
        return scale, beta - mean * scale

    s1, b1 = fold(params["bn1"])
    s2, b2 = fold(params["bn2"])
    s3, b3 = fold(params["bn3"])

    w1 = jnp.transpose(params["w1"][:, :, 0, 0], (1, 0)) * s1[None, :]     # (Cin, C0)
    w2 = jnp.transpose(params["w2"], (2, 3, 1, 0)) * s2                    # (3,3,C0,C1)
    w3 = jnp.transpose(params["w3"][:, :, 0, 0], (1, 0)) * s3[None, :]     # (C1, C2)

    w1p = _pad_axis(_pad_axis(w1, 0, cinp), 1, c0p).astype(compute_dtype)
    w2p = _pad_axis(_pad_axis(w2, 2, c0p), 3, c1p)                         # (3,3,C0p,C1p)
    w2p = w2p.reshape(3, 3 * c0p, c1p).astype(compute_dtype)               # kw stacked on K
    w3p = _pad_axis(_pad_axis(w3, 0, c1p), 1, c2p).astype(compute_dtype)
    b1p = _pad_axis(b1[None, :], 1, c0p).astype(jnp.float32)
    b2p = _pad_axis(b2[None, :], 1, c1p).astype(jnp.float32)
    b3p = _pad_axis(b3[None, :], 1, c2p).astype(jnp.float32)
    return dict(w1=w1p, b1=b1p, w2=w2p, b2=b2p, w3=w3p, b3=b3p,
                dims=(cin, c0, c1, c2), pdims=(cinp, c0p, c1p, c2p))


# ------------------------------ hot-path wrapper --------------------------------

def bottleneck_forward_nhwc(x_nhwc, folded, b_tile=None,
                            vmem_limit_bytes=32 * 1024 * 1024):
    """Hot path: NHWC, channel-padded, compute-dtype in -> same layout out.

    No transposes / pads / slices around the kernel.  `vmem_limit_bytes` can be
    raised on v5e/v6e (128 MiB parts) for deeper buffering; keep <= ~48 MiB on
    v7x (64 MiB physical VMEM).
    """
    n, h, w, cinp = x_nhwc.shape
    cin, c0, c1, c2 = folded["dims"]
    cinp_f, c0p, c1p, c2p = folded["pdims"]
    assert cinp == cinp_f and cinp == c2p, "identity residual needs inplanes == cfg[2]"
    compute_dtype = x_nhwc.dtype
    hw = h * w

    # Pick how many images share a grid step (M >= ~1024 rows keeps the MXU full).
    if b_tile is None:
        b_tile = max(1, min(n, max(1, 1024 // hw)))
    while n % b_tile:
        b_tile -= 1
    if (b_tile * hw) % 8 != 0:
        b_tile = n          # full-batch block keeps the (8,128) block rule satisfied
    mb = b_tile * hw

    top_halo = _round_up(w + 1, 8)
    bot_halo = _round_up(w + 1, 8)
    pad_rows = top_halo + mb + bot_halo

    x2d = x_nhwc.reshape(n * hw, cinp)               # free reshape (no transpose)

    out = pl.pallas_call(
        functools.partial(_bottleneck_kernel, H=h, W=w, MB=mb,
                          TOP=top_halo, BOT=bot_halo),
        out_shape=jax.ShapeDtypeStruct((n * hw, c2p), compute_dtype),
        grid_spec=pltpu.PrefetchScalarGridSpec(
            num_scalar_prefetch=0,
            grid=(n // b_tile,),
            in_specs=[
                pl.BlockSpec((mb, cinp), lambda i: (i, 0)),            # x
                pl.BlockSpec((cinp, c0p), lambda i: (0, 0)),           # w1
                pl.BlockSpec((1, c0p), lambda i: (0, 0)),              # b1
                pl.BlockSpec((3, 3 * c0p, c1p), lambda i: (0, 0, 0)),  # w2 (kw on K)
                pl.BlockSpec((1, c1p), lambda i: (0, 0)),              # b2
                pl.BlockSpec((c1p, c2p), lambda i: (0, 0)),            # w3
                pl.BlockSpec((1, c2p), lambda i: (0, 0)),              # b3
            ],
            out_specs=pl.BlockSpec((mb, c2p), lambda i: (i, 0)),
            scratch_shapes=[
                pltpu.VMEM((pad_rows, c0p), compute_dtype),   # conv2 halo buffer
                pltpu.VMEM((mb, c1p), jnp.float32),           # conv2 fp32 accumulator
            ],
        ),
        compiler_params=pltpu.CompilerParams(
            dimension_semantics=("parallel",),        # image tiles are independent
            vmem_limit_bytes=vmem_limit_bytes),
    )(x2d, folded["w1"], folded["b1"], folded["w2"], folded["b2"],
      folded["w3"], folded["b3"])

    return out.reshape(n, h, w, c2p)


# ------------------- NCHW convenience wrapper (NOT the hot path) ----------------

def bottleneck_forward(x_nchw, params, stride=1, eps=1e-5,
                       compute_dtype=jnp.bfloat16, b_tile=None):
    """Bottleneck forward (mode='full', downsample=None). NCHW fp32 in/out.

    Layout conversion + channel pad here are for parity with the PyTorch
    module; production callers should use bottleneck_forward_nhwc directly.
    """
    assert stride == 1, "fused kernel implements the stride=1/downsample=None branch"
    folded = fold_bottleneck_params(params, eps=eps, compute_dtype=compute_dtype)
    cin, c0, c1, c2 = folded["dims"]
    cinp = folded["pdims"][0]
    n, cin_x, h, w = x_nchw.shape
    assert cin_x == cin and cin == c2

    x = jnp.transpose(x_nchw, (0, 2, 3, 1))
    xp = _pad_axis(x, 3, cinp).astype(compute_dtype)
    out = bottleneck_forward_nhwc(xp, folded, b_tile=b_tile)
    out = out[..., :c2].astype(jnp.float32)
    return jnp.transpose(out, (0, 3, 1, 2))


# --------------------------- pure-JAX reference --------------------------------

def bottleneck_reference(x_nchw, params, stride=1, eps=1e-5):
    x = jnp.transpose(x_nchw, (0, 2, 3, 1))

    def conv(z, w_oihw, stride, pad):
        return jax.lax.conv_general_dilated(
            z, jnp.transpose(w_oihw, (2, 3, 1, 0)),
            window_strides=(stride, stride),
            padding=[(pad, pad), (pad, pad)],
            dimension_numbers=("NHWC", "HWIO", "NHWC"))

    def bn(z, p):
        g, b, m, v = p
        return g * (z - m) / jnp.sqrt(v + eps) + b

    out = jax.nn.relu(bn(conv(x, params["w1"], 1, 0), params["bn1"]))
    out = jax.nn.relu(bn(conv(out, params["w2"], stride, 1), params["bn2"]))
    out = bn(conv(out, params["w3"], 1, 0), params["bn3"])
    out = jax.nn.relu(out + x)
    return jnp.transpose(out, (0, 3, 1, 2))


# ----------------------------------- main --------------------------------------

if __name__ == "__main__":
    # Small shapes consistent with the module: inplanes == cfg[2], stride=1,
    # downsample=None (identity residual).
    batch, inplanes, hw = 4, 16, 16
    cfg = [8, 8, 16]
    stride = 1

    key = jax.random.PRNGKey(0)
    ks = jax.random.split(key, 16)

    def bn_params(kg, kb, km, kv, c):
        gamma = jax.random.uniform(kg, (c,), jnp.float32, 0.5, 1.5)
        beta = jax.random.normal(kb, (c,), jnp.float32) * 0.1
        mean = jax.random.normal(km, (c,), jnp.float32) * 0.1
        var = jax.random.uniform(kv, (c,), jnp.float32, 0.5, 1.5)
        return (gamma, beta, mean, var)

    params = {
        "w1": jax.random.normal(ks[0], (cfg[0], inplanes, 1, 1), jnp.float32) * 0.1,
        "w2": jax.random.normal(ks[1], (cfg[1], cfg[0], 3, 3), jnp.float32) * 0.1,
        "w3": jax.random.normal(ks[2], (cfg[2], cfg[1], 1, 1), jnp.float32) * 0.1,
        "bn1": bn_params(ks[3], ks[4], ks[5], ks[6], cfg[0]),
        "bn2": bn_params(ks[7], ks[8], ks[9], ks[10], cfg[1]),
        "bn3": bn_params(ks[11], ks[12], ks[13], ks[14], cfg[2]),
    }

    x = jax.random.normal(ks[15], (batch, inplanes, hw, hw), jnp.float32)

    ref = jax.block_until_ready(bottleneck_reference(x, params, stride=stride))

    # fp32 compute path, 1 image per grid step (4 grid steps): tight numerical
    # check of the fused kernel math.
    fwd_f32 = jax.jit(functools.partial(bottleneck_forward, stride=stride,
                                        compute_dtype=jnp.float32, b_tile=1))
    out_f32 = jax.block_until_ready(fwd_f32(x, params))
    np.testing.assert_allclose(np.asarray(out_f32), np.asarray(ref),
                               atol=1e-4, rtol=1e-4)

    # bf16 fast path (bf16 MXU inputs, fp32 accumulation, bf16 output), 2 images
    # per grid step (2 grid steps): tolerance reflects bf16 rounding only.
    fwd_bf16 = jax.jit(functools.partial(bottleneck_forward, stride=stride,
                                         compute_dtype=jnp.bfloat16, b_tile=2))
    out_bf16 = jax.block_until_ready(fwd_bf16(x, params))
    np.testing.assert_allclose(np.asarray(out_bf16), np.asarray(ref),
                               atol=5e-2, rtol=5e-2)

    assert out_f32.shape == (batch, cfg[2], hw, hw)
    assert out_bf16.shape == (batch, cfg[2], hw, hw)
    print("KERNEL_OK")
</pallas_src>

<mosaic_0001>
module attributes {stable_mosaic.version = 11 : i64} {
  func.func @_bottleneck_kernel(%arg0: i32, %arg1: memref<256x128xf32, #tpu.memory_space<vmem>>, %arg2: memref<128x128xf32, #tpu.memory_space<vmem>>, %arg3: memref<1x128xf32, #tpu.memory_space<vmem>>, %arg4: memref<3x384x128xf32, #tpu.memory_space<vmem>>, %arg5: memref<1x128xf32, #tpu.memory_space<vmem>>, %arg6: memref<128x128xf32, #tpu.memory_space<vmem>>, %arg7: memref<1x128xf32, #tpu.memory_space<vmem>>, %arg8: memref<256x128xf32, #tpu.memory_space<vmem>>, %arg9: memref<304x128xf32, #tpu.memory_space<vmem>>, %arg10: memref<256x128xf32, #tpu.memory_space<vmem>>) attributes {dimension_semantics = [#tpu.dimension_semantics<parallel>], iteration_bounds = array<i64: 4>, scalar_prefetch = 0 : i64, scratch_operands = 2 : i64, tpu.core_type = #tpu.core_type<tc>, window_params = [{transform_indices = @transform_0, window_bounds = array<i64: 256, 128>}, {pipeline_mode = #tpu.pipeline_mode<synchronous>, transform_indices = @transform_1, window_bounds = array<i64: 128, 128>}, {pipeline_mode = #tpu.pipeline_mode<synchronous>, transform_indices = @transform_2, window_bounds = array<i64: 1, 128>}, {pipeline_mode = #tpu.pipeline_mode<synchronous>, transform_indices = @transform_3, window_bounds = array<i64: 3, 384, 128>}, {pipeline_mode = #tpu.pipeline_mode<synchronous>, transform_indices = @transform_4, window_bounds = array<i64: 1, 128>}, {pipeline_mode = #tpu.pipeline_mode<synchronous>, transform_indices = @transform_5, window_bounds = array<i64: 128, 128>}, {pipeline_mode = #tpu.pipeline_mode<synchronous>, transform_indices = @transform_6, window_bounds = array<i64: 1, 128>}, {transform_indices = @transform_7, window_bounds = array<i64: 256, 128>}]} {
    %c0 = arith.constant 0 : index
    %c0_0 = arith.constant 0 : index
    %0 = vector.load %arg1[%c0, %c0_0] : memref<256x128xf32, #tpu.memory_space<vmem>>, vector<256x128xf32>
    %c0_1 = arith.constant 0 : index
    %c0_2 = arith.constant 0 : index
    %1 = vector.load %arg2[%c0_1, %c0_2] : memref<128x128xf32, #tpu.memory_space<vmem>>, vector<128x128xf32>
    %cst = arith.constant dense<0.000000e+00> : vector<256x128xf32>
    %2 = tpu.matmul %0, %1, %cst {dimension_numbers = #tpu.dot_dimension_numbers<[1], [0], [0], [1], [0, 0, 1, 1], [], []>} : vector<256x128xf32>, vector<128x128xf32>, vector<256x128xf32> -> vector<256x128xf32>
    %c0_3 = arith.constant 0 : index
    %c0_4 = arith.constant 0 : index
    %3 = vector.load %arg3[%c0_3, %c0_4] : memref<1x128xf32, #tpu.memory_space<vmem>>, vector<1x128xf32>
    %4 = vector.broadcast %3 : vector<1x128xf32> to vector<256x128xf32>
    %5 = arith.addf %2, %4 : vector<256x128xf32>
    %cst_5 = arith.constant 0.000000e+00 : f32
    %6 = vector.broadcast %cst_5 : f32 to vector<256x128xf32>
    %7 = arith.maximumf %5, %6 : vector<256x128xf32>
    %cst_6 = arith.constant 0.000000e+00 : f32
    %8 = vector.broadcast %cst_6 : f32 to vector<24x128xf32>
    %c0_7 = arith.constant 0 : index
    %c0_8 = arith.constant 0 : index
    %9 = vector.load %arg9[%c0_7, %c0_8] : memref<304x128xf32, #tpu.memory_space<vmem>>, vector<24x128xf32>
    tpu.vector_store %arg9[%c0_7, %c0_8], %8 {strides = array<i32>} : memref<304x128xf32, #tpu.memory_space<vmem>>, vector<24x128xf32>,
    %cst_9 = arith.constant 0.000000e+00 : f32
    %10 = vector.broadcast %cst_9 : f32 to vector<24x128xf32>
    %c280 = arith.constant 280 : index
    %c0_10 = arith.constant 0 : index
    %11 = vector.load %arg9[%c280, %c0_10] : memref<304x128xf32, #tpu.memory_space<vmem>>, vector<24x128xf32>
    tpu.vector_store %arg9[%c280, %c0_10], %10 {strides = array<i32>} : memref<304x128xf32, #tpu.memory_space<vmem>>, vector<24x128xf32>,
    %c24 = arith.constant 24 : index
    %c0_11 = arith.constant 0 : index
    %12 = vector.load %arg9[%c24, %c0_11] : memref<304x128xf32, #tpu.memory_space<vmem>>, vector<256x128xf32>
    tpu.vector_store %arg9[%c24, %c0_11], %7 {strides = array<i32>} : memref<304x128xf32, #tpu.memory_space<vmem>>, vector<256x128xf32>,
    %13 = tpu.iota {dimensions = array<i32: 0>} : vector<256x1xi32>
    %c16_i32 = arith.constant 16 : i32
    %c0_i32 = arith.constant 0 : i32
    %14 = arith.cmpi eq, %c16_i32, %c0_i32 : i32
    %c1_i32 = arith.constant 1 : i32
    %15 = arith.select %14, %c1_i32, %c16_i32 : i32
    %16 = vector.broadcast %15 : i32 to vector<256x1xi32>
    %17 = arith.remsi %13, %16 : vector<256x1xi32>
    %c0_i32_12 = arith.constant 0 : i32
    %18 = vector.broadcast %c0_i32_12 : i32 to vector<256x1xi32>
    %19 = arith.cmpi ne, %17, %18 : vector<256x1xi32>
    %c0_i32_13 = arith.constant 0 : i32
    %20 = vector.broadcast %c0_i32_13 : i32 to vector<256x1xi32>
    %21 = arith.cmpi slt, %17, %20 : vector<256x1xi32>
    %c0_i32_14 = arith.constant 0 : i32
    %22 = arith.cmpi slt, %15, %c0_i32_14 : i32
    %23 = vector.broadcast %22 : i1 to vector<256x1xi1>
    %24 = vector.broadcast %23 : vector<256x1xi1> to vector<256x1xi1>
    %25 = arith.xori %21, %24 : vector<256x1xi1>
    %26 = arith.andi %25, %19 : vector<256x1xi1>
    %27 = vector.broadcast %15 : i32 to vector<256x1xi32>
    %28 = arith.addi %17, %27 : vector<256x1xi32>
    %29 = arith.select %26, %28, %17 : vector<256x1xi1>, vector<256x1xi32>
    %c256_i32 = arith.constant 256 : i32
    %c0_i32_15 = arith.constant 0 : i32
    %30 = arith.cmpi eq, %c256_i32, %c0_i32_15 : i32
    %c1_i32_16 = arith.constant 1 : i32
    %31 = arith.select %30, %c1_i32_16, %c256_i32 : i32
    %32 = vector.broadcast %31 : i32 to vector<256x1xi32>
    %33 = arith.remsi %13, %32 : vector<256x1xi32>
    %c0_i32_17 = arith.constant 0 : i32
    %34 = vector.broadcast %c0_i32_17 : i32 to vector<256x1xi32>
    %35 = arith.cmpi ne, %33, %34 : vector<256x1xi32>
    %c0_i32_18 = arith.constant 0 : i32
    %36 = vector.broadcast %c0_i32_18 : i32 to vector<256x1xi32>
    %37 = arith.cmpi slt, %33, %36 : vector<256x1xi32>
    %c0_i32_19 = arith.constant 0 : i32
    %38 = arith.cmpi slt, %31, %c0_i32_19 : i32
    %39 = vector.broadcast %38 : i1 to vector<256x1xi1>
    %40 = vector.broadcast %39 : vector<256x1xi1> to vector<256x1xi1>
    %41 = arith.xori %37, %40 : vector<256x1xi1>
    %42 = arith.andi %41, %35 : vector<256x1xi1>
    %43 = vector.broadcast %31 : i32 to vector<256x1xi32>
    %44 = arith.addi %33, %43 : vector<256x1xi32>
    %45 = arith.select %42, %44, %33 : vector<256x1xi1>, vector<256x1xi32>
    %c0_i32_20 = arith.constant 0 : i32
    %46 = vector.broadcast %c0_i32_20 : i32 to vector<256x1xi32>
    %47 = arith.cmpi sgt, %29, %46 : vector<256x1xi32>
    %48 = arith.extui %47 : vector<256x1xi1> to vector<256x1xi32>
    %49 = arith.sitofp %48 : vector<256x1xi32> to vector<256x1xf32>
    %c15_i32 = arith.constant 15 : i32
    %50 = vector.broadcast %c15_i32 : i32 to vector<256x1xi32>
    %51 = arith.cmpi slt, %29, %50 : vector<256x1xi32>
    %52 = arith.extui %51 : vector<256x1xi1> to vector<256x1xi32>
    %53 = arith.sitofp %52 : vector<256x1xi32> to vector<256x1xf32>
    %c16_i32_21 = arith.constant 16 : i32
    %54 = vector.broadcast %c16_i32_21 : i32 to vector<256x1xi32>
    %55 = arith.cmpi sge, %45, %54 : vector<256x1xi32>
    %56 = arith.extui %55 : vector<256x1xi1> to vector<256x1xi32>
    %57 = arith.sitofp %56 : vector<256x1xi32> to vector<256x1xf32>
    %c240_i32 = arith.constant 240 : i32
    %58 = vector.broadcast %c240_i32 : i32 to vector<256x1xi32>
    %59 = arith.cmpi slt, %45, %58 : vector<256x1xi32>
    %60 = arith.extui %59 : vector<256x1xi1> to vector<256x1xi32>
    %61 = arith.sitofp %60 : vector<256x1xi32> to vector<256x1xf32>
    %c7 = arith.constant 7 : index
    %c0_22 = arith.constant 0 : index
    %62 = vector.load %arg9[%c7, %c0_22] : memref<304x128xf32, #tpu.memory_space<vmem>>, vector<256x128xf32>
    %63 = vector.broadcast %49 : vector<256x1xf32> to vector<256x128xf32>
    %64 = arith.mulf %62, %63 : vector<256x128xf32>
    %c8 = arith.constant 8 : index
    %c0_23 = arith.constant 0 : index
    %65 = vector.load %arg9[%c8, %c0_23] : memref<304x128xf32, #tpu.memory_space<vmem>>, vector<256x128xf32>
    %c9 = arith.constant 9 : index
    %c0_24 = arith.constant 0 : index
    %66 = vector.load %arg9[%c9, %c0_24] : memref<304x128xf32, #tpu.memory_space<vmem>>, vector<256x128xf32>
    %67 = vector.broadcast %53 : vector<256x1xf32> to vector<256x128xf32>
    %68 = arith.mulf %66, %67 : vector<256x128xf32>
    %69 = tpu.concatenate %64, %65, %68 in 1 : vector<256x128xf32>, vector<256x128xf32>, vector<256x128xf32> -> vector<256x384xf32>
    %70 = vector.broadcast %57 : vector<256x1xf32> to vector<256x384xf32>
    %71 = arith.mulf %69, %70 : vector<256x384xf32>
    %c0_25 = arith.constant 0 : index
    %c0_26 = arith.constant 0 : index
    %c0_27 = arith.constant 0 : index
    %72 = vector.load %arg4[%c0_25, %c0_26, %c0_27] : memref<3x384x128xf32, #tpu.memory_space<vmem>>, vector<1x384x128xf32>
    %73 = vector.shape_cast %72 : vector<1x384x128xf32> to vector<384x128xf32>
    %cst_28 = arith.constant dense<0.000000e+00> : vector<256x128xf32>
    %74 = tpu.matmul %71, %73, %cst_28 {dimension_numbers = #tpu.dot_dimension_numbers<[1], [0], [0], [1], [0, 0, 1, 1], [], []>} : vector<256x384xf32>, vector<384x128xf32>, vector<256x128xf32> -> vector<256x128xf32>
    %c0_29 = arith.constant 0 : index
    %c0_30 = arith.constant 0 : index
    %75 = vector.load %arg10[%c0_29, %c0_30] : memref<256x128xf32, #tpu.memory_space<vmem>>, vector<256x128xf32>
    tpu.vector_store %arg10[%c0_29, %c0_30], %74 {strides = array<i32>} : memref<256x128xf32, #tpu.memory_space<vmem>>, vector<256x128xf32>,
    %c23 = arith.constant 23 : index
    %c0_31 = arith.constant 0 : index
    %76 = vector.load %arg9[%c23, %c0_31] : memref<304x128xf32, #tpu.memory_space<vmem>>, vector<256x128xf32>
    %77 = vector.broadcast %49 : vector<256x1xf32> to vector<256x128xf32>
    %78 = arith.mulf %76, %77 : vector<256x128xf32>
    %c24_32 = arith.constant 24 : index
    %c0_33 = arith.constant 0 : index
    %79 = vector.load %arg9[%c24_32, %c0_33] : memref<304x128xf32, #tpu.memory_space<vmem>>, vector<256x128xf32>
    %c25 = arith.constant 25 : index
    %c0_34 = arith.constant 0 : index
    %80 = vector.load %arg9[%c25, %c0_34] : memref<304x128xf32, #tpu.memory_space<vmem>>, vector<256x128xf32>
    %81 = vector.broadcast %53 : vector<256x1xf32> to vector<256x128xf32>
    %82 = arith.mulf %80, %81 : vector<256x128xf32>
    %83 = tpu.concatenate %78, %79, %82 in 1 : vector<256x128xf32>, vector<256x128xf32>, vector<256x128xf32> -> vector<256x384xf32>
    %c1 = arith.constant 1 : index
    %c0_35 = arith.constant 0 : index
    %c0_36 = arith.constant 0 : index
    %84 = vector.load %arg4[%c1, %c0_35, %c0_36] : memref<3x384x128xf32, #tpu.memory_space<vmem>>, vector<1x384x128xf32>
    %85 = vector.shape_cast %84 : vector<1x384x128xf32> to vector<384x128xf32>
    %cst_37 = arith.constant dense<0.000000e+00> : vector<256x128xf32>
    %86 = tpu.matmul %83, %85, %cst_37 {dimension_numbers = #tpu.dot_dimension_numbers<[1], [0], [0], [1], [0, 0, 1, 1], [], []>} : vector<256x384xf32>, vector<384x128xf32>, vector<256x128xf32> -> vector<256x128xf32>
    %c0_38 = arith.constant 0 : index
    %c0_39 = arith.constant 0 : index
    %87 = vector.load %arg10[%c0_38, %c0_39] : memref<256x128xf32, #tpu.memory_space<vmem>>, vector<256x128xf32>
    %88 = arith.addf %87, %86 : vector<256x128xf32>
    %c0_40 = arith.constant 0 : index
    %c0_41 = arith.constant 0 : index
    %89 = vector.load %arg10[%c0_40, %c0_41] : memref<256x128xf32, #tpu.memory_space<vmem>>, vector<256x128xf32>
    tpu.vector_store %arg10[%c0_40, %c0_41], %88 {strides = array<i32>} : memref<256x128xf32, #tpu.memory_space<vmem>>, vector<256x128xf32>,
    %c39 = arith.constant 39 : index
    %c0_42 = arith.constant 0 : index
    %90 = vector.load %arg9[%c39, %c0_42] : memref<304x128xf32, #tpu.memory_space<vmem>>, vector<256x128xf32>
    %91 = vector.broadcast %49 : vector<256x1xf32> to vector<256x128xf32>
    %92 = arith.mulf %90, %91 : vector<256x128xf32>
    %c40 = arith.constant 40 : index
    %c0_43 = arith.constant 0 : index
    %93 = vector.load %arg9[%c40, %c0_43] : memref<304x128xf32, #tpu.memory_space<vmem>>, vector<256x128xf32>
    %c41 = arith.constant 41 : index
    %c0_44 = arith.constant 0 : index
    %94 = vector.load %arg9[%c41, %c0_44] : memref<304x128xf32, #tpu.memory_space<vmem>>, vector<256x128xf32>
    %95 = vector.broadcast %53 : vector<256x1xf32> to vector<256x128xf32>
    %96 = arith.mulf %94, %95 : vector<256x128xf32>
    %97 = tpu.concatenate %92, %93, %96 in 1 : vector<256x128xf32>, vector<256x128xf32>, vector<256x128xf32> -> vector<256x384xf32>
    %98 = vector.broadcast %61 : vector<256x1xf32> to vector<256x384xf32>
    %99 = arith.mulf %97, %98 : vector<256x384xf32>
    %c2 = arith.constant 2 : index
    %c0_45 = arith.constant 0 : index
    %c0_46 = arith.constant 0 : index
    %100 = vector.load %arg4[%c2, %c0_45, %c0_46] : memref<3x384x128xf32, #tpu.memory_space<vmem>>, vector<1x384x128xf32>
    %101 = vector.shape_cast %100 : vector<1x384x128xf32> to vector<384x128xf32>
    %cst_47 = arith.constant dense<0.000000e+00> : vector<256x128xf32>
    %102 = tpu.matmul %99, %101, %cst_47 {dimension_numbers = #tpu.dot_dimension_numbers<[1], [0], [0], [1], [0, 0, 1, 1], [], []>} : vector<256x384xf32>, vector<384x128xf32>, vector<256x128xf32> -> vector<256x128xf32>
    %c0_48 = arith.constant 0 : index
    %c0_49 = arith.constant 0 : index
    %103 = vector.load %arg10[%c0_48, %c0_49] : memref<256x128xf32, #tpu.memory_space<vmem>>, vector<256x128xf32>
    %104 = arith.addf %103, %102 : vector<256x128xf32>
    %c0_50 = arith.constant 0 : index
    %c0_51 = arith.constant 0 : index
    %105 = vector.load %arg10[%c0_50, %c0_51] : memref<256x128xf32, #tpu.memory_space<vmem>>, vector<256x128xf32>
    tpu.vector_store %arg10[%c0_50, %c0_51], %104 {strides = array<i32>} : memref<256x128xf32, #tpu.memory_space<vmem>>, vector<256x128xf32>,
    %c0_52 = arith.constant 0 : index
    %c0_53 = arith.constant 0 : index
    %106 = vector.load %arg10[%c0_52, %c0_53] : memref<256x128xf32, #tpu.memory_space<vmem>>, vector<256x128xf32>
    %c0_54 = arith.constant 0 : index
    %c0_55 = arith.constant 0 : index
    %107 = vector.load %arg5[%c0_54, %c0_55] : memref<1x128xf32, #tpu.memory_space<vmem>>, vector<1x128xf32>
    %108 = vector.broadcast %107 : vector<1x128xf32> to vector<256x128xf32>
    %109 = arith.addf %106, %108 : vector<256x128xf32>
    %cst_56 = arith.constant 0.000000e+00 : f32
    %110 = vector.broadcast %cst_56 : f32 to vector<256x128xf32>
    %111 = arith.maximumf %109, %110 : vector<256x128xf32>
    %c0_57 = arith.constant 0 : index
    %c0_58 = arith.constant 0 : index
    %112 = vector.load %arg6[%c0_57, %c0_58] : memref<128x128xf32, #tpu.memory_space<vmem>>, vector<128x128xf32>
    %cst_59 = arith.constant dense<0.000000e+00> : vector<256x128xf32>
    %113 = tpu.matmul %111, %112, %cst_59 {dimension_numbers = #tpu.dot_dimension_numbers<[1], [0], [0], [1], [0, 0, 1, 1], [], []>} : vector<256x128xf32>, vector<128x128xf32>, vector<256x128xf32> -> vector<256x128xf32>
    %c0_60 = arith.constant 0 : index
    %c0_61 = arith.constant 0 : index
    %114 = vector.load %arg7[%c0_60, %c0_61] : memref<1x128xf32, #tpu.memory_space<vmem>>, vector<1x128xf32>
    %115 = vector.broadcast %114 : vector<1x128xf32> to vector<256x128xf32>
    %116 = arith.addf %113, %115 : vector<256x128xf32>
    %117 = arith.addf %116, %0 : vector<256x128xf32>
    %cst_62 = arith.constant 0.000000e+00 : f32
    %118 = vector.broadcast %cst_62 : f32 to vector<256x128xf32>
    %119 = arith.maximumf %117, %118 : vector<256x128xf32>
    %c0_63 = arith.constant 0 : index
    %c0_64 = arith.constant 0 : index
    %120 = vector.load %arg8[%c0_63, %c0_64] : memref<256x128xf32, #tpu.memory_space<vmem>>, vector<256x128xf32>
    tpu.vector_store %arg8[%c0_63, %c0_64], %119 {strides = array<i32>} : memref<256x128xf32, #tpu.memory_space<vmem>>, vector<256x128xf32>,
    return
  }
  func.func @transform_0(%arg0: i32) -> (i32, i32) {
    %c0_i32 = arith.constant 0 : i32
    %c0_i32_0 = arith.constant 0 : i32
    return %arg0, %c0_i32 : i32, i32
  }
  func.func @transform_1(%arg0: i32) -> (i32, i32) {
    %c0_i32 = arith.constant 0 : i32
    %c0_i32_0 = arith.constant 0 : i32
    %c0_i32_1 = arith.constant 0 : i32
    return %c0_i32, %c0_i32_0 : i32, i32
  }
  func.func @transform_2(%arg0: i32) -> (i32, i32) {
    %c0_i32 = arith.constant 0 : i32
    %c0_i32_0 = arith.constant 0 : i32
    %c0_i32_1 = arith.constant 0 : i32
    return %c0_i32, %c0_i32_0 : i32, i32
  }
  func.func @transform_3(%arg0: i32) -> (i32, i32, i32) {
    %c0_i32 = arith.constant 0 : i32
    %c0_i32_0 = arith.constant 0 : i32
    %c0_i32_1 = arith.constant 0 : i32
    %c0_i32_2 = arith.constant 0 : i32
    return %c0_i32, %c0_i32_0, %c0_i32_1 : i32, i32, i32
  }
  func.func @transform_4(%arg0: i32) -> (i32, i32) {
    %c0_i32 = arith.constant 0 : i32
    %c0_i32_0 = arith.constant 0 : i32
    %c0_i32_1 = arith.constant 0 : i32
    return %c0_i32, %c0_i32_0 : i32, i32
  }
  func.func @transform_5(%arg0: i32) -> (i32, i32) {
    %c0_i32 = arith.constant 0 : i32
    %c0_i32_0 = arith.constant 0 : i32
    %c0_i32_1 = arith.constant 0 : i32
    return %c0_i32, %c0_i32_0 : i32, i32
  }
  func.func @transform_6(%arg0: i32) -> (i32, i32) {
    %c0_i32 = arith.constant 0 : i32
    %c0_i32_0 = arith.constant 0 : i32
    %c0_i32_1 = arith.constant 0 : i32
    return %c0_i32, %c0_i32_0 : i32, i32
  }
  func.func @transform_7(%arg0: i32) -> (i32, i32) {
    %c0_i32 = arith.constant 0 : i32
    %c0_i32_0 = arith.constant 0 : i32
    return %arg0, %c0_i32 : i32, i32
  }
}

</mosaic_0001>

<bundles_post_ra>
// kernel: bottleneck_forward.1
= control target key start
LH: loop header
LB: loop body
LE: loop exit
PB: predicated region body
PF: predicated region fallthrough
CT: control target
= control target key end

     0   :  { %s4431_s24 = smov 0   ;;  %s6664_s0 = inlined_call_operand.vmem [shape: f32[1024,128], index: 0, kind: input, shape index: {}]   ;;  %s6665_s1 = inlined_call_operand.vmem [shape: f32[128,128], index: 1, kind: input, shape index: {}]   ;;  %s6666_s2 = inlined_call_operand.vmem [shape: f32[1,128], index: 2, kind: input, shape index: {}]   ;;  %s6667_s3 = inlined_call_operand.vmem [shape: f32[3,384,128], index: 3, kind: input, shape index: {}]   ;;  %s6668_s4 = inlined_call_operand.vmem [shape: f32[1,128], index: 4, kind: input, shape index: {}]   ;;  %s6669_s5 = inlined_call_operand.vmem [shape: f32[128,128], index: 5, kind: input, shape index: {}]   ;;  %s6670_s6 = inlined_call_operand.vmem [shape: f32[1,128], index: 6, kind: input, shape index: {}]   ;;  %s6671_s7 = inlined_call_operand.vmem [shape: f32[1024,128], index: 7, kind: output, shape index: {}]  }
   0x1 LB: > { %s4146_s25 = sadd.s32 4294967295, %s4388_s24   ;;  %p4150_p0 = scmp.ge.s32.totalorder %s4388_s24, 1  ;;  %s4388_s24 = sphi %s4431_s24, %s17_s24  }
   0x2   : > { %p238_p1 = scmp.lt.s32.totalorder %s4388_s24, 5 }
   0x4   : > { %p239_p2 = pnand %p4150_p0, %p238_p1 }
   0x6   : > { %242 = sbr.rel (%p239_p2) target bundleno = 1273 (0x4f9), region = 48 }
   0xb   : > { %v329_v0 = vld [vmem:[%s6665_s1 + $0x78] sm:$0xff]  ;;  %v328_v1 = vld [vmem:[%s6665_s1 + $0x70] sm:$0xff]  ;;  %v327_v2 = vld [vmem:[%s6665_s1 + $0x68] sm:$0xff]  ;;  %s4151_s19 = sshll.u32 %s4146_s25, 5  ;;  %v6672_v54 = vmov 0.0   ;;  %v517_v55 = vlaneseq }
   0xc   : > { %334 = vmatpush.msra.mxu0 %v329_v0  ;;  %4285 = vmatpush.msra.mxu3 %v329_v0  ;;  %v326_v3 = vld [vmem:[%s6665_s1 + $0x60] sm:$0xff]  ;;  %v325_v4 = vld [vmem:[%s6665_s1 + $0x58] sm:$0xff]  ;;  %v324_v5 = vld [vmem:[%s6665_s1 + $0x50] sm:$0xff]  ;;  %p271_p3 = scmp.lt.s32.totalorder %s4151_s19, 127  ;;  %480 = vst [vmem:[#allocation2 + $0x8] sm:$0xff] %v6672_v54 }
   0xd   : > { %v323_v6 = vld [vmem:[%s6665_s1 + $0x48] sm:$0xff]  ;;  %v322_v7 = vld [vmem:[%s6665_s1 + $0x40] sm:$0xff]  ;;  %v321_v8 = vld [vmem:[%s6665_s1 + $0x38] sm:$0xff]  ;;  %479 = vst [vmem:[#allocation2] sm:$0xff] %v6672_v54  ;;  %v4646_v58 = vshrl.u32 %v517_v55, 7 }
   0xe   : > { %335 = vmatpush.msra.mxu0 %v328_v1  ;;  %4286 = vmatpush.msra.mxu3 %v328_v1  ;;  %v320_v9 = vld [vmem:[%s6665_s1 + $0x30] sm:$0xff]  ;;  %v319_v10 = vld [vmem:[%s6665_s1 + $0x28] sm:$0xff]  ;;  %s7030_s19 = smov (!%p271_p3, %s4151_s19), 127  ;;  %v318_v11 = vld [vmem:[%s6665_s1 + $0x20] sm:$0xff]  ;;  %481 = vst [vmem:[#allocation2 + $0x10] sm:$0xff] %v6672_v54 }
   0xf   : > { %v317_v12 = vld [vmem:[%s6665_s1 + $0x18] sm:$0xff]  ;;  %s4152_s8 = sshll.u32 %s7030_s19, 3  ;;  %v316_v13 = vld [vmem:[%s6665_s1 + $0x10] sm:$0xff]  ;;  %v315_v14 = vld [vmem:[%s6665_s1 + $0x8] sm:$0xff]  ;;  %482 = vst [vmem:[#allocation2 + $0x118] sm:$0xff] %v6672_v54  ;;  %v554_v60 = vand.u32 15, %v4646_v58 }
  0x10   : > { %336 = vmatpush.msra.mxu0 %v327_v2  ;;  %4287 = vmatpush.msra.mxu3 %v327_v2  ;;  %s4492_s15 = scalar_lea.vmem %s6664_s0, %s4152_s8  ;;  %v314_v15 = vld [vmem:[%s6665_s1] sm:$0xff]  ;;  %v4507_v23 = vld [vmem:[%s6667_s3 + $0xf8] sm:$0xff]  ;;  %v4513_v24 = vld [vmem:[%s6667_s3 + $0xf0] sm:$0xff]  ;;  %483 = vst [vmem:[#allocation2 + $0x120] sm:$0xff] %v6672_v54  ;;  %s6498_s25 = scalar_lea.vmem %s6671_s7, %s4152_s8 }
  0x11   : > { %v282_v16 = vld [vmem:[%s4492_s15] sm:$0xff]  ;;  %v283_v17 = vld [vmem:[%s4492_s15 + $0x8] sm:$0xff]  ;;  %v284_v18 = vld [vmem:[%s4492_s15 + $0x10] sm:$0xff]  ;;  %2119 = vmatpush.msra.mxu2 %v4507_v23  ;;  %484 = vst [vmem:[#allocation2 + $0x128] sm:$0xff] %v6672_v54  ;;  %vm1318_vm0 = vcmp.gt.s32.totalorder %v554_v60, 0 }
  0x12   : > { %337 = vmatpush.msra.mxu0 %v326_v3  ;;  %4288 = vmatpush.msra.mxu3 %v326_v3  ;;  %v285_v19 = vld [vmem:[%s4492_s15 + $0x18] sm:$0xff]  ;;  %v286_v20 = vld [vmem:[%s4492_s15 + $0x20] sm:$0xff]  ;;  %v287_v21 = vld [vmem:[%s4492_s15 + $0x28] sm:$0xff]  ;;  %v4658_v62 = vsel %vm1318_vm0, 1.0, %v6672_v54 }
  0x13   : > { %v288_v22 = vld [vmem:[%s4492_s15 + $0x30] sm:$0xff]  ;;  %v289_v25 = vld [vmem:[%s4492_s15 + $0x38] sm:$0xff]  ;;  %2120 = vmatpush.msra.mxu2 %v4513_v24  ;;  %v4520_v26 = vld [vmem:[%s6667_s3 + $0xe8] sm:$0xff]  ;;  %6709 = vst [vmem:[#allocation4_spill] sm:$0xff] %v4658_v62 }
  0x14   : > { %338 = vmatpush.msra.mxu0 %v325_v4  ;;  %4289 = vmatpush.msra.mxu3 %v325_v4  ;;  %v1973_v27 = vld [vmem:[%s6667_s3 + $0x78] sm:$0xff]  ;;  %v1972_v28 = vld [vmem:[%s6667_s3 + $0x70] sm:$0xff]  ;;  %v4532_v29 = vld [vmem:[%s6667_s3 + $0xe0] sm:$0xff] }
  0x15   : > { %2121 = vmatpush.msra.mxu2 %v4520_v26  ;;  %2006 = vmatpush.msra.mxu1 %v1973_v27  ;;  %v4538_v30 = vld [vmem:[%s6667_s3 + $0xd8] sm:$0xff]  ;;  %v4544_v31 = vld [vmem:[%s6667_s3 + $0xd0] sm:$0xff]  ;;  %v290_v32 = vld [vmem:[%s4492_s15 + $0x40] sm:$0xff] }
  0x16   : > { %339 = vmatpush.msra.mxu0 %v324_v5  ;;  %4290 = vmatpush.msra.mxu3 %v324_v5  ;;  %v4551_v33 = vld [vmem:[%s6667_s3 + $0xc8] sm:$0xff]  ;;  %v1970_v35 = vld [vmem:[%s6667_s3 + $0x60] sm:$0xff]  ;;  %v1969_v37 = vld [vmem:[%s6667_s3 + $0x58] sm:$0xff] }
  0x17   : > { %2122 = vmatpush.msra.mxu2 %v4532_v29  ;;  %2007 = vmatpush.msra.mxu1 %v1972_v28  ;;  %v1971_v34 = vld [vmem:[%s6667_s3 + $0x68] sm:$0xff]  ;;  %v4563_v36 = vld [vmem:[%s6667_s3 + $0xc0] sm:$0xff]  ;;  %v4572_v38 = vld [vmem:[%s6667_s3 + $0xb8] sm:$0xff] }
  0x18   : > { %340 = vmatpush.msra.mxu0 %v323_v6  ;;  %4291 = vmatpush.msra.mxu3 %v323_v6  ;;  %v1968_v39 = vld [vmem:[%s6667_s3 + $0x50] sm:$0xff]  ;;  %v291_v41 = vld [vmem:[%s4492_s15 + $0x48] sm:$0xff]  ;;  %v1966_v44 = vld [vmem:[%s6667_s3 + $0x40] sm:$0xff] }
  0x19   : > { %2123 = vmatpush.msra.mxu2 %v4538_v30  ;;  %2008 = vmatpush.msra.mxu1 %v1971_v34  ;;  %v4581_v40 = vld [vmem:[%s6667_s3 + $0xb0] sm:$0xff]  ;;  %v4588_v42 = vld [vmem:[%s6667_s3 + $0xa8] sm:$0xff]  ;;  %v4600_v45 = vld [vmem:[%s6667_s3 + $0xa0] sm:$0xff] }
  0x1a   : > { %341 = vmatpush.msra.mxu0 %v322_v7  ;;  %4292 = vmatpush.msra.mxu3 %v322_v7  ;;  %v1967_v43 = vld [vmem:[%s6667_s3 + $0x48] sm:$0xff]  ;;  %v1965_v46 = vld [vmem:[%s6667_s3 + $0x38] sm:$0xff]  ;;  %v1964_v48 = vld [vmem:[%s6667_s3 + $0x30] sm:$0xff] }
  0x1b   : > { %2124 = vmatpush.msra.mxu2 %v4544_v31  ;;  %2009 = vmatpush.msra.mxu1 %v1970_v35  ;;  %v4609_v47 = vld [vmem:[%s6667_s3 + $0x98] sm:$0xff]  ;;  %v4618_v49 = vld [vmem:[%s6667_s3 + $0x90] sm:$0xff]  ;;  %v4625_v51 = vld [vmem:[%s6667_s3 + $0x88] sm:$0xff] }
  0x1c   : > { %342 = vmatpush.msra.mxu0 %v321_v8  ;;  %4293 = vmatpush.msra.mxu3 %v321_v8  ;;  %v292_v50 = vld [vmem:[%s4492_s15 + $0x50] sm:$0xff]  ;;  %v1963_v52 = vld [vmem:[%s6667_s3 + $0x28] sm:$0xff]  ;;  %v1962_v53 = vld [vmem:[%s6667_s3 + $0x20] sm:$0xff] }
  0x1d   : > { %2125 = vmatpush.msra.mxu2 %v4551_v33  ;;  %2010 = vmatpush.msra.mxu1 %v1969_v37  ;;  %v4638_v56 = vld [vmem:[%s6667_s3 + $0x80] sm:$0xff]  ;;  %v1961_v57 = vld [vmem:[%s6667_s3 + $0x18] sm:$0xff]  ;;  %v1960_v59 = vld [vmem:[%s6667_s3 + $0x10] sm:$0xff] }
  0x1e   : > { %343 = vmatpush.msra.mxu0 %v320_v9  ;;  %4294 = vmatpush.msra.mxu3 %v320_v9  ;;  %v293_v61 = vld [vmem:[%s4492_s15 + $0x58] sm:$0xff]  ;;  %v1959_v63 = vld [vmem:[%s6667_s3 + $0x8] sm:$0xff]  ;;  %v1958_v0 = vld [vmem:[%s6667_s3] sm:$0xff] }
  0x1f   : > { %2126 = vmatpush.msra.mxu2 %v4563_v36  ;;  %2011 = vmatpush.msra.mxu1 %v1968_v39  ;;  %v1702_v1 = vld [vmem:[#allocation2 + $0x7] sm:$0xff]  ;;  %v1703_v5 = vld [vmem:[#allocation2 + $0xf] sm:$0xff]  ;;  %v297_v9 = vld [vmem:[%s4492_s15 + $0x78] sm:$0xff] }
  0x20   : > { %344 = vmatpush.msra.mxu0 %v319_v10  ;;  %4295 = vmatpush.msra.mxu3 %v319_v10  ;;  %v1734_v2 = vmul.f32 %v4658_v62, %v1702_v1  ;;  %v294_v4 = vld [vmem:[%s4492_s15 + $0x60] sm:$0xff]  ;;  %v1865_v6 = vmul.f32 0.0, %v1703_v5  ;;  %v295_v7 = vld [vmem:[%s4492_s15 + $0x68] sm:$0xff]  ;;  %v296_v8 = vld [vmem:[%s4492_s15 + $0x70] sm:$0xff] }
  0x21   : > { %2127 = vmatpush.msra.mxu2 %v4572_v38  ;;  %2012 = vmatpush.msra.mxu1 %v1967_v43  ;;  %v4675_v10 = vld [vmem:[%s6666_s2] ss:$0 sm:$0xff]  ;;  %v4194_v55 = vld [vmem:[%s6667_s3 + $0x1b8] sm:$0xff]  ;;  %v4193_v60 = vld [vmem:[%s6667_s3 + $0x1b0] sm:$0xff] }
  0x22   : > { %345 = vmatpush.msra.mxu0 %v318_v11  ;;  %4296 = vmatpush.msra.mxu3 %v318_v11  ;;  %v1862_v3 = vmul.f32 0.0, %v1734_v2  ;;  %v520_v11 = vadd.s32 16, %v4646_v58  ;;  %v301_v1 = vld [vmem:[%s4492_s15 + $0x98] sm:$0xff] }
  0x23   : > { %2128 = vmatpush.msra.mxu2 %v4581_v40  ;;  %2013 = vmatpush.msra.mxu1 %v1966_v44  ;;  %v4190_v5 = vld [vmem:[%s6667_s3 + $0x198] sm:$0xff] }
  0x24   : > { %346 = vmatpush.msra.mxu0 %v317_v12  ;;  %4297 = vmatpush.msra.mxu3 %v317_v12 }
  0x25   : > { %2129 = vmatpush.msra.mxu2 %v4588_v42  ;;  %2014 = vmatpush.msra.mxu1 %v1965_v46 }
  0x26   : > { %347 = vmatpush.msra.mxu0 %v316_v13  ;;  %4298 = vmatpush.msra.mxu3 %v316_v13  ;;  %v298_v13 = vld [vmem:[%s4492_s15 + $0x80] sm:$0xff] }
  0x27   : > { %2130 = vmatpush.msra.mxu2 %v4600_v45  ;;  %2015 = vmatpush.msra.mxu1 %v1964_v48 }
  0x28   : > { %348 = vmatpush.msra.mxu0 %v315_v14  ;;  %4299 = vmatpush.msra.mxu3 %v315_v14 }
  0x29   : > { %2131 = vmatpush.msra.mxu2 %v4609_v47  ;;  %2016 = vmatpush.msra.mxu1 %v1963_v52 }
  0x2a   : > { %349 = vmatpush.msra.mxu0 %v314_v15  ;;  %4300 = vmatpush.msra.mxu3 %v314_v15 }
  0x2b   : > { %350 = vmatmul.f32.vlgmr.msra.gmra.mxu0 %v282_v16  ;;  %2132 = vmatpush.msra.mxu2 %v4618_v49  ;;  %v568_v16 = vand.u32 15, %v520_v11 }
  0x2c   : > { %4301 = vmatpush.msrb.mxu3 %v1973_v27  ;;  %2017 = vmatpush.msra.mxu1 %v1962_v53 }
  0x2d   : > { %2133 = vmatpush.msra.mxu2 %v4625_v51  ;;  %vm1320_vm1 = vcmp.gt.s32.totalorder %v568_v16, 0  ;;  %v523_v16 = vadd.s32 40, %v4646_v58 }
  0x2e   : > { %4302 = vmatpush.msrb.mxu3 %v1972_v28  ;;  %2018 = vmatpush.msra.mxu1 %v1961_v57  ;;  %v4699_v27 = vsel %vm1320_vm1, 1.0, %v6672_v54 }
  0x2f   : > { %2134 = vmatpush.msra.mxu2 %v4638_v56  ;;  %6710 = vst [vmem:[#allocation5_spill] sm:$0xff] %v4699_v27 }
  0x30   : > { %4303 = vmatpush.msrb.mxu3 %v1971_v34  ;;  %2135 = vmatmul.f32.vlgmr.msra.gmra.mxu2 %v6672_v54 }
  0x31   : > { %2019 = vmatpush.msra.mxu1 %v1960_v59 }
  0x32   : > { %4304 = vmatpush.msrb.mxu3 %v1970_v35 }
  0x33   : > { %353 = vmatmul.f32.gmra.mxu0 %v283_v17  ;;  %2020 = vmatpush.msra.mxu1 %v1959_v63  ;;  %v4202_v17 = vld [vmem:[%s6667_s3 + $0x1f8] sm:$0xff] }
  0x34   : > { %4305 = vmatpush.msrb.mxu3 %v1969_v37  ;;  %2586 = vmatpush.msrb.mxu0 %v4202_v17  ;;  %v4197_v37 = vld [vmem:[%s6667_s3 + $0x1d0] sm:$0xff]  ;;  %v4187_v17 = vld [vmem:[%s6667_s3 + $0x180] sm:$0xff] }
  0x35   : > { %2021 = vmatpush.msra.mxu1 %v1958_v0 }
  0x36   : > { %4306 = vmatpush.msrb.mxu3 %v1968_v39  ;;  %2022 = vmatmul.f32.vlgmr.msra.gmra.mxu1 %v1862_v3  ;;  %v522_v39 = vadd.s32 32, %v4646_v58 }
  0x38   : > { %4307 = vmatpush.msrb.mxu3 %v1967_v43  ;;  %2138 = vmatmul.f32.gmra.mxu2 %v6672_v54 }
  0x3a   : > { %4308 = vmatpush.msrb.mxu3 %v1966_v44  ;;  %v300_v44 = vld [vmem:[%s4492_s15 + $0x90] sm:$0xff] }
  0x3b   : > { %356 = vmatmul.f32.gmra.mxu0 %v284_v18  ;;  %v4201_v18 = vld [vmem:[%s6667_s3 + $0x1f0] sm:$0xff] }
  0x3c   : > { %4309 = vmatpush.msrb.mxu3 %v1965_v46  ;;  %2587 = vmatpush.msrb.mxu0 %v4201_v18  ;;  %v521_v46 = vadd.s32 24, %v4646_v58 }
  0x3e   : > { %4310 = vmatpush.msrb.mxu3 %v1964_v48  ;;  %2025 = vmatmul.f32.gmra.mxu1 %v1865_v6 }
  0x40   : > { %4311 = vmatpush.msrb.mxu3 %v1963_v52 }
  0x42   : > { %4312 = vmatpush.msrb.mxu3 %v1962_v53  ;;  %v582_v53 = vand.u32 15, %v522_v39 }
  0x43   : > { %359 = vmatmul.f32.gmra.mxu0 %v285_v19  ;;  %v4200_v19 = vld [vmem:[%s6667_s3 + $0x1e8] sm:$0xff] }
  0x44   : > { %4313 = vmatpush.msrb.mxu3 %v1961_v57  ;;  %2588 = vmatpush.msrb.mxu0 %v4200_v19  ;;  %v306_v57 = vld [vmem:[%s4492_s15 + $0xc0] sm:$0xff]  ;;  %vm1322_vm2 = vcmp.gt.s32.totalorder %v582_v53, 0 }
  0x45   : > { %422 = vmatmul.f32.vlgmr.msra.gmra.mxu3 %v306_v57  ;;  %v4750_v3 = vsel %vm1322_vm2, 1.0, %v6672_v54  ;;  %v305_v57 = vld [vmem:[%s4492_s15 + $0xb8] sm:$0xff] }
  0x46   : > { %4314 = vmatpush.msrb.mxu3 %v1960_v59  ;;  %v575_v59 = vand.u32 15, %v521_v46  ;;  %6711 = vst [vmem:[#allocation6_spill] sm:$0xff] %v4750_v3 }
  0x48   : > { %4315 = vmatpush.msrb.mxu3 %v1959_v63  ;;  %v4192_v63 = vld [vmem:[%s6667_s3 + $0x1a8] sm:$0xff]  ;;  %vm1417_vm3 = vcmp.lt.s32.totalorder %v575_v59, 15 }
  0x4a   : > { %4316 = vmatpush.msrb.mxu3 %v1958_v0 }
  0x4b   : > { %362 = vmatmul.f32.gmra.mxu0 %v286_v20 }
  0x4c   : > { %4317 = vmatpush.msra.mxu3 %v4507_v23  ;;  %v4191_v23 = vld [vmem:[%s6667_s3 + $0x1a0] sm:$0xff] }
  0x4e   : > { %4318 = vmatpush.msra.mxu3 %v4513_v24  ;;  %v4757_v24 = vsel %vm1417_vm3, 1.0, %v6672_v54 }
  0x4f   : > { %6712 = vst [vmem:[#allocation7_spill] sm:$0xff] %v4757_v24 }
  0x50   : > { %4319 = vmatpush.msra.mxu3 %v4520_v26 }
  0x52   : > { %4320 = vmatpush.msra.mxu3 %v4532_v29  ;;  %v524_v29 = vadd.s32 48, %v4646_v58 }
  0x53   : > { %365 = vmatmul.f32.gmra.mxu0 %v287_v21  ;;  %v299_v21 = vld [vmem:[%s4492_s15 + $0x88] sm:$0xff] }
  0x54   : > { %4321 = vmatpush.msra.mxu3 %v4538_v30  ;;  %v596_v19 = vand.u32 15, %v524_v29 }
  0x56   : > { %4322 = vmatpush.msra.mxu3 %v4544_v31  ;;  %vm1324_vm4 = vcmp.gt.s32.totalorder %v596_v19, 0 }
  0x58   : > { %4323 = vmatpush.msra.mxu3 %v4551_v33  ;;  %v303_v33 = vld [vmem:[%s4492_s15 + $0xa8] sm:$0xff] }
  0x5a   : > { %4324 = vmatpush.msra.mxu3 %v4563_v36  ;;  %v4797_v36 = vsel %vm1324_vm4, 1.0, %v6672_v54 }
  0x5b   : > { %368 = vmatmul.f32.gmra.mxu0 %v288_v22  ;;  %6713 = vst [vmem:[#allocation8_spill] sm:$0xff] %v4797_v36 }
  0x5c   : > { %4325 = vmatpush.msra.mxu3 %v4572_v38 }
  0x5e   : > { %4326 = vmatpush.msra.mxu3 %v4581_v40 }
  0x60   : > { %4327 = vmatpush.msra.mxu3 %v4588_v42 }
  0x62   : > { %4328 = vmatpush.msra.mxu3 %v4600_v45  ;;  %v525_v45 = vadd.s32 56, %v4646_v58 }
  0x63   : > { %371 = vmatmul.f32.gmra.mxu0 %v289_v25  ;;  %v4199_v25 = vld [vmem:[%s6667_s3 + $0x1e0] sm:$0xff] }
  0x64   : > { %2589 = vmatpush.msrb.mxu0 %v4199_v25  ;;  %4329 = vmatpush.msra.mxu3 %v4609_v47  ;;  %v603_v53 = vand.u32 15, %v525_v45 }
  0x66   : > { %4330 = vmatpush.msra.mxu3 %v4618_v49  ;;  %vm1421_vm7 = vcmp.lt.s32.totalorder %v603_v53, 15 }
  0x68   : > { %4331 = vmatpush.msra.mxu3 %v4625_v51 }
  0x6a   : > { %4332 = vmatpush.msra.mxu3 %v4638_v56  ;;  %v4833_v56 = vsel %vm1421_vm7, 1.0, %v6672_v54 }
  0x6b   : > { %374 = vmatmul.f32.gmra.mxu0 %v290_v32  ;;  %v4198_v32 = vld [vmem:[%s6667_s3 + $0x1d8] sm:$0xff]  ;;  %6716 = vst [vmem:[#allocation11_spill] sm:$0xff] %v4833_v56 }
  0x6c   : > { %2590 = vmatpush.msrb.mxu0 %v4198_v32 }
  0x6e   : > { %2591 = vmatpush.msrb.mxu0 %v4197_v37  ;;  %v309_v37 = vld [vmem:[%s4492_s15 + $0xd8] sm:$0xff] }
  0x73   : > { %377 = vmatmul.f32.gmra.mxu0 %v291_v41  ;;  %v4196_v41 = vld [vmem:[%s6667_s3 + $0x1c8] sm:$0xff] }
  0x74   : > { %2592 = vmatpush.msrb.mxu0 %v4196_v41  ;;  %v526_v41 = vadd.s32 64, %v4646_v58 }
  0x76   : > { %v610_v47 = vand.u32 15, %v526_v41 }
  0x78   : > { %vm1326_vm6 = vcmp.gt.s32.totalorder %v610_v47, 0 }
  0x79   : > { %v4830_v59 = vsel %vm1326_vm6, 1.0, %v6672_v54 }
  0x7a   : > { %6715 = vst [vmem:[#allocation10_spill] sm:$0xff] %v4830_v59 }
  0x7b   : > { %380 = vmatmul.f32.gmra.mxu0 %v292_v50  ;;  %v4195_v50 = vld [vmem:[%s6667_s3 + $0x1c0] sm:$0xff] }
  0x7c   : > { %2593 = vmatpush.msrb.mxu0 %v4195_v50  ;;  %v310_v50 = vld [vmem:[%s4492_s15 + $0xe0] sm:$0xff] }
  0x7e   : > { %2594 = vmatpush.msrb.mxu0 %v4194_v55 }
  0x80   : > { %2595 = vmatpush.msrb.mxu0 %v4193_v60 }
  0x82   : > { %2596 = vmatpush.msrb.mxu0 %v4192_v63 }
  0x83   : > { %383 = vmatmul.f32.gmra.mxu0 %v293_v61 }
  0x84   : > { %2597 = vmatpush.msrb.mxu0 %v4191_v23 }
  0x86   : > { %2598 = vmatpush.msrb.mxu0 %v4190_v5 }
  0x8b   : > { %386 = vmatmul.f32.gmra.mxu0 %v294_v4 }
  0x93   : > { %389 = vmatmul.f32.gmra.mxu0 %v295_v7  ;;  %v307_v7 = vld [vmem:[%s4492_s15 + $0xc8] sm:$0xff] }
  0x94   : > { %425 = vmatmul.f32.gmra.mxu3 %v307_v7  ;;  %v527_v7 = vadd.s32 72, %v4646_v58 }
  0x9b   : > { %392 = vmatmul.f32.gmra.mxu0 %v296_v8 }
  0xa3   : > { %395 = vmatmul.f32.gmra.mxu0 %v297_v9  ;;  %v4189_v9 = vld [vmem:[%s6667_s3 + $0x190] sm:$0xff] }
  0xa4   : > { %2599 = vmatpush.msrb.mxu0 %v4189_v9 }
  0xa8   : > { %v351_v12 = vpop.f32.mrf.mxu0 }
  0xa9   : > { %v352_v14 = vadd.f32 %v4675_v10, %v351_v12  ;;  %v4188_v12 = vld [vmem:[%s6667_s3 + $0x188] sm:$0xff] }
  0xaa   : > { %2600 = vmatpush.msrb.mxu0 %v4188_v12 }
  0xab   : > { %v4680_v15 = vmax.f32 %v352_v14, 0.0  ;;  %398 = vmatmul.f32.gmra.mxu0 %v298_v13  ;;  %v302_v14 = vld [vmem:[%s4492_s15 + $0xa0] sm:$0xff] }
  0xac   : > { %2601 = vmatpush.msrb.mxu0 %v4187_v17 }
  0xad   : > { %485 = vst [vmem:[#allocation2 + $0x18] sm:$0xff] %v4680_v15  ;;  %2141 = vmatmul.f32.gmra.mxu2 %v4680_v15 }
  0xb0   : > { %v354_v20 = vpop.f32.mrf.mxu0 }
  0xb1   : > { %v355_v22 = vadd.f32 %v4675_v10, %v354_v20  ;;  %v308_v20 = vld [vmem:[%s4492_s15 + $0xd0] sm:$0xff] }
  0xb2   : > { %428 = vmatmul.f32.gmra.mxu3 %v308_v20 }
  0xb3   : > { %v4701_v28 = vmax.f32 %v355_v22, 0.0  ;;  %401 = vmatmul.f32.gmra.mxu0 %v299_v21  ;;  %v589_v21 = vand.u32 15, %v523_v16 }
  0xb4   : > { %v4706_v34 = vld [vmem:[#allocation2 + $0x17] sm:$0xff] }
  0xb5   : > { %486 = vst [vmem:[#allocation2 + $0x20] sm:$0xff] %v4701_v28  ;;  %v1736_v35 = vmul.f32 %v4699_v27, %v4706_v34  ;;  %2144 = vmatmul.f32.gmra.mxu2 %v4701_v28  ;;  %vm1419_vm5 = vcmp.lt.s32.totalorder %v589_v21, 15  ;;  %v2409_v9 = vmul.f32 %v4658_v62, %v4706_v34  ;;  %v540_v62 = vadd.s32 176, %v4646_v58 }
  0xb6   : > { %v4801_v38 = vsel %vm1419_vm5, 1.0, %v6672_v54 }
  0xb7   : > { %2028 = vmatmul.f32.gmra.mxu1 %v1736_v35  ;;  %6714 = vst [vmem:[#allocation9_spill] sm:$0xff] %v4801_v38 }
  0xb8   : > { %v357_v43 = vpop.f32.mrf.mxu0 }
  0xb9   : > { %v358_v48 = vadd.f32 %v4675_v10, %v357_v43 }
  0xba   : > { %431 = vmatmul.f32.gmra.mxu3 %v309_v37 }
  0xbb   : > { %v4725_v52 = vmax.f32 %v358_v48, 0.0  ;;  %404 = vmatmul.f32.gmra.mxu0 %v300_v44  ;;  %v304_v44 = vld [vmem:[%s4492_s15 + $0xb0] sm:$0xff] }
  0xbc   : > { %v4736_v61 = vld [vmem:[#allocation2 + $0x1f] sm:$0xff] }
  0xbd   : > { %487 = vst [vmem:[#allocation2 + $0x28] sm:$0xff] %v4725_v52  ;;  %2147 = vmatmul.f32.gmra.mxu2 %v4725_v52 }
  0xbf   : > { %2031 = vmatmul.f32.gmra.mxu1 %v4736_v61 }
  0xc0   : > { %v360_v0 = vpop.f32.mrf.mxu0 }
  0xc1   : > { %v361_v2 = vadd.f32 %v4675_v10, %v360_v0  ;;  %v311_v0 = vld [vmem:[%s4492_s15 + $0xe8] sm:$0xff] }
  0xc2   : > { %434 = vmatmul.f32.gmra.mxu3 %v310_v50 }
  0xc3   : > { %v450_v4 = vmax.f32 %v361_v2, 0.0  ;;  %407 = vmatmul.f32.gmra.mxu0 %v301_v1 }
  0xc4   : > { %v4759_v6 = vld [vmem:[#allocation2 + $0x27] sm:$0xff] }
  0xc5   : > { %v4762_v8 = vld [vmem:[#allocation2 + $0x21] sm:$0xff]  ;;  %488 = vst [vmem:[#allocation2 + $0x30] sm:$0xff] %v450_v4  ;;  %v1738_v26 = vmul.f32 %v4750_v3, %v4759_v6  ;;  %2150 = vmatmul.f32.gmra.mxu2 %v450_v4  ;;  %v528_v4 = vadd.s32 80, %v4646_v58 }
  0xc6   : > { %v4773_v11 = vmul.f32 %v4757_v24, %v4762_v8 }
  0xc7   : > { %2034 = vmatmul.f32.gmra.mxu1 %v1738_v26  ;;  %v624_v12 = vand.u32 15, %v528_v4 }
  0xc8   : > { %v363_v13 = vpop.f32.mrf.mxu0 }
  0xc9   : > { %v364_v30 = vadd.f32 %v4675_v10, %v363_v13  ;;  %v617_v13 = vand.u32 15, %v527_v7  ;;  %vm1328_vm8 = vcmp.gt.s32.totalorder %v624_v12, 0  ;;  %v4218_v12 = vld [vmem:[%s6667_s3 + $0x278] sm:$0xff] }
  0xca   : > { %437 = vmatmul.f32.gmra.mxu3 %v311_v0  ;;  %v4861_v17 = vsel %vm1328_vm8, 1.0, %v6672_v54  ;;  %v531_v0 = vadd.s32 104, %v4646_v58  ;;  %2699 = vmatpush.msrb.mxu1 %v4218_v12 }
  0xcb   : > { %v451_v18 = vmax.f32 %v364_v30, 0.0  ;;  %410 = vmatmul.f32.gmra.mxu0 %v302_v14  ;;  %v312_v14 = vld [vmem:[%s4492_s15 + $0xf0] sm:$0xff]  ;;  %vm1423_vm9 = vcmp.lt.s32.totalorder %v617_v13, 15  ;;  %6718 = vst [vmem:[#allocation13_spill] sm:$0xff] %v4861_v17 }
  0xcc   : > { %v4789_v31 = vld [vmem:[#allocation2 + $0x2f] sm:$0xff]  ;;  %v4867_v19 = vsel %vm1423_vm9, 1.0, %v6672_v54 }
  0xcd   : > { %489 = vst [vmem:[#allocation2 + $0x38] sm:$0xff] %v451_v18  ;;  %2153 = vmatmul.f32.gmra.mxu2 %v451_v18 }
  0xcf   : > { %2037 = vmatmul.f32.gmra.mxu1 %v4789_v31 }
  0xd0   : > { %v366_v22 = vpop.f32.mrf.mxu0 }
  0xd1   : > { %v367_v25 = vadd.f32 %v4675_v10, %v366_v22 }
  0xd2   : > { %440 = vmatmul.f32.gmra.mxu3 %v312_v14 }
  0xd3   : > { %v452_v32 = vmax.f32 %v367_v25, 0.0  ;;  %413 = vmatmul.f32.gmra.mxu0 %v303_v33 }
  0xd4   : > { %v4803_v35 = vld [vmem:[#allocation2 + $0x37] sm:$0xff] }
  0xd5   : > { %v4806_v39 = vld [vmem:[#allocation2 + $0x31] sm:$0xff]  ;;  %490 = vst [vmem:[#allocation2 + $0x40] sm:$0xff] %v452_v32  ;;  %v1740_v40 = vmul.f32 %v4797_v36, %v4803_v35  ;;  %2156 = vmatmul.f32.gmra.mxu2 %v452_v32  ;;  %v529_v32 = vadd.s32 88, %v4646_v58  ;;  %v2413_v4 = vmul.f32 %v4750_v3, %v4803_v35 }
  0xd6   : > { %v4814_v42 = vmul.f32 %v4801_v38, %v4806_v39 }
  0xd7   : > { %2040 = vmatmul.f32.gmra.mxu1 %v1740_v40  ;;  %v2411_v40 = vmul.f32 %v4699_v27, %v4759_v6 }
  0xd8   : > { %v369_v43 = vpop.f32.mrf.mxu0 }
  0xd9   : > { %v370_v46 = vadd.f32 %v4675_v10, %v369_v43 }
  0xdb   : > { %v453_v48 = vmax.f32 %v370_v46, 0.0  ;;  %416 = vmatmul.f32.gmra.mxu0 %v304_v44  ;;  %v631_v44 = vand.u32 15, %v529_v32 }
  0xdc   : > { %v4824_v55 = vld [vmem:[#allocation2 + $0x3f] sm:$0xff] }
  0xdd   : > { %491 = vst [vmem:[#allocation2 + $0x48] sm:$0xff] %v453_v48  ;;  %2159 = vmatmul.f32.gmra.mxu2 %v453_v48  ;;  %vm1425_vm11 = vcmp.lt.s32.totalorder %v631_v44, 15 }
  0xde   : > { %v4899_v50 = vsel %vm1425_vm11, 1.0, %v6672_v54 }
  0xdf   : > { %2043 = vmatmul.f32.gmra.mxu1 %v4824_v55 }
  0xe0   : > { %v372_v49 = vpop.f32.mrf.mxu0 }
  0xe1   : > { %v373_v51 = vadd.f32 %v4675_v10, %v372_v49 }
  0xe3   : > { %v454_v60 = vmax.f32 %v373_v51, 0.0  ;;  %419 = vmatmul.f32.gmra.mxu0 %v305_v57 }
  0xe4   : > { %v4835_v63 = vld [vmem:[#allocation2 + $0x47] sm:$0xff] }
  0xe5   : > { %v4838_v1 = vld [vmem:[#allocation2 + $0x41] sm:$0xff]  ;;  %492 = vst [vmem:[#allocation2 + $0x50] sm:$0xff] %v454_v60  ;;  %v1742_v2 = vmul.f32 %v4830_v59, %v4835_v63  ;;  %2162 = vmatmul.f32.gmra.mxu2 %v454_v60  ;;  %v532_v60 = vadd.s32 112, %v4646_v58  ;;  %v2415_v44 = vmul.f32 %v4797_v36, %v4835_v63  ;;  %v4954_v63 = vpop.f32.mrf.mxu2 }
  0xe6   : > { %v4844_v23 = vmul.f32 %v4833_v56, %v4838_v1  ;;  %6724 = vst [vmem:[#allocation19_spill] sm:$0xff] %v4954_v63 }
  0xe7   : > { %2046 = vmatmul.f32.gmra.mxu1 %v1742_v2  ;;  %v652_v7 = vand.u32 15, %v532_v60  ;;  %v4234_v60 = vld [vmem:[%s6667_s3 + $0x2f8] sm:$0xff] }
  0xe8   : > { %6717 = vst [vmem:[#allocation12_spill] sm:$0xff] %v4844_v23  ;;  %v375_v5 = vpop.f32.mrf.mxu0  ;;  %2812 = vmatpush.msrb.mxu2 %v4234_v60 }
  0xe9   : > { %v376_v26 = vadd.f32 %v4675_v10, %v375_v5  ;;  %vm1332_vm12 = vcmp.gt.s32.totalorder %v652_v7, 0  ;;  %v4232_v7 = vld [vmem:[%s6667_s3 + $0x2e8] sm:$0xff] }
  0xea   : > { %v4924_v14 = vsel %vm1332_vm12, 1.0, %v6672_v54 }
  0xeb   : > { %v4851_v29 = vmax.f32 %v376_v26, 0.0  ;;  %2602 = vmatmul.f32.vlgmr.msrb.gmra.mxu0 %v2409_v9  ;;  %v645_v26 = vand.u32 15, %v531_v0  ;;  %6722 = vst [vmem:[#allocation17_spill] sm:$0xff] %v4924_v14  ;;  %v4233_v0 = vld [vmem:[%s6667_s3 + $0x2f0] sm:$0xff] }
  0xec   : > { %v4856_v16 = vld [vmem:[#allocation2 + $0x4f] sm:$0xff]  ;;  %2813 = vmatpush.msrb.mxu2 %v4233_v0 }
  0xed   : > { %493 = vst [vmem:[#allocation2 + $0x58] sm:$0xff] %v4851_v29  ;;  %2165 = vmatmul.f32.gmra.mxu2 %v4851_v29  ;;  %vm1427_vm13 = vcmp.lt.s32.totalorder %v645_v26, 15  ;;  %v4999_v60 = vpop.f32.mrf.mxu2  ;;  %v4228_v0 = vld [vmem:[%s6667_s3 + $0x2c8] sm:$0xff] }
  0xee   : > { %2814 = vmatpush.msrb.mxu2 %v4232_v7  ;;  %6729 = vst [vmem:[#allocation24_spill] sm:$0xff] %v4999_v60 }
  0xef   : > { %2049 = vmatmul.f32.gmra.mxu1 %v4856_v16 }
  0xf0   : > { %v378_v30 = vpop.f32.mrf.mxu0 }
  0xf1   : > { %v379_v34 = vadd.f32 %v4675_v10, %v378_v30 }
  0xf3   : > { %v4863_v18 = vmax.f32 %v379_v34, 0.0  ;;  %2605 = vmatmul.f32.gmra.mxu0 %v4736_v61  ;;  %v530_v61 = vadd.s32 96, %v4646_v58  ;;  %v4928_v34 = vsel %vm1427_vm13, 1.0, %v6672_v54 }
  0xf4   : > { %v4869_v20 = vld [vmem:[#allocation2 + $0x57] sm:$0xff] }
  0xf5   : > { %v4871_v21 = vld [vmem:[#allocation2 + $0x51] sm:$0xff]  ;;  %494 = vst [vmem:[#allocation2 + $0x60] sm:$0xff] %v4863_v18  ;;  %v1744_v22 = vmul.f32 %v4861_v17, %v4869_v20  ;;  %2168 = vmatmul.f32.gmra.mxu2 %v4863_v18  ;;  %v638_v43 = vand.u32 15, %v530_v61 }
  0xf6   : > { %v4879_v33 = vmul.f32 %v4867_v19, %v4871_v21 }
  0xf7   : > { %2052 = vmatmul.f32.gmra.mxu1 %v1744_v22  ;;  %vm1330_vm10 = vcmp.gt.s32.totalorder %v638_v43, 0 }
  0xf8   : > { %6719 = vst [vmem:[#allocation14_spill] sm:$0xff] %v4879_v33  ;;  %v381_v25 = vpop.f32.mrf.mxu0  ;;  %v4895_v6 = vsel %vm1330_vm10, 1.0, %v6672_v54 }
  0xf9   : > { %v382_v37 = vadd.f32 %v4675_v10, %v381_v25  ;;  %6720 = vst [vmem:[#allocation15_spill] sm:$0xff] %v4895_v6 }
  0xfb   : > { %v4886_v41 = vmax.f32 %v382_v37, 0.0  ;;  %2608 = vmatmul.f32.gmra.mxu0 %v2411_v40  ;;  %v534_v37 = vadd.s32 128, %v4646_v58  ;;  %v533_v40 = vadd.s32 120, %v4646_v58 }
  0xfc   : > { %v4890_v45 = vld [vmem:[#allocation2 + $0x5f] sm:$0xff] }
  0xfd   : > { %495 = vst [vmem:[#allocation2 + $0x68] sm:$0xff] %v4886_v41  ;;  %2171 = vmatmul.f32.gmra.mxu2 %v4886_v41 }
  0xff   : > { %2055 = vmatmul.f32.gmra.mxu1 %v4890_v45 }
 0x100   : > { %v384_v46 = vpop.f32.mrf.mxu0 }
 0x101   : > { %v385_v48 = vadd.f32 %v4675_v10, %v384_v46 }
 0x103   : > { %v458_v47 = vmax.f32 %v385_v48, 0.0  ;;  %2611 = vmatmul.f32.gmra.mxu0 %v4789_v31  ;;  %v666_v48 = vand.u32 15, %v534_v37 }
 0x104   : > { %v4901_v53 = vld [vmem:[#allocation2 + $0x67] sm:$0xff] }
 0x105   : > { %v4903_v49 = vld [vmem:[#allocation2 + $0x61] sm:$0xff]  ;;  %496 = vst [vmem:[#allocation2 + $0x70] sm:$0xff] %v458_v47  ;;  %v1746_v57 = vmul.f32 %v4895_v6, %v4901_v53  ;;  %2174 = vmatmul.f32.gmra.mxu2 %v458_v47  ;;  %v659_v47 = vand.u32 15, %v533_v40  ;;  %vm1334_vm14 = vcmp.gt.s32.totalorder %v666_v48, 0  ;;  %v536_v40 = vadd.s32 144, %v4646_v58 }
 0x106   : > { %v4909_v51 = vmul.f32 %v4899_v50, %v4903_v49  ;;  %v4966_v26 = vsel %vm1334_vm14, 1.0, %v6672_v54  ;;  %v535_v48 = vadd.s32 136, %v4646_v58 }
 0x107   : > { %2058 = vmatmul.f32.gmra.mxu1 %v1746_v57  ;;  %v4217_v57 = vld [vmem:[%s6667_s3 + $0x270] sm:$0xff]  ;;  %vm1429_vm15 = vcmp.lt.s32.totalorder %v659_v47, 15  ;;  %6726 = vst [vmem:[#allocation21_spill] sm:$0xff] %v4966_v26  ;;  %v680_v7 = vand.u32 15, %v536_v40  ;;  %v4214_v40 = vld [vmem:[%s6667_s3 + $0x258] sm:$0xff] }
 0x108   : > { %6721 = vst [vmem:[#allocation16_spill] sm:$0xff] %v4909_v51  ;;  %v387_v31 = vpop.f32.mrf.mxu0  ;;  %2700 = vmatpush.msrb.mxu1 %v4217_v57  ;;  %v2417_v57 = vmul.f32 %v4830_v59, %v4869_v20  ;;  %v4215_v20 = vld [vmem:[%s6667_s3 + $0x260] sm:$0xff] }
 0x109   : > { %v388_v2 = vadd.f32 %v4675_v10, %v387_v31  ;;  %vm1336_vm0 = vcmp.gt.s32.totalorder %v680_v7, 0 }
 0x10b   : > { %v459_v5 = vmax.f32 %v388_v2, 0.0  ;;  %2614 = vmatmul.f32.gmra.mxu0 %v2413_v4  ;;  %v4959_v4 = vpop.f32.mrf.mxu1 }
 0x10c   : > { %v4916_v9 = vld [vmem:[#allocation2 + $0x6f] sm:$0xff]  ;;  %6725 = vst [vmem:[#allocation20_spill] sm:$0xff] %v4959_v4 }
 0x10d   : > { %497 = vst [vmem:[#allocation2 + $0x78] sm:$0xff] %v459_v5  ;;  %2177 = vmatmul.f32.gmra.mxu2 %v459_v5 }
 0x10f   : > { %2061 = vmatmul.f32.gmra.mxu1 %v4916_v9 }
 0x110   : > { %v390_v13 = vpop.f32.mrf.mxu0 }
 0x111   : > { %v391_v35 = vadd.f32 %v4675_v10, %v390_v13  ;;  %v4231_v13 = vld [vmem:[%s6667_s3 + $0x2e0] sm:$0xff] }
 0x112   : > { %2815 = vmatpush.msrb.mxu2 %v4231_v13  ;;  %v673_v13 = vand.u32 15, %v535_v48  ;;  %v4213_v48 = vld [vmem:[%s6667_s3 + $0x250] sm:$0xff] }
 0x113   : > { %v460_v30 = vmax.f32 %v391_v35, 0.0  ;;  %2617 = vmatmul.f32.gmra.mxu0 %v4824_v55  ;;  %v4973_v35 = vsel %vm1429_vm15, 1.0, %v6672_v54 }
 0x114   : > { %v4930_v22 = vld [vmem:[#allocation2 + $0x77] sm:$0xff]  ;;  %6727 = vst [vmem:[#allocation22_spill] sm:$0xff] %v4973_v35  ;;  %vm1431_vm1 = vcmp.lt.s32.totalorder %v673_v13, 15  ;;  %v4223_v13 = vld [vmem:[%s6667_s3 + $0x2a0] sm:$0xff] }
 0x115   : > { %v4932_v61 = vld [vmem:[#allocation2 + $0x71] sm:$0xff]  ;;  %498 = vst [vmem:[#allocation2 + $0x80] sm:$0xff] %v460_v30  ;;  %v1748_v25 = vmul.f32 %v4924_v14, %v4930_v22  ;;  %2180 = vmatmul.f32.gmra.mxu2 %v460_v30 }
 0x116   : > { %v4938_v32 = vmul.f32 %v4928_v34, %v4932_v61 }
 0x117   : > { %2064 = vmatmul.f32.gmra.mxu1 %v1748_v25 }
 0x118   : > { %6723 = vst [vmem:[#allocation18_spill] sm:$0xff] %v4938_v32  ;;  %v393_v55 = vpop.f32.mrf.mxu0 }
 0x119   : > { %v394_v43 = vadd.f32 %v4675_v10, %v393_v55 }
 0x11b   : > { %v461_v46 = vmax.f32 %v394_v43, 0.0  ;;  %2620 = vmatmul.f32.gmra.mxu0 %v2415_v44  ;;  %v4216_v43 = vld [vmem:[%s6667_s3 + $0x268] sm:$0xff]  ;;  %v4229_v44 = vld [vmem:[%s6667_s3 + $0x2d0] sm:$0xff] }
 0x11c   : > { %v4951_v31 = vld [vmem:[#allocation2 + $0x7f] sm:$0xff]  ;;  %2701 = vmatpush.msrb.mxu1 %v4216_v43  ;;  %v4225_v43 = vld [vmem:[%s6667_s3 + $0x2b0] sm:$0xff] }
 0x11d   : > { %499 = vst [vmem:[#allocation2 + $0x88] sm:$0xff] %v461_v46  ;;  %2183 = vmatmul.f32.gmra.mxu2 %v461_v46 }
 0x11e   : > { %2702 = vmatpush.msrb.mxu1 %v4215_v20  ;;  %v5045_v20 = vsel %vm1431_vm1, 1.0, %v6672_v54 }
 0x11f   : > { %2067 = vmatmul.f32.gmra.mxu1 %v4951_v31  ;;  %6733 = vst [vmem:[#allocation28_spill] sm:$0xff] %v5045_v20 }
 0x120   : > { %v396_v2 = vpop.f32.mrf.mxu0  ;;  %2703 = vmatpush.msrb.mxu1 %v4214_v40 }
 0x121   : > { %v397_v5 = vadd.f32 %v4675_v10, %v396_v2  ;;  %v5004_v2 = vpop.f32.mrf.mxu1 }
 0x122   : > { %6730 = vst [vmem:[#allocation25_spill] sm:$0xff] %v5004_v2  ;;  %2704 = vmatpush.msrb.mxu1 %v4213_v48 }
 0x123   : > { %v462_v12 = vmax.f32 %v397_v5, 0.0  ;;  %2623 = vmatmul.f32.gmra.mxu0 %v4856_v16  ;;  %v4230_v16 = vld [vmem:[%s6667_s3 + $0x2d8] sm:$0xff] }
 0x124   : > { %v4975_v30 = vld [vmem:[#allocation2 + $0x87] sm:$0xff]  ;;  %2816 = vmatpush.msrb.mxu2 %v4230_v16 }
 0x125   : > { %v4977_v25 = vld [vmem:[#allocation2 + $0x81] sm:$0xff]  ;;  %500 = vst [vmem:[#allocation2 + $0x90] sm:$0xff] %v462_v12  ;;  %v1750_v37 = vmul.f32 %v4966_v26, %v4975_v30  ;;  %2186 = vmatmul.f32.gmra.mxu2 %v462_v12 }
 0x126   : > { %v4986_v55 = vmul.f32 %v4973_v35, %v4977_v25  ;;  %2817 = vmatpush.msrb.mxu2 %v4229_v44  ;;  %v4227_v12 = vld [vmem:[%s6667_s3 + $0x2c0] sm:$0xff] }
 0x127   : > { %2070 = vmatmul.f32.gmra.mxu1 %v1750_v37  ;;  %v4226_v37 = vld [vmem:[%s6667_s3 + $0x2b8] sm:$0xff] }
 0x128   : > { %6728 = vst [vmem:[#allocation23_spill] sm:$0xff] %v4986_v55  ;;  %v399_v46 = vpop.f32.mrf.mxu0  ;;  %2818 = vmatpush.msrb.mxu2 %v4228_v0  ;;  %v313_v0 = vld [vmem:[%s4492_s15 + $0xf8] sm:$0xff] }
 0x129   : > { %v400_v47 = vadd.f32 %v4675_v10, %v399_v46  ;;  %443 = vmatmul.f32.gmra.mxu3 %v313_v0  ;;  %v4210_v0 = vld [vmem:[%s6667_s3 + $0x238] sm:$0xff] }
 0x12a   : > { %2819 = vmatpush.msrb.mxu2 %v4227_v12  ;;  %v4212_v12 = vld [vmem:[%s6667_s3 + $0x248] sm:$0xff] }
 0x12b   : > { %v463_v5 = vmax.f32 %v400_v47, 0.0  ;;  %2626 = vmatmul.f32.gmra.mxu0 %v2417_v57  ;;  %v4224_v47 = vld [vmem:[%s6667_s3 + $0x2a8] sm:$0xff]  ;;  %v5032_v57 = vsel %vm1336_vm0, 1.0, %v6672_v54  ;;  %2705 = vmatpush.msrb.mxu1 %v4212_v12 }
 0x12c   : > { %v5015_v16 = vld [vmem:[#allocation2 + $0x8f] sm:$0xff]  ;;  %2820 = vmatpush.msrb.mxu2 %v4226_v37  ;;  %6731 = vst [vmem:[#allocation26_spill] sm:$0xff] %v5032_v57 }
 0x12d   : > { %501 = vst [vmem:[#allocation2 + $0x98] sm:$0xff] %v463_v5  ;;  %2189 = vmatmul.f32.gmra.mxu2 %v463_v5  ;;  %v4220_v54 = vld [vmem:[%s6667_s3 + $0x288] sm:$0xff] }
 0x12e   : > { %2821 = vmatpush.msrb.mxu2 %v4225_v43 }
 0x12f   : > { %2073 = vmatmul.f32.gmra.mxu1 %v5015_v16 }
 0x130   : > { %v402_v44 = vpop.f32.mrf.mxu0  ;;  %2822 = vmatpush.msrb.mxu2 %v4224_v47  ;;  %v5036_v7 = vpop.f32.mrf.mxu2  ;;  %v538_v47 = vadd.s32 160, %v4646_v58 }
 0x131   : > { %v403_v46 = vadd.f32 %v4675_v10, %v402_v44  ;;  %6732 = vst [vmem:[#allocation27_spill] sm:$0xff] %v5036_v7  ;;  %v4211_v44 = vld [vmem:[%s6667_s3 + $0x240] sm:$0xff] }
 0x132   : > { %2823 = vmatpush.msrb.mxu2 %v4223_v13  ;;  %2706 = vmatpush.msrb.mxu1 %v4211_v44  ;;  %v537_v13 = vadd.s32 152, %v4646_v58 }
 0x133   : > { %v464_v5 = vmax.f32 %v403_v46, 0.0  ;;  %2629 = vmatmul.f32.gmra.mxu0 %v4890_v45  ;;  %v4222_v46 = vld [vmem:[%s6667_s3 + $0x298] sm:$0xff] }
 0x134   : > { %v5047_v37 = vpop.f32.mrf.mxu1  ;;  %v5049_v40 = vld [vmem:[#allocation2 + $0x97] sm:$0xff]  ;;  %2824 = vmatpush.msrb.mxu2 %v4222_v46  ;;  %2707 = vmatpush.msrb.mxu1 %v4210_v0  ;;  %v694_v0 = vand.u32 15, %v538_v47 }
 0x135   : > { %6734 = vst [vmem:[#allocation29_spill] sm:$0xff] %v5047_v37  ;;  %v5051_v45 = vld [vmem:[#allocation2 + $0x91] sm:$0xff]  ;;  %v1752_v43 = vmul.f32 %v5032_v57, %v5049_v40  ;;  %2192 = vmatmul.f32.gmra.mxu2 %v464_v5 }
 0x136   : > { %502 = vst [vmem:[#allocation2 + $0xa0] sm:$0xff] %v464_v5  ;;  %v5063_v48 = vmul.f32 %v5045_v20, %v5051_v45  ;;  %v4221_v5 = vld [vmem:[%s6667_s3 + $0x290] sm:$0xff]  ;;  %vm1338_vm2 = vcmp.gt.s32.totalorder %v694_v0, 0 }
 0x137   : > { %2076 = vmatmul.f32.gmra.mxu1 %v1752_v43  ;;  %2825 = vmatpush.msrb.mxu2 %v4221_v5  ;;  %v2419_v43 = vmul.f32 %v4861_v17, %v4901_v53  ;;  %v4209_v46 = vld [vmem:[%s6667_s3 + $0x230] sm:$0xff]  ;;  %v4208_v5 = vld [vmem:[%s6667_s3 + $0x228] sm:$0xff]  ;;  %v4219_v53 = vld [vmem:[%s6667_s3 + $0x280] sm:$0xff]  ;;  %v687_v17 = vand.u32 15, %v537_v13 }
 0x138   : > { %6735 = vst [vmem:[#allocation30_spill] sm:$0xff] %v5063_v48  ;;  %v405_v12 = vpop.f32.mrf.mxu0  ;;  %2708 = vmatpush.msrb.mxu1 %v4209_v46  ;;  %v5090_v36 = vpop.f32.mrf.mxu2  ;;  %v4205_v46 = vld [vmem:[%s6667_s3 + $0x210] sm:$0xff] }
 0x139   : > { %v406_v44 = vadd.f32 %v4675_v10, %v405_v12  ;;  %2826 = vmatpush.msrb.mxu2 %v4220_v54  ;;  %6737 = vst [vmem:[#allocation32_spill] sm:$0xff] %v5090_v36  ;;  %v4207_v54 = vld [vmem:[%s6667_s3 + $0x220] sm:$0xff]  ;;  %vm1433_vm3 = vcmp.lt.s32.totalorder %v687_v17, 15  ;;  %v4204_v17 = vld [vmem:[%s6667_s3 + $0x208] sm:$0xff] }
 0x13a   : > { %2709 = vmatpush.msrb.mxu1 %v4208_v5  ;;  %v6738_v5 = vmov 0.0  }
 0x13b   : > { %v465_v59 = vmax.f32 %v406_v44, 0.0  ;;  %2632 = vmatmul.f32.gmra.mxu0 %v2419_v43  ;;  %2827 = vmatpush.msrb.mxu2 %v4219_v53  ;;  %v4206_v44 = vld [vmem:[%s6667_s3 + $0x218] sm:$0xff]  ;;  %v5106_v53 = vsel %vm1338_vm2, 1.0, %v6738_v5 }
 0x13c   : > { %v5088_v12 = vpop.f32.mrf.mxu1  ;;  %2710 = vmatpush.msrb.mxu1 %v4207_v54  ;;  %6739 = vst [vmem:[#allocation33_spill] sm:$0xff] %v5106_v53 }
 0x13d   : > { %6736 = vst [vmem:[#allocation31_spill] sm:$0xff] %v5088_v12  ;;  %2195 = vmatmul.f32.gmra.mxu2 %v465_v59  ;;  %v5095_v47 = vld [vmem:[#allocation2 + $0x9f] sm:$0xff] }
 0x13e   : > { %503 = vst [vmem:[#allocation2 + $0xa8] sm:$0xff] %v465_v59  ;;  %2711 = vmatpush.msrb.mxu1 %v4206_v44  ;;  %v423_v59 = vpop.f32.mrf.mxu3  ;;  %v5116_v44 = vsel %vm1433_vm3, 1.0, %v6738_v5 }
 0x13f   : > { %2079 = vmatmul.f32.gmra.mxu1 %v5095_v47  ;;  %v5110_v0 = vadd.f32 %v4675_v10, %v423_v59  ;;  %6740 = vst [vmem:[#allocation34_spill] sm:$0xff] %v5116_v44  ;;  %v4203_v59 = vld [vmem:[%s6667_s3 + $0x200] sm:$0xff] }
 0x140   : > { %v408_v43 = vpop.f32.mrf.mxu0  ;;  %2712 = vmatpush.msrb.mxu1 %v4205_v46 }
 0x141   : > { %v409_v13 = vadd.f32 %v4675_v10, %v408_v43 }
 0x142   : > { %2713 = vmatpush.msrb.mxu1 %v4204_v17  ;;  %v5134_v17 = vpop.f32.mrf.mxu2 }
 0x143   : > { %v466_v54 = vmax.f32 %v409_v13, 0.0  ;;  %2635 = vmatmul.f32.gmra.mxu0 %v4916_v9  ;;  %v6680_v13 = vmax.f32 %v5110_v0, 0.0  ;;  %6743 = vst [vmem:[#allocation37_spill] sm:$0xff] %v5134_v17  ;;  %v708_v17 = vand.u32 15, %v540_v62 }
 0x144   : > { %v5118_v43 = vpop.f32.mrf.mxu1  ;;  %2714 = vmatpush.msrb.mxu1 %v4203_v59  ;;  %v2421_v59 = vmul.f32 %v4895_v6, %v4930_v22 }
 0x145   : > { %6741 = vst [vmem:[#allocation35_spill] sm:$0xff] %v5118_v43  ;;  %v5120_v3 = vld [vmem:[#allocation2 + $0xa7] sm:$0xff]  ;;  %2198 = vmatmul.f32.gmra.mxu2 %v466_v54  ;;  %v539_v43 = vadd.s32 168, %v4646_v58  ;;  %vm1340_vm4 = vcmp.gt.s32.totalorder %v708_v17, 0  ;;  %v541_v17 = vadd.s32 184, %v4646_v58 }
 0x146   : > { %v5122_v27 = vld [vmem:[#allocation2 + $0xa1] sm:$0xff]  ;;  %504 = vst [vmem:[#allocation2 + $0xb0] sm:$0xff] %v466_v54  ;;  %v1754_v9 = vmul.f32 %v5106_v53, %v5120_v3  ;;  %v426_v12 = vpop.f32.mrf.mxu3 }
 0x147   : > { %v5132_v46 = vmul.f32 %v5116_v44, %v5122_v27  ;;  %509 = vst [vmem:[#allocation2 + $0xd8] sm:$0xff] %v6680_v13  ;;  %v5144_v7 = vadd.f32 %v4675_v10, %v426_v12  ;;  %v701_v13 = vand.u32 15, %v539_v43 }
 0x148   : > { %2082 = vmatmul.f32.gmra.mxu1 %v1754_v9  ;;  %v411_v54 = vpop.f32.mrf.mxu0 }
 0x149   : > { %6742 = vst [vmem:[#allocation36_spill] sm:$0xff] %v5132_v46  ;;  %v412_v36 = vadd.f32 %v4675_v10, %v411_v54  ;;  %v6681_v37 = vmax.f32 %v5144_v7, 0.0  ;;  %vm1435_vm5 = vcmp.lt.s32.totalorder %v701_v13, 15  ;;  %v5158_v54 = vsel %vm1340_vm4, 1.0, %v6738_v5 }
 0x14a   : > { %v5155_v62 = vpop.f32.mrf.mxu2  ;;  %6746 = vst [vmem:[#allocation40_spill] sm:$0xff] %v5158_v54 }
 0x14b   : > { %v467_v9 = vmax.f32 %v412_v36, 0.0  ;;  %2638 = vmatmul.f32.gmra.mxu0 %v2421_v59  ;;  %510 = vst [vmem:[#allocation2 + $0xe0] sm:$0xff] %v6681_v37 }
 0x14c   : > { %v5146_v46 = vpop.f32.mrf.mxu1  ;;  %6745 = vst [vmem:[#allocation39_spill] sm:$0xff] %v5155_v62 }
 0x14d   : > { %6744 = vst [vmem:[#allocation38_spill] sm:$0xff] %v5146_v46  ;;  %2201 = vmatmul.f32.gmra.mxu2 %v467_v9  ;;  %v5149_v60 = vld [vmem:[#allocation2 + $0xaf] sm:$0xff]  ;;  %v545_v46 = vadd.s32 216, %v4646_v58 }
 0x14e   : > { %505 = vst [vmem:[#allocation2 + $0xb8] sm:$0xff] %v467_v9  ;;  %v429_v12 = vpop.f32.mrf.mxu3  ;;  %v5165_v9 = vsel %vm1435_vm5, 1.0, %v6738_v5  ;;  %v542_v5 = vadd.s32 192, %v4646_v58 }
 0x14f   : > { %v5161_v43 = vadd.f32 %v4675_v10, %v429_v12  ;;  %6747 = vst [vmem:[#allocation41_spill] sm:$0xff] %v5165_v9 }
 0x150   : > { %2085 = vmatmul.f32.gmra.mxu1 %v5149_v60  ;;  %v414_v22 = vpop.f32.mrf.mxu0 }
 0x151   : > { %v415_v36 = vadd.f32 %v4675_v10, %v414_v22  ;;  %v6683_v37 = vmax.f32 %v5161_v43, 0.0 }
 0x152   : > { %v5195_v63 = vpop.f32.mrf.mxu2 }
 0x153   : > { %v468_v59 = vmax.f32 %v415_v36, 0.0  ;;  %2641 = vmatmul.f32.gmra.mxu0 %v4951_v31  ;;  %511 = vst [vmem:[#allocation2 + $0xe8] sm:$0xff] %v6683_v37  ;;  %v519_v36 = vadd.s32 8, %v4646_v58 }
 0x154   : > { %v5168_v13 = vpop.f32.mrf.mxu1  ;;  %6750 = vst [vmem:[#allocation44_spill] sm:$0xff] %v5195_v63 }
 0x155   : > { %6748 = vst [vmem:[#allocation42_spill] sm:$0xff] %v5168_v13  ;;  %v5170_v22 = vld [vmem:[#allocation2 + $0xb7] sm:$0xff]  ;;  %2204 = vmatmul.f32.gmra.mxu2 %v468_v59  ;;  %v715_v13 = vand.u32 15, %v541_v17  ;;  %v722_v17 = vand.u32 15, %v542_v5  ;;  %v561_v4 = vand.u32 15, %v519_v36 }
 0x156   : > { %v5173_v6 = vld [vmem:[#allocation2 + $0xb1] sm:$0xff]  ;;  %506 = vst [vmem:[#allocation2 + $0xc0] sm:$0xff] %v468_v59  ;;  %v1756_v12 = vmul.f32 %v5158_v54, %v5170_v22  ;;  %v2423_v59 = vmul.f32 %v4924_v14, %v4975_v30  ;;  %v432_v37 = vpop.f32.mrf.mxu3  ;;  %v543_v14 = vadd.s32 200, %v4646_v58 }
 0x157   : > { %v5181_v31 = vmul.f32 %v5165_v9, %v5173_v6  ;;  %v5192_v48 = vadd.f32 %v4675_v10, %v432_v37  ;;  %vm1437_vm6 = vcmp.lt.s32.totalorder %v715_v13, 15  ;;  %v5207_v37 = vld [vmem:[#allocation2 + $0x8] sm:$0xff]  ;;  %vm1342_vm8 = vcmp.gt.s32.totalorder %v722_v17, 0 }
 0x158   : > { %2088 = vmatmul.f32.gmra.mxu1 %v1756_v12  ;;  %v417_v62 = vpop.f32.mrf.mxu0  ;;  %v5217_v5 = vsel %vm1437_vm6, 1.0, %v5207_v37  ;;  %vm1415_vm9 = vcmp.lt.s32.totalorder %v561_v4, 15 }
 0x159   : > { %6749 = vst [vmem:[#allocation43_spill] sm:$0xff] %v5181_v31  ;;  %v5187_v2 = vadd.f32 %v4675_v10, %v417_v62  ;;  %v743_v31 = vand.u32 15, %v545_v46  ;;  %v5199_v62 = vld [vmem:[#allocation2 + $0x19] sm:$0xff]  ;;  %v6685_v32 = vmax.f32 %v5192_v48, 0.0 }
 0x15a   : > { %v5205_v30 = vld [vmem:[#allocation2 + $0xe1] sm:$0xff]  ;;  %6753 = vst [vmem:[#allocation47_spill] sm:$0xff] %v5217_v5 }
 0x15b   : > { %v6684_v12 = vmax.f32 %v5187_v2, 0.0  ;;  %2644 = vmatmul.f32.gmra.mxu0 %v2423_v59  ;;  %vm1441_vm7 = vcmp.lt.s32.totalorder %v743_v31, 15  ;;  %6752 = vst [vmem:[#allocation46_spill] sm:$0xff] %v5205_v30  ;;  %v5226_v36 = vmul.f32 %v5217_v5, %v5205_v30 }
 0x15c   : > { %v5197_v55 = vpop.f32.mrf.mxu1  ;;  %v5210_v46 = vsel %vm1441_vm7, 1.0, %v5207_v37  ;;  %512 = vst [vmem:[#allocation2 + $0xf0] sm:$0xff] %v6685_v32 }
 0x15d   : > { %6751 = vst [vmem:[#allocation45_spill] sm:$0xff] %v5197_v55  ;;  %2828 = vmatmul.f32.vlgmr.msrb.gmra.mxu2 %v5199_v62  ;;  %v5212_v13 = vld [vmem:[#allocation2 + $0xbf] sm:$0xff]  ;;  %v5221_v31 = vmul.f32 %v5210_v46, %v5205_v30  ;;  %v5233_v55 = vsel %vm1342_vm8, 1.0, %v5207_v37 }
 0x15e   : > { %507 = vst [vmem:[#allocation2 + $0xc8] sm:$0xff] %v6684_v12  ;;  %v435_v32 = vpop.f32.mrf.mxu3 }
 0x15f   : > { %6754 = vst [vmem:[#allocation48_spill] sm:$0xff] %v5221_v31  ;;  %v5236_v31 = vsel %vm1415_vm9, 1.0, %v5207_v37  ;;  %v5239_v17 = vadd.f32 %v4675_v10, %v435_v32 }
 0x160   : > { %2091 = vmatmul.f32.gmra.mxu1 %v5212_v13  ;;  %6755 = vst [vmem:[#allocation49_spill] sm:$0xff] %v5226_v36  ;;  %v420_v59 = vpop.f32.mrf.mxu0 }
 0x161   : > { %v5229_v12 = vadd.f32 %v4675_v10, %v420_v59  ;;  %6756 = vst [vmem:[#allocation50_spill] sm:$0xff] %v5233_v55  ;;  %v2506_v59 = vmul.f32 %v5236_v31, %v4762_v8  ;;  %v6689_v51 = vmax.f32 %v5239_v17, 0.0  ;;  %v5254_v10 = vpop.f32.mrf.mxu2 }
 0x162   : > { %6758 = vst [vmem:[#allocation52_spill] sm:$0xff] %v5254_v10  ;;  %v2425_v10 = vmul.f32 %v4966_v26, %v5049_v40 }
 0x163   : > { %v6687_v4 = vmax.f32 %v5229_v12, 0.0  ;;  %2647 = vmatmul.f32.gmra.mxu0 %v5015_v16  ;;  %v729_v16 = vand.u32 15, %v543_v14  ;;  %513 = vst [vmem:[#allocation2 + $0xf8] sm:$0xff] %v6689_v51  ;;  %v5273_v14 = vld [vmem:[%s6666_s2] ss:$0 sm:$0xff]  ;;  %v5280_v51 = vld [vmem:[#allocation2 + $0x29] sm:$0xff] }
 0x164   : > { %v5245_v36 = vpop.f32.mrf.mxu1 }
 0x165   : > { %6757 = vst [vmem:[#allocation51_spill] sm:$0xff] %v5245_v36  ;;  %v5247_v63 = vld [vmem:[#allocation2 + $0xc7] sm:$0xff]  ;;  %2831 = vmatmul.f32.gmra.mxu2 %v2506_v59  ;;  %v544_v36 = vadd.s32 208, %v4646_v58  ;;  %vm1439_vm10 = vcmp.lt.s32.totalorder %v729_v16, 15 }
 0x166   : > { %v5250_v33 = vld [vmem:[#allocation2 + $0xc1] sm:$0xff]  ;;  %508 = vst [vmem:[#allocation2 + $0xd0] sm:$0xff] %v6687_v4  ;;  %v1758_v32 = vmul.f32 %v5233_v55, %v5247_v63  ;;  %v438_v30 = vpop.f32.mrf.mxu3  ;;  %v5284_v40 = vsel %vm1439_vm10, 1.0, %v5207_v37 }
 0x167   : > { %v5262_v8 = vmul.f32 %v5217_v5, %v5250_v33  ;;  %v5276_v59 = vadd.f32 %v5273_v14, %v438_v30 }
 0x168   : > { %2094 = vmatmul.f32.vlgmr.msrb.gmra.mxu3 %v1758_v32  ;;  %2715 = vmatmul.f32.vlgmr.msrb.gmra.mxu1 %v4680_v15  ;;  %v5266_v4 = vpop.f32.mrf.mxu0  ;;  %v736_v32 = vand.u32 15, %v544_v36 }
 0x169   : > { %6759 = vst [vmem:[#allocation53_spill] sm:$0xff] %v5262_v8  ;;  %v6691_v8 = vmax.f32 %v5276_v59, 0.0  ;;  %v5295_v36 = vpop.f32.mrf.mxu2 }
 0x16a   : > { %6760 = vst [vmem:[#allocation54_spill] sm:$0xff] %v5266_v4  ;;  %v5293_v30 = vld [vmem:[#allocation2 + $0xf1] sm:$0xff]  ;;  %vm1344_vm11 = vcmp.gt.s32.totalorder %v736_v32, 0 }
 0x16b   : > { %2650 = vmatmul.f32.gmra.mxu0 %v2425_v10  ;;  %514 = vst [vmem:[#allocation2 + $0x100] sm:$0xff] %v6691_v8  ;;  %v5307_v4 = vmul.f32 %v5284_v40, %v5293_v30  ;;  %v5310_v23 = vsel %vm1344_vm11, 1.0, %v5207_v37 }
 0x16c   : > { %v5278_v15 = vpop.f32.mrf.mxu1  ;;  %6762 = vst [vmem:[#allocation56_spill] sm:$0xff] %v5293_v30 }
 0x16d   : > { %6761 = vst [vmem:[#allocation55_spill] sm:$0xff] %v5278_v15  ;;  %2834 = vmatmul.f32.gmra.mxu2 %v5280_v51  ;;  %v5287_v16 = vld [vmem:[#allocation2 + $0xd1] sm:$0xff] }
 0x16e   : > { %v5289_v26 = vld [vmem:[#allocation2 + $0xcf] sm:$0xff]  ;;  %6763 = vst [vmem:[#allocation57_spill] sm:$0xff] %v5295_v36  ;;  %v5301_v10 = vmul.f32 %v5284_v40, %v5287_v16  ;;  %v441_v8 = vpop.f32.mrf.mxu3  ;;  %v5312_v36 = vld [vmem:[#allocation2 + $0xd7] sm:$0xff] }
 0x16f   : > { %6766 = vst [vmem:[#allocation60_spill] sm:$0xff] %v5307_v4  ;;  %v442_v5 = vadd.f32 %v5273_v14, %v441_v8  ;;  %v546_v4 = vadd.s32 224, %v4646_v58 }
 0x170   : > { %2097 = vmatmul.f32.gmra.mxu3 %v5289_v26  ;;  %2718 = vmatmul.f32.gmra.mxu1 %v4701_v28  ;;  %6764 = vst [vmem:[#allocation58_spill] sm:$0xff] %v5301_v10  ;;  %v5303_v15 = vpop.f32.mrf.mxu0  ;;  %v2508_v28 = vmul.f32 %v4757_v24, %v4806_v39  ;;  %v2427_v39 = vmul.f32 %v5032_v57, %v5120_v3 }
 0x171   : > { %6765 = vst [vmem:[#allocation59_spill] sm:$0xff] %v5303_v15  ;;  %v477_v10 = vmax.f32 %v442_v5, 0.0  ;;  %v1760_v15 = vmul.f32 %v5310_v23, %v5312_v36  ;;  %v5326_v8 = vpop.f32.mrf.mxu2 }
 0x172   : > { %6767 = vst [vmem:[#allocation61_spill] sm:$0xff] %v5310_v23 }
 0x173   : > { %2653 = vmatmul.f32.gmra.mxu0 %v5095_v47  ;;  %515 = vst [vmem:[#allocation2 + $0x108] sm:$0xff] %v477_v10  ;;  %v750_v47 = vand.u32 15, %v546_v4 }
 0x174   : > { %v5318_v32 = vpop.f32.mrf.mxu1  ;;  %6770 = vst [vmem:[#allocation64_spill] sm:$0xff] %v5326_v8 }
 0x175   : > { %6768 = vst [vmem:[#allocation62_spill] sm:$0xff] %v5318_v32  ;;  %2837 = vmatmul.f32.gmra.mxu2 %v2508_v28  ;;  %v5332_v32 = vld [vmem:[#allocation2 + $0x39] sm:$0xff]  ;;  %vm1346_vm12 = vcmp.gt.s32.totalorder %v750_v47, 0  ;;  %v2510_v47 = vmul.f32 %v4801_v38, %v4838_v1  ;;  %v2004_v1 = vld [vmem:[%s6667_s3 + $0x170] sm:$0xff] }
 0x176   : > { %v5350_v28 = vsel %vm1346_vm12, 1.0, %v5207_v37  ;;  %v5379_v38 = vld [vmem:[#allocation2 + $0x49] sm:$0xff] }
 0x177   : > { %6774 = vst [vmem:[#allocation68_spill] sm:$0xff] %v5350_v28 }
 0x178   : > { %2100 = vmatmul.f32.gmra.mxu3 %v1760_v15  ;;  %2721 = vmatmul.f32.gmra.mxu1 %v4725_v52  ;;  %v5324_v30 = vpop.f32.mrf.mxu0  ;;  %v5335_v15 = vld [vmem:[#allocation2 + $0xdf] sm:$0xff]  ;;  %v5337_v52 = vld [vmem:[#allocation2 + $0x30] sm:$0xff] }
 0x179   : > { %6769 = vst [vmem:[#allocation63_spill] sm:$0xff] %v5324_v30  ;;  %v5354_v57 = vpop.f32.mrf.mxu2  ;;  %v5386_v30 = vld [vmem:[#allocation2 + $0x40] sm:$0xff] }
 0x17a   : > { %v5341_v10 = vld [vmem:[#allocation2 + $0x101] sm:$0xff]  ;;  %6775 = vst [vmem:[#allocation69_spill] sm:$0xff] %v5354_v57 }
 0x17b   : > { %2656 = vmatmul.f32.gmra.mxu0 %v2427_v39  ;;  %v5347_v4 = vmul.f32 %v5210_v46, %v5341_v10  ;;  %v5352_v39 = vld [vmem:[#allocation2 + $0xe7] sm:$0xff] }
 0x17c   : > { %v5330_v5 = vpop.f32.mrf.mxu1  ;;  %v1762_v8 = vmul.f32 %v5350_v28, %v5352_v39 }
 0x17d   : > { %6771 = vst [vmem:[#allocation65_spill] sm:$0xff] %v5330_v5  ;;  %2840 = vmatmul.f32.gmra.mxu2 %v5332_v32 }
 0x17e   : > { %6773 = vst [vmem:[#allocation67_spill] sm:$0xff] %v5347_v4  ;;  %v548_v4 = vadd.s32 240, %v4646_v58 }
 0x180   : > { %2103 = vmatmul.f32.gmra.mxu3 %v5335_v15  ;;  %2724 = vmatmul.f32.gmra.mxu1 %v5337_v52  ;;  %v5343_v3 = vpop.f32.mrf.mxu0 }
 0x181   : > { %6772 = vst [vmem:[#allocation66_spill] sm:$0xff] %v5343_v3  ;;  %v5363_v3 = vld [vmem:[#allocation2 + $0x38] sm:$0xff]  ;;  %v5381_v24 = vpop.f32.mrf.mxu2 }
 0x182   : > { %6779 = vst [vmem:[#allocation73_spill] sm:$0xff] %v5381_v24  ;;  %v5410_v24 = vld [vmem:[#allocation2 + $0x48] sm:$0xff] }
 0x183   : > { %2659 = vmatmul.f32.gmra.mxu0 %v5149_v60  ;;  %v2005_v60 = vld [vmem:[%s6667_s3 + $0x178] sm:$0xff] }
 0x184   : > { %v5359_v5 = vpop.f32.mrf.mxu1  ;;  %2232 = vmatpush.msrb.mxu3 %v2005_v60  ;;  %v5384_v60 = vld [vmem:[#allocation2 + $0xef] sm:$0xff] }
 0x185   : > { %6776 = vst [vmem:[#allocation70_spill] sm:$0xff] %v5359_v5  ;;  %2843 = vmatmul.f32.gmra.mxu2 %v2510_v47  ;;  %v2429_v47 = vmul.f32 %v5106_v53, %v5170_v22  ;;  %v2003_v22 = vld [vmem:[%s6667_s3 + $0x168] sm:$0xff] }
 0x186   : > { %2233 = vmatpush.msrb.mxu3 %v2004_v1 }
 0x188   : > { %2106 = vmatmul.f32.gmra.mxu3 %v1762_v8  ;;  %2727 = vmatmul.f32.gmra.mxu1 %v5363_v3  ;;  %v5373_v5 = vpop.f32.mrf.mxu0  ;;  %v764_v8 = vand.u32 15, %v548_v4  ;;  %v2002_v4 = vld [vmem:[%s6667_s3 + $0x160] sm:$0xff] }
 0x189   : > { %6777 = vst [vmem:[#allocation71_spill] sm:$0xff] %v5373_v5  ;;  %2234 = vmatpush.msrb.mxu3 %v2003_v22  ;;  %v5412_v5 = vpop.f32.mrf.mxu2 }
 0x18a   : > { %vm1348_vm13 = vcmp.gt.s32.totalorder %v764_v8, 0  ;;  %v2512_v8 = vmul.f32 %v4833_v56, %v4871_v21  ;;  %6782 = vst [vmem:[#allocation76_spill] sm:$0xff] %v5412_v5  ;;  %v2000_v21 = vld [vmem:[%s6667_s3 + $0x150] sm:$0xff]  ;;  %v5430_v5 = vld [vmem:[#allocation2 + $0xff] sm:$0xff] }
 0x18b   : > { %2662 = vmatmul.f32.gmra.mxu0 %v2429_v47  ;;  %v5397_v1 = vsel %vm1348_vm13, 1.0, %v5207_v37  ;;  %v5399_v47 = vld [vmem:[#allocation2 + $0xf7] sm:$0xff]  ;;  %2235 = vmatpush.msrb.mxu3 %v2002_v4  ;;  %v2431_v4 = vmul.f32 %v5158_v54, %v5247_v63  ;;  %v1999_v63 = vld [vmem:[%s6667_s3 + $0x148] sm:$0xff]  ;;  %v2514_v54 = vmul.f32 %v4867_v19, %v4903_v49  ;;  %v2433_v49 = vmul.f32 %v5233_v55, %v5312_v36 }
 0x18c   : > { %v5377_v57 = vpop.f32.mrf.mxu1  ;;  %6780 = vst [vmem:[#allocation74_spill] sm:$0xff] %v5397_v1  ;;  %v1764_v22 = vmul.f32 %v5397_v1, %v5399_v47  ;;  %v6790_v36 = vmax.f32 %v5229_v12, 0.0  ;;  %v2516_v12 = vmul.f32 %v4899_v50, %v4932_v61  ;;  %v2522_v55 = vmul.f32 %v5045_v20, %v5122_v27  ;;  %v3085_v27 = vld [vmem:[#allocation2 + $0x28] sm:$0xff] }
 0x18d   : > { %6778 = vst [vmem:[#allocation72_spill] sm:$0xff] %v5377_v57  ;;  %2846 = vmatmul.f32.gmra.mxu2 %v5379_v38 }
 0x190   : > { %2109 = vmatmul.f32.gmra.mxu3 %v5384_v60  ;;  %2730 = vmatmul.f32.gmra.mxu1 %v5386_v30  ;;  %v5401_v53 = vpop.f32.mrf.mxu0 }
 0x193   : > { %2665 = vmatmul.f32.gmra.mxu0 %v5212_v13  ;;  %v2001_v13 = vld [vmem:[%s6667_s3 + $0x158] sm:$0xff] }
 0x194   : > { %v5406_v57 = vpop.f32.mrf.mxu1  ;;  %2236 = vmatpush.msrb.mxu3 %v2001_v13  ;;  %v5432_v13 = vld [vmem:[#allocation2 + $0x50] sm:$0xff] }
 0x195   : > { %6781 = vst [vmem:[#allocation75_spill] sm:$0xff] %v5406_v57  ;;  %2849 = vmatmul.f32.gmra.mxu2 %v2512_v8  ;;  %v5425_v57 = vld [vmem:[#allocation2 + $0x59] sm:$0xff] }
 0x196   : > { %2237 = vmatpush.msrb.mxu3 %v2000_v21  ;;  %v1998_v21 = vld [vmem:[%s6667_s3 + $0x140] sm:$0xff] }
 0x198   : > { %2112 = vmatmul.f32.gmra.mxu3 %v1764_v22  ;;  %2733 = vmatmul.f32.gmra.mxu1 %v5410_v24  ;;  %v5427_v22 = vpop.f32.mrf.mxu0 }
 0x199   : > { %6784 = vst [vmem:[#allocation78_spill] sm:$0xff] %v5427_v22  ;;  %2238 = vmatpush.msrb.mxu3 %v1999_v63  ;;  %v6787_v22 = vmax.f32 %v5187_v2, 0.0  ;;  %v1997_v63 = vld [vmem:[%s6667_s3 + $0x138] sm:$0xff] }
 0x19b   : > { %2668 = vmatmul.f32.gmra.mxu0 %v2431_v4  ;;  %v5442_v4 = vpop.f32.mrf.mxu2  ;;  %2239 = vmatpush.msrb.mxu3 %v1998_v21  ;;  %v4265_v21 = vld [vmem:[%s6667_s3 + $0x3f0] sm:$0xff] }
 0x19c   : > { %v5423_v8 = vpop.f32.mrf.mxu1  ;;  %6785 = vst [vmem:[#allocation79_spill] sm:$0xff] %v5442_v4 }
 0x19d   : > { %6783 = vst [vmem:[#allocation77_spill] sm:$0xff] %v5423_v8  ;;  %2852 = vmatmul.f32.gmra.mxu2 %v5425_v57  ;;  %2240 = vmatpush.msrb.mxu3 %v1997_v63  ;;  %v1995_v63 = vld [vmem:[%s6667_s3 + $0x128] sm:$0xff] }
 0x1a0   : > { %2115 = vmatmul.f32.gmra.mxu3 %v5430_v5  ;;  %2736 = vmatmul.f32.gmra.mxu1 %v5432_v13  ;;  %v5449_v56 = vpop.f32.mrf.mxu0 }
 0x1a3   : > { %2671 = vmatmul.f32.gmra.mxu0 %v5289_v26  ;;  %v1996_v26 = vld [vmem:[%s6667_s3 + $0x130] sm:$0xff] }
 0x1a4   : > { %v5447_v8 = vpop.f32.mrf.mxu1  ;;  %2241 = vmatpush.msrb.mxu3 %v1996_v26  ;;  %v4264_v26 = vld [vmem:[%s6667_s3 + $0x3e8] sm:$0xff] }
 0x1a5   : > { %6786 = vst [vmem:[#allocation80_spill] sm:$0xff] %v5447_v8  ;;  %2855 = vmatmul.f32.gmra.mxu2 %v2514_v54  ;;  %v5462_v54 = vpop.f32.mrf.mxu2 }
 0x1a6   : > { %6788 = vst [vmem:[#allocation81_spill] sm:$0xff] %v5462_v54  ;;  %2242 = vmatpush.msrb.mxu3 %v1995_v63  ;;  %v6830_v54 = vld [vmem:[#allocation14_spill] sm:$0xff] }
 0x1a8   : > { %2207 = vmatmul.f32.vlgmr.msra.gmra.mxu3 %v6787_v22  ;;  %2739 = vmatmul.f32.gmra.mxu1 %v4851_v29  ;;  %v5466_v22 = vld [vmem:[#allocation2 + $0x69] sm:$0xff]  ;;  %v4266_v29 = vld [vmem:[%s6667_s3 + $0x3f8] sm:$0xff] }
 0x1a9   : > { %3439 = vmatpush.msra.mxu0 %v4266_v29  ;;  %v5487_v29 = vpop.f32.mrf.mxu0 }
 0x1aa   : > { %6791 = vst [vmem:[#allocation83_spill] sm:$0xff] %v5487_v29 }
 0x1ab   : > { %2674 = vmatmul.f32.gmra.mxu0 %v2433_v49  ;;  %v1994_v49 = vld [vmem:[%s6667_s3 + $0x120] sm:$0xff] }
 0x1ac   : > { %v5464_v2 = vpop.f32.mrf.mxu1  ;;  %3440 = vmatpush.msra.mxu0 %v4265_v21  ;;  %2243 = vmatpush.msrb.mxu3 %v1994_v49  ;;  %v444_v49 = vpop.f32.mrf.mxu3 }
 0x1ad   : > { %6789 = vst [vmem:[#allocation82_spill] sm:$0xff] %v5464_v2  ;;  %2858 = vmatmul.f32.gmra.mxu2 %v5466_v22  ;;  %v5500_v63 = vpop.f32.mrf.mxu2  ;;  %v5509_v61 = vadd.f32 %v5273_v14, %v444_v49 }
 0x1ae   : > { %3441 = vmatpush.msra.mxu0 %v4264_v26  ;;  %6793 = vst [vmem:[#allocation85_spill] sm:$0xff] %v5500_v63  ;;  %v4261_v26 = vld [vmem:[%s6667_s3 + $0x3d0] sm:$0xff] }
 0x1af   : > { %v6700_v14 = vmax.f32 %v5509_v61, 0.0 }
 0x1b0   : > { %2210 = vmatmul.f32.gmra.mxu3 %v6790_v36  ;;  %2742 = vmatmul.f32.gmra.mxu1 %v4863_v18  ;;  %v4263_v18 = vld [vmem:[%s6667_s3 + $0x3e0] sm:$0xff]  ;;  %v4262_v36 = vld [vmem:[%s6667_s3 + $0x3d8] sm:$0xff] }
 0x1b1   : > { %3442 = vmatpush.msra.mxu0 %v4263_v18  ;;  %v1993_v18 = vld [vmem:[%s6667_s3 + $0x118] sm:$0xff]  ;;  %516 = vst [vmem:[#allocation2 + $0x110] sm:$0xff] %v6700_v14  ;;  %v4256_v14 = vld [vmem:[%s6667_s3 + $0x3a8] sm:$0xff] }
 0x1b2   : > { %2244 = vmatpush.msrb.mxu3 %v1993_v18  ;;  %v4257_v18 = vld [vmem:[%s6667_s3 + $0x3b0] sm:$0xff] }
 0x1b3   : > { %2677 = vmatmul.f32.gmra.mxu0 %v5335_v15  ;;  %v6794_v15 = vmax.f32 %v5110_v0, 0.0  ;;  %v1992_v0 = vld [vmem:[%s6667_s3 + $0x110] sm:$0xff] }
 0x1b4   : > { %v5495_v21 = vpop.f32.mrf.mxu1  ;;  %3443 = vmatpush.msra.mxu0 %v4262_v36  ;;  %v4259_v36 = vld [vmem:[%s6667_s3 + $0x3c0] sm:$0xff]  ;;  %2245 = vmatpush.msrb.mxu3 %v1992_v0 }
 0x1b5   : > { %6792 = vst [vmem:[#allocation84_spill] sm:$0xff] %v5495_v21  ;;  %2861 = vmatmul.f32.gmra.mxu2 %v2516_v12  ;;  %v4260_v12 = vld [vmem:[%s6667_s3 + $0x3c8] sm:$0xff]  ;;  %v5543_v0 = vpop.f32.mrf.mxu2 }
 0x1b6   : > { %3444 = vmatpush.msra.mxu0 %v4261_v26  ;;  %v5526_v26 = vpop.f32.mrf.mxu0  ;;  %6797 = vst [vmem:[#allocation88_spill] sm:$0xff] %v5543_v0  ;;  %v6826_v0 = vld [vmem:[#allocation46_spill] sm:$0xff] }
 0x1b7   : > { %6795 = vst [vmem:[#allocation86_spill] sm:$0xff] %v5526_v26  ;;  %v6805_v26 = vmax.f32 %v5192_v48, 0.0  ;;  %v2407_v48 = vld [vmem:[#allocation2 + $0x107] sm:$0xff] }
 0x1b8   : > { %2213 = vmatmul.f32.gmra.mxu3 %v6794_v15  ;;  %2745 = vmatmul.f32.gmra.mxu1 %v4886_v41  ;;  %v2435_v41 = vmul.f32 %v5310_v23, %v5352_v39  ;;  %v5532_v15 = vld [vmem:[#allocation2 + $0x79] sm:$0xff] }
 0x1b9   : > { %3445 = vmatpush.msra.mxu0 %v4260_v12  ;;  %v4258_v39 = vld [vmem:[%s6667_s3 + $0x3b8] sm:$0xff]  ;;  %v5541_v12 = vld [vmem:[#allocation2 + $0x70] sm:$0xff] }
 0x1bb   : > { %2680 = vmatmul.f32.gmra.mxu0 %v2435_v41  ;;  %v6798_v41 = vmax.f32 %v5144_v7, 0.0  ;;  %v4255_v7 = vld [vmem:[%s6667_s3 + $0x3a0] sm:$0xff] }
 0x1bc   : > { %v5530_v49 = vpop.f32.mrf.mxu1  ;;  %3446 = vmatpush.msra.mxu0 %v4259_v36  ;;  %v1991_v36 = vld [vmem:[%s6667_s3 + $0x108] sm:$0xff] }
 0x1bd   : > { %6796 = vst [vmem:[#allocation87_spill] sm:$0xff] %v5530_v49  ;;  %2864 = vmatmul.f32.gmra.mxu2 %v5532_v15  ;;  %2246 = vmatpush.msrb.mxu3 %v1991_v36  ;;  %v4254_v36 = vld [vmem:[%s6667_s3 + $0x398] sm:$0xff] }
 0x1be   : > { %3447 = vmatpush.msra.mxu0 %v4258_v39  ;;  %v1990_v39 = vld [vmem:[%s6667_s3 + $0x100] sm:$0xff]  ;;  %v5568_v23 = vpop.f32.mrf.mxu0 }
 0x1bf   : > { %2247 = vmatpush.msrb.mxu3 %v1990_v39  ;;  %6800 = vst [vmem:[#allocation90_spill] sm:$0xff] %v5568_v23  ;;  %v5573_v39 = vld [vmem:[#allocation2 + $0x78] sm:$0xff]  ;;  %v5593_v23 = vld [vmem:[#allocation2 + $0x89] sm:$0xff] }
 0x1c0   : > { %2216 = vmatmul.f32.gmra.mxu3 %v6798_v41  ;;  %2748 = vmatmul.f32.gmra.mxu1 %v5541_v12 }
 0x1c1   : > { %3448 = vmatpush.msra.mxu0 %v4257_v18  ;;  %v2518_v18 = vmul.f32 %v4928_v34, %v4977_v25  ;;  %v4250_v25 = vld [vmem:[%s6667_s3 + $0x378] sm:$0xff] }
 0x1c2   : > { %3326 = vmatpush.msra.mxu3 %v4250_v25 }
 0x1c3   : > { %3449 = vmatpush.msra.mxu0 %v4256_v14  ;;  %v4253_v14 = vld [vmem:[%s6667_s3 + $0x390] sm:$0xff] }
 0x1c4   : > { %2683 = vmatmul.f32.gmra.mxu0 %v5384_v60  ;;  %v6801_v60 = vmax.f32 %v5161_v43, 0.0  ;;  %v4251_v43 = vld [vmem:[%s6667_s3 + $0x380] sm:$0xff] }
 0x1c5   : > { %v5563_v41 = vpop.f32.mrf.mxu1  ;;  %3450 = vmatpush.msra.mxu0 %v4255_v7  ;;  %2867 = vmatmul.f32.gmra.mxu2 %v2518_v18  ;;  %v4252_v7 = vld [vmem:[%s6667_s3 + $0x388] sm:$0xff]  ;;  %v5584_v18 = vpop.f32.mrf.mxu2 }
 0x1c6   : > { %6799 = vst [vmem:[#allocation89_spill] sm:$0xff] %v5563_v41  ;;  %v5598_v25 = vpop.f32.mrf.mxu0 }
 0x1c7   : > { %3451 = vmatpush.msra.mxu0 %v4254_v36  ;;  %6802 = vst [vmem:[#allocation91_spill] sm:$0xff] %v5584_v18  ;;  %v2437_v36 = vmul.f32 %v5350_v28, %v5399_v47  ;;  %v4282_v47 = vld [vmem:[%s6667_s3 + $0x478] sm:$0xff]  ;;  %v5613_v28 = vld [vmem:[#allocation2 + $0x88] sm:$0xff] }
 0x1c8   : > { %2219 = vmatmul.f32.gmra.mxu3 %v6801_v60  ;;  %2751 = vmatmul.f32.gmra.mxu1 %v5573_v39  ;;  %6804 = vst [vmem:[#allocation93_spill] sm:$0xff] %v5598_v25 }
 0x1c9   : > { %3452 = vmatpush.msra.mxu0 %v4253_v14  ;;  %v5596_v14 = vld [vmem:[#allocation2 + $0x80] sm:$0xff]  ;;  %3552 = vmatpush.msra.mxu1 %v4282_v47  ;;  %v4249_v47 = vld [vmem:[%s6667_s3 + $0x370] sm:$0xff] }
 0x1ca   : > { %3327 = vmatpush.msra.mxu3 %v4249_v47  ;;  %v2408_v47 = vld [vmem:[#allocation2 + $0x10f] sm:$0xff] }
 0x1cb   : > { %3453 = vmatpush.msra.mxu0 %v4252_v7 }
 0x1cc   : > { %2686 = vmatmul.f32.gmra.mxu0 %v2437_v36  ;;  %v2520_v36 = vmul.f32 %v4973_v35, %v5051_v45  ;;  %v2439_v45 = vmul.f32 %v5397_v1, %v2407_v48  ;;  %v4281_v48 = vld [vmem:[%s6667_s3 + $0x470] sm:$0xff]  ;;  %v3093_v35 = vld [vmem:[#allocation2 + $0x68] sm:$0xff] }
 0x1cd   : > { %v5591_v60 = vpop.f32.mrf.mxu1  ;;  %3454 = vmatpush.msra.mxu0 %v4251_v43  ;;  %2870 = vmatmul.f32.gmra.mxu2 %v5593_v23  ;;  %v5606_v7 = vpop.f32.mrf.mxu2 }
 0x1ce   : > { %6803 = vst [vmem:[#allocation92_spill] sm:$0xff] %v5591_v60  ;;  %3553 = vmatpush.msra.mxu1 %v4281_v48  ;;  %v4248_v48 = vld [vmem:[%s6667_s3 + $0x368] sm:$0xff] }
 0x1cf   : > { %6806 = vst [vmem:[#allocation94_spill] sm:$0xff] %v5606_v7  ;;  %3328 = vmatpush.msra.mxu3 %v4248_v48  ;;  %v5748_v7 = vld [vmem:[#allocation2 + $0xc8] sm:$0xff] }
 0x1d0   : > { %2222 = vmatmul.f32.gmra.mxu3 %v6805_v26  ;;  %2754 = vmatmul.f32.gmra.mxu1 %v5596_v14  ;;  %v6808_v26 = vmax.f32 %v5239_v17, 0.0  ;;  %v5631_v17 = vld [vmem:[#allocation2 + $0x90] sm:$0xff] }
 0x1d4   : > { %2689 = vmatmul.f32.gmra.mxu0 %v5430_v5  ;;  %v5621_v5 = vpop.f32.mrf.mxu0 }
 0x1d5   : > { %v5611_v43 = vpop.f32.mrf.mxu1  ;;  %2873 = vmatmul.f32.gmra.mxu2 %v2520_v36  ;;  %6809 = vst [vmem:[#allocation96_spill] sm:$0xff] %v5621_v5  ;;  %v5626_v36 = vld [vmem:[#allocation2 + $0x99] sm:$0xff]  ;;  %v5628_v29 = vpop.f32.mrf.mxu2 }
 0x1d6   : > { %6807 = vst [vmem:[#allocation95_spill] sm:$0xff] %v5611_v43 }
 0x1d7   : > { %6811 = vst [vmem:[#allocation98_spill] sm:$0xff] %v5628_v29 }
 0x1d8   : > { %2225 = vmatmul.f32.gmra.mxu3 %v6808_v26  ;;  %2757 = vmatmul.f32.gmra.mxu1 %v5613_v28  ;;  %v6812_v26 = vmax.f32 %v5276_v59, 0.0  ;;  %v5645_v59 = vld [vmem:[#allocation2 + $0x98] sm:$0xff] }
 0x1dc   : > { %2692 = vmatmul.f32.gmra.mxu0 %v2439_v45  ;;  %v1798_v45 = vld [vmem:[#allocation2 + $0x9] sm:$0xff]  ;;  %v5639_v1 = vpop.f32.mrf.mxu0 }
 0x1dd   : > { %v5624_v25 = vpop.f32.mrf.mxu1  ;;  %2876 = vmatmul.f32.gmra.mxu2 %v5626_v36  ;;  %6813 = vst [vmem:[#allocation99_spill] sm:$0xff] %v5639_v1  ;;  %v1864_v5 = vmul.f32 0.0, %v1798_v45  ;;  %v5647_v43 = vpop.f32.mrf.mxu2  ;;  %v5658_v1 = vld [vmem:[#allocation2 + $0xa9] sm:$0xff] }
 0x1de   : > { %6810 = vst [vmem:[#allocation97_spill] sm:$0xff] %v5624_v25 }
 0x1df   : > { %6814 = vst [vmem:[#allocation100_spill] sm:$0xff] %v5647_v43  ;;  %v5663_v43 = vld [vmem:[#allocation2 + $0xa0] sm:$0xff] }
 0x1e0   : > { %2228 = vmatmul.f32.gmra.mxu3 %v6812_v26  ;;  %2760 = vmatmul.f32.gmra.mxu1 %v5631_v17  ;;  %v1799_v26 = vld [vmem:[#allocation2 + $0x11] sm:$0xff] }
 0x1e4   : > { %2695 = vmatmul.f32.gmra.mxu0 %v2408_v47  ;;  %v1831_v47 = vmul.f32 %v5236_v31, %v1799_v26  ;;  %v5660_v60 = vpop.f32.mrf.mxu0  ;;  %v4280_v26 = vld [vmem:[%s6667_s3 + $0x468] sm:$0xff] }
 0x1e5   : > { %v5643_v25 = vpop.f32.mrf.mxu1  ;;  %2879 = vmatmul.f32.gmra.mxu2 %v2522_v55  ;;  %6815 = vst [vmem:[#allocation101_spill] sm:$0xff] %v5660_v60  ;;  %3554 = vmatpush.msra.mxu1 %v4280_v26  ;;  %v5669_v48 = vpop.f32.mrf.mxu2  ;;  %v4247_v26 = vld [vmem:[%s6667_s3 + $0x360] sm:$0xff] }
 0x1e6   : > { %6816 = vst [vmem:[#allocation102_spill] sm:$0xff] %v5669_v48  ;;  %3329 = vmatpush.msra.mxu3 %v4247_v26  ;;  %v4279_v26 = vld [vmem:[%s6667_s3 + $0x460] sm:$0xff] }
 0x1e7   : > { %3555 = vmatpush.msra.mxu1 %v4279_v26  ;;  %v4246_v26 = vld [vmem:[%s6667_s3 + $0x358] sm:$0xff] }
 0x1e8   : > { %2248 = vmatmul.f32.vlgmr.msrb.gmra.mxu3 %v1864_v5  ;;  %2763 = vmatmul.f32.gmra.mxu1 %v5645_v59  ;;  %v1867_v5 = vmul.f32 0.0, %v1831_v47  ;;  %v2524_v47 = vmul.f32 %v5116_v44, %v5173_v6 }
 0x1e9   : > { %3330 = vmatpush.msra.mxu3 %v4246_v26  ;;  %v4278_v26 = vld [vmem:[%s6667_s3 + $0x458] sm:$0xff] }
 0x1ea   : > { %3556 = vmatpush.msra.mxu1 %v4278_v26 }
 0x1eb   : > { %v5654_v45 = vpop.f32.mrf.mxu3 }
 0x1ec   : > { %3455 = vmatmul.f32.vlgmr.msra.gmra.mxu0 %v3085_v27  ;;  %v5680_v41 = vpop.f32.mrf.mxu0 }
 0x1ed   : > { %v5656_v55 = vpop.f32.mrf.mxu1  ;;  %2882 = vmatmul.f32.gmra.mxu2 %v5658_v1  ;;  %6817 = vst [vmem:[#allocation103_spill] sm:$0xff] %v5680_v41  ;;  %v5689_v48 = vpop.f32.mrf.mxu2 }
 0x1ee   : > { %6818 = vst [vmem:[#allocation104_spill] sm:$0xff] %v5689_v48  ;;  %v2526_v48 = vmul.f32 %v5165_v9, %v5250_v33  ;;  %v5727_v33 = vld [vmem:[#allocation2 + $0xc9] sm:$0xff] }
 0x1f0   : > { %2251 = vmatmul.f32.gmra.mxu3 %v1867_v5  ;;  %2766 = vmatmul.f32.gmra.mxu1 %v5663_v43  ;;  %v5678_v5 = vld [vmem:[#allocation2 + $0xa8] sm:$0xff] }
 0x1f3   : > { %v5671_v27 = vpop.f32.mrf.mxu3 }
 0x1f4   : > { %3458 = vmatmul.f32.gmra.mxu0 %v5337_v52  ;;  %v5704_v41 = vpop.f32.mrf.mxu0 }
 0x1f5   : > { %v5676_v60 = vpop.f32.mrf.mxu1  ;;  %2885 = vmatmul.f32.gmra.mxu2 %v2524_v47  ;;  %v5694_v47 = vld [vmem:[#allocation2 + $0xb9] sm:$0xff]  ;;  %6819 = vst [vmem:[#allocation105_spill] sm:$0xff] %v5704_v41  ;;  %v5711_v29 = vpop.f32.mrf.mxu2 }
 0x1f6   : > { %6820 = vst [vmem:[#allocation106_spill] sm:$0xff] %v5711_v29 }
 0x1f8   : > { %2254 = vmatmul.f32.gmra.mxu3 %v5199_v62  ;;  %2769 = vmatmul.f32.gmra.mxu1 %v5678_v5  ;;  %v5697_v62 = vld [vmem:[#allocation2 + $0xb0] sm:$0xff] }
 0x1fb   : > { %v5687_v52 = vpop.f32.mrf.mxu3 }
 0x1fc   : > { %3461 = vmatmul.f32.gmra.mxu0 %v5363_v3  ;;  %v5724_v41 = vpop.f32.mrf.mxu0 }
 0x1fd   : > { %v5692_v6 = vpop.f32.mrf.mxu1  ;;  %2888 = vmatmul.f32.gmra.mxu2 %v5694_v47  ;;  %6821 = vst [vmem:[#allocation107_spill] sm:$0xff] %v5724_v41  ;;  %v6822_v41 = vld [vmem:[#allocation47_spill] sm:$0xff] }
 0x1fe   : > { %v2528_v9 = vmul.f32 %v6822_v41, %v5287_v16  ;;  %v3091_v16 = vld [vmem:[#allocation2 + $0x58] sm:$0xff] }
 0x200   : > { %2257 = vmatmul.f32.gmra.mxu3 %v4773_v11  ;;  %2772 = vmatmul.f32.gmra.mxu1 %v5697_v62  ;;  %v5715_v11 = vld [vmem:[#allocation2 + $0xb8] sm:$0xff] }
 0x203   : > { %v5706_v3 = vpop.f32.mrf.mxu3 }
 0x204   : > { %3464 = vmatmul.f32.gmra.mxu0 %v5386_v30  ;;  %v5746_v44 = vpop.f32.mrf.mxu0 }
 0x205   : > { %v5713_v49 = vpop.f32.mrf.mxu1  ;;  %2891 = vmatmul.f32.gmra.mxu2 %v2526_v48  ;;  %v5730_v48 = vld [vmem:[#allocation2 + $0xc0] sm:$0xff]  ;;  %6823 = vst [vmem:[#allocation47_spill] sm:$0xff] %v5746_v44  ;;  %v6825_v44 = vld [vmem:[#allocation12_spill] sm:$0xff] }
 0x208   : > { %2260 = vmatmul.f32.gmra.mxu3 %v5280_v51  ;;  %2775 = vmatmul.f32.gmra.mxu1 %v5715_v11  ;;  %v5732_v51 = vpop.f32.mrf.mxu2 }
 0x20b   : > { %v5722_v30 = vpop.f32.mrf.mxu3 }
 0x20c   : > { %3467 = vmatmul.f32.gmra.mxu0 %v5410_v24  ;;  %v5766_v41 = vpop.f32.mrf.mxu0 }
 0x20d   : > { %2894 = vmatmul.f32.gmra.mxu2 %v5727_v33  ;;  %v5734_v29 = vpop.f32.mrf.mxu1  ;;  %6824 = vst [vmem:[#allocation108_spill] sm:$0xff] %v5766_v41  ;;  %v2530_v41 = vmul.f32 %v5284_v40, %v6826_v0  ;;  %v5793_v40 = vld [vmem:[#allocation2 + $0xe9] sm:$0xff] }
 0x210   : > { %2263 = vmatmul.f32.gmra.mxu3 %v4814_v42  ;;  %2778 = vmatmul.f32.gmra.mxu1 %v5730_v48  ;;  %v4245_v42 = vld [vmem:[%s6667_s3 + $0x350] sm:$0xff]  ;;  %v5755_v26 = vpop.f32.mrf.mxu2 }
 0x211   : > { %3331 = vmatpush.msra.mxu3 %v4245_v42  ;;  %v4277_v42 = vld [vmem:[%s6667_s3 + $0x450] sm:$0xff] }
 0x212   : > { %3557 = vmatpush.msra.mxu1 %v4277_v42  ;;  %v4244_v42 = vld [vmem:[%s6667_s3 + $0x348] sm:$0xff] }
 0x213   : > { %v5741_v24 = vpop.f32.mrf.mxu3  ;;  %3332 = vmatpush.msra.mxu3 %v4244_v42 }
 0x214   : > { %3470 = vmatmul.f32.gmra.mxu0 %v5432_v13  ;;  %v5788_v8 = vpop.f32.mrf.mxu0 }
 0x215   : > { %2897 = vmatmul.f32.gmra.mxu2 %v2528_v9  ;;  %v5757_v13 = vpop.f32.mrf.mxu1  ;;  %v5761_v9 = vld [vmem:[#allocation2 + $0xd9] sm:$0xff]  ;;  %6827 = vst [vmem:[#allocation12_spill] sm:$0xff] %v5788_v8  ;;  %v6832_v8 = vld [vmem:[#allocation56_spill] sm:$0xff] }
 0x218   : > { %2266 = vmatmul.f32.gmra.mxu3 %v5332_v32  ;;  %2781 = vmatmul.f32.gmra.mxu1 %v5748_v7  ;;  %v5764_v32 = vld [vmem:[#allocation2 + $0xd0] sm:$0xff]  ;;  %v5775_v2 = vpop.f32.mrf.mxu2 }
 0x21b   : > { %v5759_v21 = vpop.f32.mrf.mxu3 }
 0x21c   : > { %3473 = vmatmul.f32.gmra.mxu0 %v3091_v16  ;;  %v3092_v16 = vld [vmem:[#allocation2 + $0x60] sm:$0xff] }
 0x21d   : > { %2900 = vmatmul.f32.gmra.mxu2 %v5761_v9  ;;  %v5777_v20 = vpop.f32.mrf.mxu1 }
 0x220   : > { %2269 = vmatmul.f32.gmra.mxu3 %v6825_v44  ;;  %2784 = vmatmul.f32.gmra.mxu1 %v5764_v32  ;;  %v5781_v44 = vld [vmem:[#allocation2 + $0xd8] sm:$0xff]  ;;  %v5795_v0 = vpop.f32.mrf.mxu2 }
 0x223   : > { %v5773_v18 = vpop.f32.mrf.mxu3 }
 0x224   : > { %3476 = vmatmul.f32.gmra.mxu0 %v3092_v16 }
 0x225   : > { %2903 = vmatmul.f32.gmra.mxu2 %v2530_v41  ;;  %v5800_v41 = vld [vmem:[#allocation2 + $0xe0] sm:$0xff] }
 0x228   : > { %2272 = vmatmul.f32.gmra.mxu3 %v5379_v38  ;;  %2787 = vmatmul.f32.gmra.mxu1 %v5781_v44  ;;  %v5797_v38 = vpop.f32.mrf.mxu1 }
 0x229   : > { %6829 = vst [vmem:[#allocation109_spill] sm:$0xff] %v5797_v38  ;;  %v2532_v38 = vmul.f32 %v5210_v46, %v6832_v8  ;;  %v4243_v46 = vld [vmem:[%s6667_s3 + $0x340] sm:$0xff]  ;;  %v4274_v8 = vld [vmem:[%s6667_s3 + $0x438] sm:$0xff] }
 0x22a   : > { %3333 = vmatpush.msra.mxu3 %v4243_v46  ;;  %v4272_v46 = vld [vmem:[%s6667_s3 + $0x428] sm:$0xff] }
 0x22b   : > { %v2208_v63 = vpop.f32.mrf.mxu3 }
 0x22c   : > { %v5791_v16 = vadd.f32 %v2208_v63, %v5654_v45  ;;  %3479 = vmatmul.f32.gmra.mxu0 %v3093_v35  ;;  %v4276_v63 = vld [vmem:[%s6667_s3 + $0x448] sm:$0xff]  ;;  %v5807_v45 = vpop.f32.mrf.mxu0 }
 0x22d   : > { %2906 = vmatmul.f32.gmra.mxu2 %v5793_v40  ;;  %3558 = vmatpush.msra.mxu1 %v4276_v63  ;;  %6831 = vst [vmem:[#allocation14_spill] sm:$0xff] %v5807_v45  ;;  %v5820_v63 = vpop.f32.mrf.mxu2 }
 0x22e   : > { %6828 = vst [vmem:[#allocation46_spill] sm:$0xff] %v5791_v16  ;;  %v5818_v16 = vld [vmem:[#allocation2 + $0xe8] sm:$0xff] }
 0x230   : > { %2275 = vmatmul.f32.gmra.mxu3 %v6830_v54  ;;  %2790 = vmatmul.f32.gmra.mxu1 %v5800_v41  ;;  %v4275_v54 = vld [vmem:[%s6667_s3 + $0x440] sm:$0xff]  ;;  %v5822_v4 = vpop.f32.mrf.mxu1 }
 0x231   : > { %3559 = vmatpush.msra.mxu1 %v4275_v54  ;;  %6833 = vst [vmem:[#allocation56_spill] sm:$0xff] %v5822_v4  ;;  %v5840_v54 = vld [vmem:[#allocation2 + $0xf9] sm:$0xff] }
 0x232   : > { %v5880_v4 = vld [vmem:[#allocation2 + $0xf8] sm:$0xff] }
 0x233   : > { %v2211_v35 = vpop.f32.mrf.mxu3  ;;  %3560 = vmatpush.msra.mxu1 %v4274_v8  ;;  %v5851_v8 = vld [vmem:[#allocation2 + $0xf0] sm:$0xff] }
 0x234   : > { %v5810_v42 = vadd.f32 %v2211_v35, %v5671_v27  ;;  %3482 = vmatmul.f32.gmra.mxu0 %v5541_v12  ;;  %v547_v12 = vadd.s32 232, %v4646_v58  ;;  %v5845_v45 = vpop.f32.mrf.mxu0 }
 0x235   : > { %2909 = vmatmul.f32.gmra.mxu2 %v2532_v38  ;;  %v4273_v38 = vld [vmem:[%s6667_s3 + $0x430] sm:$0xff]  ;;  %6834 = vst [vmem:[#allocation110_spill] sm:$0xff] %v5845_v45 }
 0x236   : > { %v757_v35 = vand.u32 15, %v547_v12  ;;  %3561 = vmatpush.msra.mxu1 %v4273_v38  ;;  %v4270_v12 = vld [vmem:[%s6667_s3 + $0x418] sm:$0xff] }
 0x238   : > { %2278 = vmatmul.f32.gmra.mxu3 %v5425_v57  ;;  %2793 = vmatmul.f32.gmra.mxu1 %v5818_v16  ;;  %vm1443_vm14 = vcmp.lt.s32.totalorder %v757_v35, 15  ;;  %v5860_v38 = vpop.f32.mrf.mxu1 }
 0x239   : > { %3562 = vmatpush.msra.mxu1 %v4272_v46  ;;  %v5863_v45 = vsel %vm1443_vm14, 1.0, %v5207_v37 }
 0x23b   : > { %v2214_v27 = vpop.f32.mrf.mxu3 }
 0x23c   : > { %v5837_v57 = vadd.f32 %v2214_v27, %v5687_v52  ;;  %3485 = vmatmul.f32.gmra.mxu0 %v5573_v39  ;;  %v4271_v52 = vld [vmem:[%s6667_s3 + $0x420] sm:$0xff]  ;;  %v6835_v39 = vld [vmem:[#allocation16_spill] sm:$0xff]  ;;  %v5858_v27 = vpop.f32.mrf.mxu2 }
 0x23d   : > { %2912 = vmatmul.f32.gmra.mxu2 %v5840_v54  ;;  %3563 = vmatpush.msra.mxu1 %v4271_v52  ;;  %6836 = vst [vmem:[#allocation16_spill] sm:$0xff] %v5860_v38  ;;  %v2534_v52 = vmul.f32 %v5863_v45, %v5341_v10  ;;  %v4268_v38 = vld [vmem:[%s6667_s3 + $0x408] sm:$0xff]  ;;  %v549_v10 = vadd.s32 248, %v4646_v58  ;;  %v5901_v58 = vld [vmem:[#allocation2 + $0x100] sm:$0xff] }
 0x23f   : > { %3564 = vmatpush.msra.mxu1 %v4270_v12  ;;  %v4267_v12 = vld [vmem:[%s6667_s3 + $0x400] sm:$0xff] }
 0x240   : > { %2281 = vmatmul.f32.gmra.mxu3 %v6835_v39  ;;  %2796 = vmatmul.f32.gmra.mxu1 %v5851_v8  ;;  %v4269_v39 = vld [vmem:[%s6667_s3 + $0x410] sm:$0xff] }
 0x241   : > { %3565 = vmatpush.msra.mxu1 %v4269_v39 }
 0x243   : > { %v2217_v46 = vpop.f32.mrf.mxu3  ;;  %3566 = vmatpush.msra.mxu1 %v4268_v38 }
 0x244   : > { %v5869_v35 = vadd.f32 %v2217_v46, %v5706_v3  ;;  %3488 = vmatmul.f32.gmra.mxu0 %v5596_v14  ;;  %v5882_v3 = vpop.f32.mrf.mxu0  ;;  %v4242_v14 = vld [vmem:[%s6667_s3 + $0x338] sm:$0xff]  ;;  %v5890_v39 = vpop.f32.mrf.mxu2 }
 0x245   : > { %2915 = vmatmul.f32.gmra.mxu2 %v2534_v52  ;;  %6838 = vst [vmem:[#allocation112_spill] sm:$0xff] %v5882_v3  ;;  %3567 = vmatpush.msra.mxu1 %v4267_v12  ;;  %v5892_v52 = vpop.f32.mrf.mxu1  ;;  %v5898_v3 = vld [vmem:[#allocation2 + $0x109] sm:$0xff]  ;;  %v5905_v12 = vld [vmem:[#allocation2 + $0x111] sm:$0xff] }
 0x246   : > { %6837 = vst [vmem:[#allocation111_spill] sm:$0xff] %v5869_v35  ;;  %3334 = vmatpush.msra.mxu3 %v4242_v14  ;;  %v6840_v35 = vld [vmem:[#allocation18_spill] sm:$0xff] }
 0x247   : > { %6839 = vst [vmem:[#allocation113_spill] sm:$0xff] %v5892_v52 }
 0x248   : > { %2284 = vmatmul.f32.gmra.mxu3 %v5466_v22  ;;  %2799 = vmatmul.f32.gmra.mxu1 %v5880_v4  ;;  %v771_v22 = vand.u32 15, %v549_v10 }
 0x24a   : > { %vm1445_vm15 = vcmp.lt.s32.totalorder %v771_v22, 15  ;;  %v3876_v22 = vld [vmem:[%s6669_s5 + $0x78] sm:$0xff] }
 0x24b   : > { %v2220_v46 = vpop.f32.mrf.mxu3  ;;  %3881 = vmatpush.msra.mxu2 %v3876_v22  ;;  %v6847_v22 = vld [vmem:[#allocation23_spill] sm:$0xff] }
 0x24c   : > { %v5895_v38 = vadd.f32 %v2220_v46, %v5722_v30  ;;  %3491 = vmatmul.f32.gmra.mxu0 %v5613_v28  ;;  %v5907_v14 = vpop.f32.mrf.mxu0  ;;  %v5910_v46 = vsel %vm1445_vm15, 1.0, %v5207_v37  ;;  %v4241_v37 = vld [vmem:[%s6667_s3 + $0x330] sm:$0xff] }
 0x24d   : > { %2918 = vmatmul.f32.gmra.mxu2 %v5898_v3  ;;  %6841 = vst [vmem:[#allocation18_spill] sm:$0xff] %v5907_v14  ;;  %v2536_v10 = vmul.f32 %v5910_v46, %v5905_v12  ;;  %v5920_v52 = vpop.f32.mrf.mxu1  ;;  %v5925_v14 = vld [vmem:[#allocation2 + $0x108] sm:$0xff]  ;;  %3335 = vmatpush.msra.mxu3 %v4241_v37 }
 0x24e   : > { %6843 = vst [vmem:[#allocation115_spill] sm:$0xff] %v5920_v52 }
 0x250   : > { %2287 = vmatmul.f32.gmra.mxu3 %v6840_v35  ;;  %2802 = vmatmul.f32.gmra.mxu1 %v5901_v58  ;;  %v5918_v35 = vpop.f32.mrf.mxu2 }
 0x253   : > { %v2223_v30 = vpop.f32.mrf.mxu3 }
 0x254   : > { %v5913_v28 = vadd.f32 %v2223_v30, %v5741_v24  ;;  %3494 = vmatmul.f32.gmra.mxu0 %v5631_v17  ;;  %v5932_v24 = vpop.f32.mrf.mxu0 }
 0x255   : > { %2921 = vmatmul.f32.gmra.mxu2 %v2536_v10  ;;  %6844 = vst [vmem:[#allocation116_spill] sm:$0xff] %v5932_v24  ;;  %v5938_v10 = vpop.f32.mrf.mxu1  ;;  %v3118_v24 = vld [vmem:[#allocation2 + $0x31] sm:$0xff] }
 0x256   : > { %6842 = vst [vmem:[#allocation114_spill] sm:$0xff] %v5913_v28 }
 0x257   : > { %6846 = vst [vmem:[#allocation118_spill] sm:$0xff] %v5938_v10 }
 0x258   : > { %2290 = vmatmul.f32.gmra.mxu3 %v5532_v15  ;;  %2805 = vmatmul.f32.gmra.mxu1 %v5925_v14  ;;  %v6848_v15 = vmax.f32 %v5509_v61, 0.0  ;;  %v4240_v61 = vld [vmem:[%s6667_s3 + $0x328] sm:$0xff] }
 0x259   : > { %3336 = vmatpush.msra.mxu3 %v4240_v61 }
 0x25b   : > { %v2226_v17 = vpop.f32.mrf.mxu3 }
 0x25c   : > { %v5935_v30 = vadd.f32 %v2226_v17, %v5759_v21  ;;  %3497 = vmatmul.f32.gmra.mxu0 %v5645_v59  ;;  %v5947_v37 = vpop.f32.mrf.mxu0  ;;  %v3875_v21 = vld [vmem:[%s6669_s5 + $0x70] sm:$0xff]  ;;  %v6851_v17 = vld [vmem:[#allocation54_spill] sm:$0xff] }
 0x25d   : > { %6850 = vst [vmem:[#allocation119_spill] sm:$0xff] %v5947_v37  ;;  %v3117_v59 = vld [vmem:[#allocation2 + $0x29] sm:$0xff]  ;;  %3882 = vmatpush.msra.mxu2 %v3875_v21 }
 0x25e   : > { %6845 = vst [vmem:[#allocation117_spill] sm:$0xff] %v5935_v30 }
 0x260   : > { %2293 = vmatmul.f32.gmra.mxu3 %v6847_v22  ;;  %2808 = vmatmul.f32.gmra.mxu1 %v6848_v15  ;;  %v2717_v22 = vadd.f32 %v5643_v25, %v6851_v17  ;;  %v5960_v15 = vpop.f32.mrf.mxu1 }
 0x261   : > { %6854 = vst [vmem:[#allocation54_spill] sm:$0xff] %v5960_v15 }
 0x262   : > { %v2830_v21 = vadd.f32 %v5732_v51, %v2717_v22 }
 0x263   : > { %v2229_v52 = vpop.f32.mrf.mxu3 }
 0x264   : > { %v5944_v28 = vadd.f32 %v2229_v52, %v5773_v18  ;;  %3500 = vmatmul.f32.gmra.mxu0 %v5663_v43  ;;  %v6852_v18 = vld [vmem:[#allocation20_spill] sm:$0xff]  ;;  %v6853_v43 = vld [vmem:[#allocation19_spill] sm:$0xff]  ;;  %v5969_v61 = vpop.f32.mrf.mxu0 }
 0x265   : > { %v2137_v52 = vadd.f32 %v6853_v43, %v6852_v18  ;;  %6856 = vst [vmem:[#allocation20_spill] sm:$0xff] %v5969_v61  ;;  %v6858_v18 = vld [vmem:[#allocation25_spill] sm:$0xff]  ;;  %v6859_v43 = vld [vmem:[#allocation24_spill] sm:$0xff] }
 0x266   : > { %6849 = vst [vmem:[#allocation23_spill] sm:$0xff] %v5944_v28  ;;  %v6857_v28 = vld [vmem:[#allocation30_spill] sm:$0xff]  ;;  %v2140_v15 = vadd.f32 %v6859_v43, %v6858_v18  ;;  %v3027_v61 = vld [vmem:[#allocation2 + $0x57] sm:$0xff] }
 0x267   : > { %v6865_v43 = vld [vmem:[#allocation66_spill] sm:$0xff] }
 0x268   : > { %2296 = vmatmul.f32.gmra.mxu3 %v5593_v23  ;;  %3568 = vmatmul.f32.vlgmr.msra.gmra.mxu1 %v3117_v59  ;;  %v3150_v23 = vmul.f32 %v5236_v31, %v3118_v24  ;;  %v6855_v59 = vld [vmem:[#allocation59_spill] sm:$0xff]  ;;  %v3119_v24 = vld [vmem:[#allocation2 + $0x39] sm:$0xff] }
 0x269   : > { %v2720_v17 = vadd.f32 %v5656_v55, %v6855_v59  ;;  %v3874_v55 = vld [vmem:[%s6669_s5 + $0x68] sm:$0xff] }
 0x26a   : > { %3883 = vmatpush.msra.mxu2 %v3874_v55  ;;  %v6867_v55 = vld [vmem:[#allocation31_spill] sm:$0xff] }
 0x26b   : > { %v2249_v37 = vpop.f32.mrf.mxu3  ;;  %v2833_v51 = vadd.f32 %v5755_v26, %v2720_v17  ;;  %v4239_v26 = vld [vmem:[%s6667_s3 + $0x320] sm:$0xff]  ;;  %v6864_v17 = vld [vmem:[#allocation7_spill] sm:$0xff] }
 0x26c   : > { %v2250_v10 = vadd.f32 %v2249_v37, %v2137_v52  ;;  %3503 = vmatmul.f32.gmra.mxu0 %v5678_v5  ;;  %v5975_v37 = vpop.f32.mrf.mxu1  ;;  %3337 = vmatpush.msra.mxu3 %v4239_v26  ;;  %v5991_v52 = vpop.f32.mrf.mxu0 }
 0x26d   : > { %6863 = vst [vmem:[#allocation19_spill] sm:$0xff] %v5991_v52 }
 0x26e   : > { %v5964_v25 = vadd.f32 %v2830_v21, %v2250_v10  ;;  %v3120_v21 = vld [vmem:[#allocation2 + $0x41] sm:$0xff] }
 0x26f   : > { %v3152_v18 = vmul.f32 %v6864_v17, %v3120_v21 }
 0x270   : > { %2299 = vmatmul.f32.gmra.mxu3 %v6857_v28  ;;  %3571 = vmatmul.f32.gmra.mxu1 %v3150_v23  ;;  %v6860_v28 = vld [vmem:[#allocation63_spill] sm:$0xff] }
 0x271   : > { %v2723_v10 = vadd.f32 %v5676_v60, %v6860_v28 }
 0x273   : > { %v2252_v30 = vpop.f32.mrf.mxu3  ;;  %v2836_v23 = vadd.f32 %v5775_v2, %v2723_v10 }
 0x274   : > { %v2253_v5 = vadd.f32 %v2252_v30, %v2140_v15  ;;  %3506 = vmatmul.f32.gmra.mxu0 %v5697_v62  ;;  %v6861_v62 = vld [vmem:[#allocation29_spill] sm:$0xff]  ;;  %v6862_v30 = vld [vmem:[#allocation27_spill] sm:$0xff]  ;;  %v5995_v60 = vpop.f32.mrf.mxu1  ;;  %v6006_v10 = vpop.f32.mrf.mxu0 }
 0x275   : > { %v2143_v22 = vadd.f32 %v6862_v30, %v6861_v62  ;;  %6869 = vst [vmem:[#allocation59_spill] sm:$0xff] %v6006_v10  ;;  %v3121_v30 = vld [vmem:[#allocation2 + $0x49] sm:$0xff]  ;;  %v3024_v10 = vld [vmem:[#allocation2 + $0x3f] sm:$0xff] }
 0x276   : > { %v5978_v31 = vadd.f32 %v2833_v51, %v2253_v5  ;;  %v2726_v51 = vadd.f32 %v5692_v6, %v6865_v43  ;;  %v6866_v5 = vld [vmem:[#allocation36_spill] sm:$0xff]  ;;  %v3873_v6 = vld [vmem:[%s6669_s5 + $0x60] sm:$0xff] }
 0x277   : > { %3884 = vmatpush.msra.mxu2 %v3873_v6 }
 0x278   : > { %2302 = vmatmul.f32.gmra.mxu3 %v5626_v36  ;;  %3574 = vmatmul.f32.gmra.mxu1 %v3119_v24  ;;  %v6868_v24 = vld [vmem:[#allocation32_spill] sm:$0xff]  ;;  %v2839_v2 = vadd.f32 %v5795_v0, %v2726_v51  ;;  %v6871_v0 = vld [vmem:[#allocation35_spill] sm:$0xff] }
 0x279   : > { %v2146_v28 = vadd.f32 %v6868_v24, %v6867_v55  ;;  %v2732_v24 = vadd.f32 %v5734_v29, %v5401_v53  ;;  %v3872_v53 = vld [vmem:[%s6669_s5 + $0x58] sm:$0xff] }
 0x27a   : > { %v3123_v29 = vld [vmem:[#allocation2 + $0x59] sm:$0xff]  ;;  %3885 = vmatpush.msra.mxu2 %v3872_v53 }
 0x27b   : > { %v2255_v15 = vpop.f32.mrf.mxu3 }
 0x27c   : > { %v2256_v59 = vadd.f32 %v2255_v15, %v2143_v22  ;;  %3509 = vmatmul.f32.gmra.mxu0 %v5715_v11  ;;  %v6870_v22 = vld [vmem:[#allocation71_spill] sm:$0xff]  ;;  %v6016_v21 = vpop.f32.mrf.mxu1 }
 0x27d   : > { %v2729_v15 = vadd.f32 %v5713_v49, %v6870_v22  ;;  %v6026_v49 = vpop.f32.mrf.mxu0 }
 0x27e   : > { %v5997_v36 = vadd.f32 %v2836_v23, %v2256_v59  ;;  %v6872_v23 = vld [vmem:[#allocation37_spill] sm:$0xff]  ;;  %6873 = vst [vmem:[#allocation30_spill] sm:$0xff] %v6026_v49 }
 0x27f   : > { %v2149_v59 = vadd.f32 %v6872_v23, %v6871_v0  ;;  %v2842_v43 = vadd.f32 %v5820_v63, %v2729_v15  ;;  %v6878_v15 = vld [vmem:[#allocation78_spill] sm:$0xff]  ;;  %v6881_v23 = vld [vmem:[#allocation44_spill] sm:$0xff] }
 0x280   : > { %2305 = vmatmul.f32.gmra.mxu3 %v6866_v5  ;;  %3577 = vmatmul.f32.gmra.mxu1 %v3152_v18  ;;  %v3122_v18 = vld [vmem:[#allocation2 + $0x51] sm:$0xff] }
 0x283   : > { %v2258_v26 = vpop.f32.mrf.mxu3 }
 0x284   : > { %v2259_v11 = vadd.f32 %v2258_v26, %v2146_v28  ;;  %3512 = vmatmul.f32.gmra.mxu0 %v5730_v48  ;;  %v4238_v48 = vld [vmem:[%s6667_s3 + $0x318] sm:$0xff]  ;;  %v6875_v28 = vld [vmem:[#allocation43_spill] sm:$0xff]  ;;  %v6876_v26 = vld [vmem:[#allocation38_spill] sm:$0xff]  ;;  %v6036_v6 = vpop.f32.mrf.mxu1 }
 0x285   : > { %3338 = vmatpush.msra.mxu3 %v4238_v48  ;;  %v2735_v48 = vadd.f32 %v5757_v13, %v6878_v15  ;;  %v6047_v0 = vpop.f32.mrf.mxu0 }
 0x286   : > { %v6009_v62 = vadd.f32 %v2839_v2, %v2259_v11  ;;  %v6877_v2 = vld [vmem:[#allocation39_spill] sm:$0xff]  ;;  %6879 = vst [vmem:[#allocation25_spill] sm:$0xff] %v6047_v0 }
 0x287   : > { %v2152_v11 = vadd.f32 %v6877_v2, %v6876_v26  ;;  %v6884_v26 = vld [vmem:[#allocation45_spill] sm:$0xff]  ;;  %v6885_v2 = vld [vmem:[#allocation52_spill] sm:$0xff] }
 0x288   : > { %2308 = vmatmul.f32.gmra.mxu3 %v5658_v1  ;;  %3580 = vmatmul.f32.gmra.mxu1 %v3121_v30  ;;  %v6874_v1 = vld [vmem:[#allocation9_spill] sm:$0xff] }
 0x289   : > { %v3154_v55 = vmul.f32 %v6874_v1, %v3122_v18  ;;  %v3124_v18 = vld [vmem:[#allocation2 + $0x61] sm:$0xff] }
 0x28b   : > { %v2261_v17 = vpop.f32.mrf.mxu3 }
 0x28c   : > { %v2262_v51 = vadd.f32 %v2261_v17, %v2149_v59  ;;  %3515 = vmatmul.f32.gmra.mxu0 %v5748_v7  ;;  %v2845_v7 = vadd.f32 %v5858_v27, %v2732_v24  ;;  %v6880_v27 = vld [vmem:[#allocation42_spill] sm:$0xff]  ;;  %v2738_v24 = vadd.f32 %v5777_v20, %v5449_v56  ;;  %v3871_v56 = vld [vmem:[%s6669_s5 + $0x50] sm:$0xff] }
 0x28d   : > { %v2155_v59 = vadd.f32 %v6881_v23, %v6880_v27  ;;  %v3125_v20 = vld [vmem:[#allocation2 + $0x69] sm:$0xff]  ;;  %3886 = vmatpush.msra.mxu2 %v3871_v56 }
 0x28e   : > { %v6028_v5 = vadd.f32 %v2842_v43, %v2262_v51  ;;  %v2848_v43 = vadd.f32 %v5890_v39, %v2735_v48  ;;  %v6056_v51 = vpop.f32.mrf.mxu1 }
 0x290   : > { %2311 = vmatmul.f32.gmra.mxu3 %v6875_v28  ;;  %3583 = vmatmul.f32.gmra.mxu1 %v3154_v55  ;;  %v6883_v28 = vld [vmem:[#allocation53_spill] sm:$0xff] }
 0x293   : > { %v2264_v63 = vpop.f32.mrf.mxu3 }
 0x294   : > { %v2265_v30 = vadd.f32 %v2264_v63, %v2152_v11  ;;  %3518 = vmatmul.f32.gmra.mxu0 %v5764_v32  ;;  %v4237_v32 = vld [vmem:[%s6667_s3 + $0x310] sm:$0xff]  ;;  %v2158_v11 = vadd.f32 %v6885_v2, %v6884_v26  ;;  %v6067_v63 = vpop.f32.mrf.mxu0  ;;  %v6893_v26 = vld [vmem:[#allocation62_spill] sm:$0xff]  ;;  %v6894_v2 = vld [vmem:[#allocation69_spill] sm:$0xff] }
 0x295   : > { %3339 = vmatpush.msra.mxu3 %v4237_v32  ;;  %v3126_v32 = vld [vmem:[#allocation2 + $0x71] sm:$0xff] }
 0x296   : > { %v6040_v22 = vadd.f32 %v2845_v7, %v2265_v30  ;;  %v2851_v7 = vadd.f32 %v5918_v35, %v2738_v24  ;;  %v4236_v35 = vld [vmem:[%s6667_s3 + $0x308] sm:$0xff] }
 0x297   : > { %3340 = vmatpush.msra.mxu3 %v4236_v35  ;;  %v6896_v35 = vld [vmem:[#allocation48_spill] sm:$0xff] }
 0x298   : > { %2314 = vmatmul.f32.gmra.mxu3 %v5694_v47  ;;  %3586 = vmatmul.f32.gmra.mxu1 %v3123_v29  ;;  %v6882_v47 = vld [vmem:[#allocation11_spill] sm:$0xff] }
 0x299   : > { %v3156_v55 = vmul.f32 %v6882_v47, %v3124_v18  ;;  %v6887_v29 = vld [vmem:[#allocation51_spill] sm:$0xff] }
 0x29a   : > { %v6891_v18 = vld [vmem:[#allocation55_spill] sm:$0xff] }
 0x29b   : > { %v2267_v17 = vpop.f32.mrf.mxu3 }
 0x29c   : > { %v2268_v13 = vadd.f32 %v2267_v17, %v2155_v59  ;;  %3521 = vmatmul.f32.gmra.mxu0 %v5781_v44  ;;  %v6071_v44 = vpop.f32.mrf.mxu1  ;;  %v6084_v27 = vpop.f32.mrf.mxu0  ;;  %v3158_v59 = vmul.f32 %v4867_v19, %v3126_v32  ;;  %v6890_v17 = vld [vmem:[#allocation58_spill] sm:$0xff] }
 0x29d   : > { %6886 = vst [vmem:[#allocation24_spill] sm:$0xff] %v6071_v44  ;;  %v3127_v19 = vld [vmem:[#allocation2 + $0x79] sm:$0xff] }
 0x29e   : > { %v6059_v1 = vadd.f32 %v2848_v43, %v2268_v13  ;;  %v6892_v43 = vld [vmem:[#allocation64_spill] sm:$0xff] }
 0x29f   : > { %v2164_v13 = vadd.f32 %v6892_v43, %v6891_v18  ;;  %v6901_v18 = vld [vmem:[#allocation76_spill] sm:$0xff] }
 0x2a0   : > { %2317 = vmatmul.f32.gmra.mxu3 %v6883_v28  ;;  %3589 = vmatmul.f32.gmra.mxu1 %v3156_v55  ;;  %v4235_v28 = vld [vmem:[%s6667_s3 + $0x300] sm:$0xff] }
 0x2a1   : > { %3341 = vmatpush.msra.mxu3 %v4235_v28  ;;  %v4347_v28 = vld [vmem:[#allocation2 + $0xf1] sm:$0xff] }
 0x2a3   : > { %v2270_v39 = vpop.f32.mrf.mxu3 }
 0x2a4   : > { %v2271_v30 = vadd.f32 %v2270_v39, %v2158_v11  ;;  %3524 = vmatmul.f32.gmra.mxu0 %v5800_v41  ;;  %v6888_v41 = vld [vmem:[#allocation57_spill] sm:$0xff]  ;;  %v6098_v24 = vpop.f32.mrf.mxu0  ;;  %v2167_v11 = vadd.f32 %v6894_v2, %v6893_v26  ;;  %v1859_v26 = vmul.f32 %v4347_v28, %v5863_v45  ;;  %v6908_v28 = vld [vmem:[#allocation22_spill] sm:$0xff] }
 0x2a5   : > { %v2161_v15 = vadd.f32 %v6888_v41, %v6887_v29  ;;  %v6897_v29 = vld [vmem:[#allocation65_spill] sm:$0xff] }
 0x2a6   : > { %v6073_v53 = vadd.f32 %v2851_v7, %v2271_v30  ;;  %v3128_v7 = vld [vmem:[#allocation2 + $0x81] sm:$0xff]  ;;  %v6898_v41 = vld [vmem:[#allocation73_spill] sm:$0xff] }
 0x2a7   : > { %v3160_v56 = vmul.f32 %v4899_v50, %v3128_v7  ;;  %v3129_v50 = vld [vmem:[#allocation2 + $0x89] sm:$0xff] }
 0x2a8   : > { %2320 = vmatmul.f32.gmra.mxu3 %v5727_v33  ;;  %3592 = vmatmul.f32.gmra.mxu1 %v3125_v20  ;;  %v6090_v33 = vpop.f32.mrf.mxu1 }
 0x2a9   : > { %6889 = vst [vmem:[#allocation63_spill] sm:$0xff] %v6090_v33 }
 0x2ab   : > { %v2273_v48 = vpop.f32.mrf.mxu3 }
 0x2ac   : > { %v6086_v23 = vadd.f32 %v2273_v48, %v2161_v15  ;;  %3527 = vmatmul.f32.gmra.mxu0 %v5818_v16  ;;  %v3870_v16 = vld [vmem:[%s6669_s5 + $0x48] sm:$0xff]  ;;  %v6115_v20 = vpop.f32.mrf.mxu0  ;;  %v2170_v15 = vadd.f32 %v6898_v41, %v6897_v29 }
 0x2ad   : > { %3887 = vmatpush.msra.mxu2 %v3870_v16  ;;  %v3130_v16 = vld [vmem:[#allocation2 + $0x91] sm:$0xff] }
 0x2ae   : > { %v3162_v2 = vmul.f32 %v4928_v34, %v3130_v16  ;;  %v6906_v34 = vld [vmem:[#allocation75_spill] sm:$0xff] }
 0x2b0   : > { %2323 = vmatmul.f32.gmra.mxu3 %v6890_v17  ;;  %3595 = vmatmul.f32.gmra.mxu1 %v3158_v59  ;;  %v6900_v17 = vld [vmem:[#allocation70_spill] sm:$0xff] }
 0x2b1   : > { %v2173_v43 = vadd.f32 %v6901_v18, %v6900_v17  ;;  %v3132_v18 = vld [vmem:[#allocation2 + $0xa1] sm:$0xff] }
 0x2b3   : > { %v2276_v47 = vpop.f32.mrf.mxu3 }
 0x2b4   : > { %v6095_v55 = vadd.f32 %v2276_v47, %v2164_v13  ;;  %3530 = vmatmul.f32.gmra.mxu0 %v5851_v8  ;;  %v6109_v8 = vpop.f32.mrf.mxu1  ;;  %v6131_v13 = vpop.f32.mrf.mxu0 }
 0x2b5   : > { %6895 = vst [vmem:[#allocation29_spill] sm:$0xff] %v6109_v8  ;;  %v6963_v8 = vld [vmem:[#allocation23_spill] sm:$0xff] }
 0x2b8   : > { %2326 = vmatmul.f32.gmra.mxu3 %v5761_v9  ;;  %3598 = vmatmul.f32.gmra.mxu1 %v3127_v19 }
 0x2bb   : > { %v2279_v39 = vpop.f32.mrf.mxu3 }
 0x2bc   : > { %v6111_v30 = vadd.f32 %v2279_v39, %v2167_v11  ;;  %3533 = vmatmul.f32.gmra.mxu0 %v5880_v4  ;;  %v6120_v32 = vpop.f32.mrf.mxu1  ;;  %v3869_v4 = vld [vmem:[%s6669_s5 + $0x40] sm:$0xff]  ;;  %v6903_v11 = vld [vmem:[#allocation72_spill] sm:$0xff]  ;;  %v6904_v39 = vld [vmem:[#allocation79_spill] sm:$0xff]  ;;  %v6142_v29 = vpop.f32.mrf.mxu0 }
 0x2bd   : > { %6899 = vst [vmem:[#allocation27_spill] sm:$0xff] %v6120_v32  ;;  %3888 = vmatpush.msra.mxu2 %v3869_v4  ;;  %v2176_v7 = vadd.f32 %v6904_v39, %v6903_v11  ;;  %v6907_v4 = vld [vmem:[#allocation81_spill] sm:$0xff] }
 0x2be   : > { %v6910_v11 = vld [vmem:[#allocation85_spill] sm:$0xff] }
 0x2c0   : > { %2329 = vmatmul.f32.gmra.mxu3 %v6896_v35  ;;  %3601 = vmatmul.f32.gmra.mxu1 %v3160_v56  ;;  %v3114_v35 = vld [vmem:[#allocation2 + $0x110] sm:$0xff] }
 0x2c3   : > { %v2282_v48 = vpop.f32.mrf.mxu3 }
 0x2c4   : > { %v6122_v59 = vadd.f32 %v2282_v48, %v2170_v15  ;;  %3536 = vmatmul.f32.gmra.mxu0 %v5901_v58  ;;  %v6136_v58 = vpop.f32.mrf.mxu1  ;;  %v3131_v15 = vld [vmem:[#allocation2 + $0x99] sm:$0xff] }
 0x2c5   : > { %6902 = vst [vmem:[#allocation7_spill] sm:$0xff] %v6136_v58  ;;  %v6946_v58 = vld [vmem:[#allocation10_spill] sm:$0xff] }
 0x2c8   : > { %2332 = vmatmul.f32.gmra.mxu3 %v5793_v40  ;;  %3604 = vmatmul.f32.gmra.mxu1 %v3129_v50  ;;  %v2179_v50 = vadd.f32 %v6907_v4, %v6906_v34  ;;  %v3867_v4 = vld [vmem:[%s6669_s5 + $0x30] sm:$0xff] }
 0x2cb   : > { %v2285_v47 = vpop.f32.mrf.mxu3 }
 0x2cc   : > { %v6133_v19 = vadd.f32 %v2285_v47, %v2173_v43  ;;  %3539 = vmatmul.f32.gmra.mxu0 %v5925_v14  ;;  %v3868_v14 = vld [vmem:[%s6669_s5 + $0x38] sm:$0xff]  ;;  %v6149_v48 = vpop.f32.mrf.mxu1  ;;  %v4348_v47 = vld [vmem:[#allocation2 + $0x101] sm:$0xff] }
 0x2cd   : > { %3889 = vmatpush.msra.mxu2 %v3868_v14  ;;  %6905 = vst [vmem:[#allocation66_spill] sm:$0xff] %v6149_v48  ;;  %v1861_v16 = vmul.f32 %v4348_v47, %v5910_v46 }
 0x2cf   : > { %3890 = vmatpush.msra.mxu2 %v3867_v4 }
 0x2d0   : > { %2335 = vmatmul.f32.gmra.mxu3 %v1859_v26  ;;  %3607 = vmatmul.f32.gmra.mxu1 %v3162_v2  ;;  %v3164_v26 = vmul.f32 %v6908_v28, %v3132_v18  ;;  %v6909_v2 = vld [vmem:[#allocation77_spill] sm:$0xff]  ;;  %v6914_v18 = vld [vmem:[#allocation88_spill] sm:$0xff] }
 0x2d1   : > { %v2182_v39 = vadd.f32 %v6910_v11, %v6909_v2  ;;  %v3134_v28 = vld [vmem:[#allocation2 + $0xb1] sm:$0xff] }
 0x2d2   : > { %v6916_v11 = vld [vmem:[#allocation28_spill] sm:$0xff] }
 0x2d3   : > { %v2288_v56 = vpop.f32.mrf.mxu3 }
 0x2d4   : > { %v6144_v41 = vadd.f32 %v2288_v56, %v2176_v7  ;;  %3542 = vmatmul.f32.gmra.mxu0 %v3114_v35  ;;  %v6160_v7 = vpop.f32.mrf.mxu1  ;;  %v3021_v35 = vld [vmem:[#allocation2 + $0x27] sm:$0xff] }
 0x2d5   : > { %6911 = vst [vmem:[#allocation36_spill] sm:$0xff] %v6160_v7 }
 0x2d8   : > { %2338 = vmatmul.f32.gmra.mxu3 %v5840_v54  ;;  %3610 = vmatmul.f32.gmra.mxu1 %v3131_v15  ;;  %v6912_v15 = vld [vmem:[#allocation4_spill] sm:$0xff] }
 0x2d9   : > { %v3053_v34 = vmul.f32 %v6912_v15, %v3021_v35  ;;  %v6917_v35 = vld [vmem:[#allocation82_spill] sm:$0xff]  ;;  %v6918_v15 = vld [vmem:[#allocation91_spill] sm:$0xff] }
 0x2da   : > { %v2188_v0 = vadd.f32 %v6918_v15, %v6917_v35  ;;  %v3136_v35 = vld [vmem:[#allocation2 + $0xc1] sm:$0xff] }
 0x2db   : > { %v2291_v17 = vpop.f32.mrf.mxu3 }
 0x2dc   : > { %v6154_v43 = vadd.f32 %v2291_v17, %v2179_v50  ;;  %v3133_v50 = vld [vmem:[#allocation2 + $0xa9] sm:$0xff] }
 0x2dd   : > { %v6913_v17 = vld [vmem:[#allocation80_spill] sm:$0xff] }
 0x2de   : > { %v2185_v47 = vadd.f32 %v6914_v18, %v6913_v17  ;;  %v6920_v17 = vld [vmem:[#allocation5_spill] sm:$0xff] }
 0x2e0   : > { %2341 = vmatmul.f32.gmra.mxu3 %v1861_v16  ;;  %3613 = vmatmul.f32.gmra.mxu1 %v3164_v26  ;;  %v6170_v26 = vpop.f32.mrf.mxu1 }
 0x2e1   : > { %6915 = vst [vmem:[#allocation31_spill] sm:$0xff] %v6170_v26  ;;  %v6928_v26 = vld [vmem:[#allocation6_spill] sm:$0xff] }
 0x2e3   : > { %v2294_v56 = vpop.f32.mrf.mxu3 }
 0x2e4   : > { %v6162_v14 = vadd.f32 %v2294_v56, %v2182_v39  ;;  %v3166_v39 = vmul.f32 %v6916_v11, %v3134_v28  ;;  %v3022_v56 = vld [vmem:[#allocation2 + $0x2f] sm:$0xff]  ;;  %v6922_v11 = vld [vmem:[#allocation94_spill] sm:$0xff] }
 0x2e5   : > { %v6921_v28 = vld [vmem:[#allocation84_spill] sm:$0xff] }
 0x2e8   : > { %3342 = vmatmul.f32.vlgmr.msra.gmra.mxu3 %v3053_v34  ;;  %3616 = vmatmul.f32.gmra.mxu1 %v3133_v50  ;;  %v3023_v34 = vld [vmem:[#allocation2 + $0x37] sm:$0xff]  ;;  %v6179_v49 = vpop.f32.mrf.mxu1 }
 0x2e9   : > { %6919 = vst [vmem:[#allocation32_spill] sm:$0xff] %v6179_v49  ;;  %v3055_v18 = vmul.f32 %v6920_v17, %v3023_v34  ;;  %v6925_v34 = vld [vmem:[#allocation87_spill] sm:$0xff]  ;;  %v6926_v17 = vld [vmem:[#allocation98_spill] sm:$0xff] }
 0x2ea   : > { %v2194_v52 = vadd.f32 %v6926_v17, %v6925_v34 }
 0x2eb   : > { %v2297_v16 = vpop.f32.mrf.mxu3 }
 0x2ec   : > { %v6172_v2 = vadd.f32 %v2297_v16, %v2185_v47  ;;  %v3866_v47 = vld [vmem:[%s6669_s5 + $0x28] sm:$0xff]  ;;  %v3135_v16 = vld [vmem:[#allocation2 + $0xb9] sm:$0xff] }
 0x2ed   : > { %3891 = vmatpush.msra.mxu2 %v3866_v47 }
 0x2f0   : > { %3345 = vmatmul.f32.gmra.mxu3 %v3022_v56  ;;  %3619 = vmatmul.f32.gmra.mxu1 %v3166_v39  ;;  %v2191_v39 = vadd.f32 %v6922_v11, %v6921_v28  ;;  %v6190_v49 = vpop.f32.mrf.mxu1  ;;  %v3865_v11 = vld [vmem:[%s6669_s5 + $0x20] sm:$0xff] }
 0x2f1   : > { %6924 = vst [vmem:[#allocation71_spill] sm:$0xff] %v6190_v49  ;;  %3892 = vmatpush.msra.mxu2 %v3865_v11  ;;  %v6934_v49 = vld [vmem:[#allocation92_spill] sm:$0xff]  ;;  %v6935_v11 = vld [vmem:[#allocation102_spill] sm:$0xff] }
 0x2f3   : > { %v2300_v4 = vpop.f32.mrf.mxu3 }
 0x2f4   : > { %v6177_v50 = vadd.f32 %v2300_v4, %v2188_v0  ;;  %v6923_v0 = vld [vmem:[#allocation34_spill] sm:$0xff] }
 0x2f5   : > { %v3168_v4 = vmul.f32 %v6923_v0, %v3136_v35 }
 0x2f8   : > { %3348 = vmatmul.f32.gmra.mxu3 %v3055_v18  ;;  %3622 = vmatmul.f32.gmra.mxu1 %v3135_v16  ;;  %v3025_v18 = vld [vmem:[#allocation2 + $0x47] sm:$0xff]  ;;  %v6202_v0 = vpop.f32.mrf.mxu1 }
 0x2f9   : > { %v3057_v28 = vmul.f32 %v6928_v26, %v3025_v18  ;;  %6931 = vst [vmem:[#allocation37_spill] sm:$0xff] %v6202_v0  ;;  %v6933_v26 = vld [vmem:[#allocation41_spill] sm:$0xff]  ;;  %v3026_v18 = vld [vmem:[#allocation2 + $0x4f] sm:$0xff] }
 0x2fa   : > { %v6938_v0 = vld [vmem:[#allocation8_spill] sm:$0xff] }
 0x2fb   : > { %v2303_v56 = vpop.f32.mrf.mxu3  ;;  %v3059_v48 = vmul.f32 %v6938_v0, %v3027_v61  ;;  %v6942_v61 = vld [vmem:[#allocation49_spill] sm:$0xff] }
 0x2fc   : > { %v6187_v15 = vadd.f32 %v2303_v56, %v2191_v39  ;;  %v3137_v39 = vld [vmem:[#allocation2 + $0xc9] sm:$0xff]  ;;  %v6929_v56 = vld [vmem:[#allocation89_spill] sm:$0xff] }
 0x2fd   : > { %v6943_v0 = vld [vmem:[#allocation97_spill] sm:$0xff] }
 0x300   : > { %3351 = vmatmul.f32.gmra.mxu3 %v3024_v10  ;;  %3625 = vmatmul.f32.gmra.mxu1 %v3168_v4  ;;  %v6930_v10 = vld [vmem:[#allocation100_spill] sm:$0xff]  ;;  %v6204_v4 = vpop.f32.mrf.mxu2  ;;  %v6211_v7 = vpop.f32.mrf.mxu1 }
 0x301   : > { %v2197_v35 = vadd.f32 %v6930_v10, %v6929_v56  ;;  %6936 = vst [vmem:[#allocation43_spill] sm:$0xff] %v6211_v7  ;;  %v3029_v7 = vld [vmem:[#allocation2 + $0x67] sm:$0xff] }
 0x303   : > { %v2306_v47 = vpop.f32.mrf.mxu3 }
 0x304   : > { %v6194_v16 = vadd.f32 %v2306_v47, %v2194_v52  ;;  %v3138_v52 = vld [vmem:[#allocation2 + $0xd1] sm:$0xff] }
 0x305   : > { %v3170_v47 = vmul.f32 %v6933_v26, %v3138_v52 }
 0x306   : > { %6927 = vst [vmem:[#allocation35_spill] sm:$0xff] %v6194_v16 }
 0x308   : > { %3354 = vmatmul.f32.gmra.mxu3 %v3057_v28  ;;  %3628 = vmatmul.f32.gmra.mxu1 %v3137_v39  ;;  %v2200_v28 = vadd.f32 %v6935_v11, %v6934_v49  ;;  %v6215_v10 = vpop.f32.mrf.mxu2  ;;  %v6940_v49 = vld [vmem:[#allocation104_spill] sm:$0xff] }
 0x30b   : > { %v2309_v34 = vpop.f32.mrf.mxu3 }
 0x30c   : > { %v6206_v17 = vadd.f32 %v2309_v34, %v2197_v35  ;;  %v3864_v35 = vld [vmem:[%s6669_s5 + $0x18] sm:$0xff]  ;;  %v6939_v34 = vld [vmem:[#allocation95_spill] sm:$0xff] }
 0x30d   : > { %3893 = vmatpush.msra.mxu2 %v3864_v35  ;;  %v2203_v52 = vadd.f32 %v6940_v49, %v6939_v34  ;;  %v3061_v34 = vmul.f32 %v6946_v58, %v3029_v7  ;;  %v3863_v49 = vld [vmem:[%s6669_s5 + $0x10] sm:$0xff] }
 0x30e   : > { %6932 = vst [vmem:[#allocation9_spill] sm:$0xff] %v6206_v17 }
 0x30f   : > { %3894 = vmatpush.msra.mxu2 %v3863_v49  ;;  %v3031_v49 = vld [vmem:[#allocation2 + $0x77] sm:$0xff] }
 0x310   : > { %3357 = vmatmul.f32.gmra.mxu3 %v3026_v18  ;;  %3631 = vmatmul.f32.gmra.mxu1 %v3170_v47  ;;  %v6226_v18 = vpop.f32.mrf.mxu1  ;;  %v6228_v11 = vpop.f32.mrf.mxu2 }
 0x313   : > { %v2312_v39 = vpop.f32.mrf.mxu3 }
 0x314   : > { %v6213_v56 = vadd.f32 %v2312_v39, %v2200_v28  ;;  %v3028_v28 = vld [vmem:[#allocation2 + $0x5f] sm:$0xff] }
 0x315   : > { %v6944_v39 = vld [vmem:[#allocation106_spill] sm:$0xff] }
 0x316   : > { %6937 = vst [vmem:[#allocation38_spill] sm:$0xff] %v6213_v56  ;;  %v2206_v35 = vadd.f32 %v6944_v39, %v6943_v0  ;;  %v3030_v39 = vld [vmem:[#allocation2 + $0x6f] sm:$0xff] }
 0x318   : > { %3360 = vmatmul.f32.gmra.mxu3 %v3059_v48  ;;  %3634 = vmatmul.f32.gmra.mxu1 %v5761_v9 }
 0x31b   : > { %v2315_v26 = vpop.f32.mrf.mxu3 }
 0x31c   : > { %v6224_v47 = vadd.f32 %v2315_v26, %v2203_v52  ;;  %v6239_v52 = vpop.f32.mrf.mxu1  ;;  %v6242_v26 = vpop.f32.mrf.mxu2 }
 0x31e   : > { %6941 = vst [vmem:[#allocation39_spill] sm:$0xff] %v6224_v47 }
 0x320   : > { %3363 = vmatmul.f32.gmra.mxu3 %v3028_v28  ;;  %3637 = vmatmul.f32.gmra.mxu1 %v6942_v61  ;;  %v6947_v61 = vld [vmem:[#allocation46_spill] sm:$0xff] }
 0x323   : > { %v2318_v48 = vpop.f32.mrf.mxu3 }
 0x324   : > { %v6233_v9 = vadd.f32 %v2318_v48, %v2206_v35  ;;  %v6949_v35 = vld [vmem:[#allocation60_spill] sm:$0xff]  ;;  %v6248_v58 = vpop.f32.mrf.mxu1  ;;  %v6250_v7 = vpop.f32.mrf.mxu2 }
 0x326   : > { %6945 = vst [vmem:[#allocation78_spill] sm:$0xff] %v6233_v9 }
 0x328   : > { %3366 = vmatmul.f32.gmra.mxu3 %v3061_v34  ;;  %3640 = vmatmul.f32.gmra.mxu1 %v5793_v40  ;;  %v6951_v40 = vld [vmem:[#allocation13_spill] sm:$0xff] }
 0x329   : > { %v3063_v9 = vmul.f32 %v6951_v40, %v3031_v49  ;;  %v3033_v40 = vld [vmem:[#allocation2 + $0x87] sm:$0xff] }
 0x32b   : > { %v2321_v28 = vpop.f32.mrf.mxu3 }
 0x32c   : > { %v6245_v0 = vadd.f32 %v2321_v28, %v6947_v61  ;;  %v3862_v28 = vld [vmem:[%s6669_s5 + $0x8] sm:$0xff] }
 0x32d   : > { %3895 = vmatpush.msra.mxu2 %v3862_v28 }
 0x32e   : > { %6948 = vst [vmem:[#allocation42_spill] sm:$0xff] %v6245_v0  ;;  %v6265_v0 = vpop.f32.mrf.mxu2 }
 0x330   : > { %3369 = vmatmul.f32.gmra.mxu3 %v3030_v39  ;;  %3643 = vmatmul.f32.gmra.mxu1 %v6949_v35  ;;  %v6260_v39 = vpop.f32.mrf.mxu1 }
 0x333   : > { %v2324_v48 = vpop.f32.mrf.mxu3 }
 0x334   : > { %v6253_v34 = vadd.f32 %v2324_v48, %v5810_v42  ;;  %v3032_v42 = vld [vmem:[#allocation2 + $0x7f] sm:$0xff]  ;;  %v6953_v48 = vld [vmem:[#allocation67_spill] sm:$0xff] }
 0x336   : > { %6950 = vst [vmem:[#allocation44_spill] sm:$0xff] %v6253_v34  ;;  %v6954_v34 = vld [vmem:[#allocation111_spill] sm:$0xff] }
 0x338   : > { %3372 = vmatmul.f32.gmra.mxu3 %v3063_v9  ;;  %3646 = vmatmul.f32.gmra.mxu1 %v5840_v54  ;;  %v6271_v9 = vpop.f32.mrf.mxu1  ;;  %v6956_v54 = vld [vmem:[#allocation15_spill] sm:$0xff] }
 0x339   : > { %v3065_v28 = vmul.f32 %v6956_v54, %v3033_v40 }
 0x33b   : > { %v2327_v61 = vpop.f32.mrf.mxu3 }
 0x33c   : > { %v6263_v35 = vadd.f32 %v2327_v61, %v5837_v57  ;;  %v3861_v57 = vld [vmem:[%s6669_s5] sm:$0xff]  ;;  %v6277_v61 = vpop.f32.mrf.mxu2 }
 0x33d   : > { %3896 = vmatpush.msra.mxu2 %v3861_v57  ;;  %v6958_v57 = vld [vmem:[#allocation114_spill] sm:$0xff] }
 0x33e   : > { %6952 = vst [vmem:[#allocation11_spill] sm:$0xff] %v6263_v35  ;;  %v3035_v35 = vld [vmem:[#allocation2 + $0x97] sm:$0xff] }
 0x340   : > { %3375 = vmatmul.f32.gmra.mxu3 %v3032_v42  ;;  %3649 = vmatmul.f32.gmra.mxu1 %v6953_v48 }
 0x343   : > { %v2330_v49 = vpop.f32.mrf.mxu3 }
 0x344   : > { %v6269_v32 = vadd.f32 %v2330_v49, %v6954_v34  ;;  %v3178_v34 = vmul.f32 %v5863_v45, %v5905_v12  ;;  %v3034_v49 = vld [vmem:[#allocation2 + $0x8f] sm:$0xff]  ;;  %v6287_v40 = vpop.f32.mrf.mxu2  ;;  %v3036_v12 = vld [vmem:[#allocation2 + $0x9f] sm:$0xff] }
 0x346   : > { %6955 = vst [vmem:[#allocation53_spill] sm:$0xff] %v6269_v32  ;;  %v6285_v32 = vpop.f32.mrf.mxu1 }
 0x348   : > { %3378 = vmatmul.f32.gmra.mxu3 %v3065_v28  ;;  %3652 = vmatmul.f32.gmra.mxu1 %v5898_v3  ;;  %v6960_v3 = vld [vmem:[#allocation17_spill] sm:$0xff] }
 0x349   : > { %v3067_v47 = vmul.f32 %v6960_v3, %v3035_v35  ;;  %v6304_v35 = vpop.f32.mrf.mxu0 }
 0x34b   : > { %v2333_v42 = vpop.f32.mrf.mxu3 }
 0x34c   : > { %v6281_v48 = vadd.f32 %v2333_v42, %v5895_v38  ;;  %v6293_v38 = vpop.f32.mrf.mxu2 }
 0x34e   : > { %6957 = vst [vmem:[#allocation45_spill] sm:$0xff] %v6281_v48  ;;  %v6961_v48 = vld [vmem:[#allocation117_spill] sm:$0xff] }
 0x350   : > { %3381 = vmatmul.f32.gmra.mxu3 %v3034_v49  ;;  %3655 = vmatmul.f32.gmra.mxu1 %v3178_v34  ;;  %v3037_v34 = vld [vmem:[#allocation2 + $0xa7] sm:$0xff] }
 0x353   : > { %v2336_v54 = vpop.f32.mrf.mxu3 }
 0x354   : > { %v6290_v28 = vadd.f32 %v2336_v54, %v6958_v57  ;;  %v6301_v33 = vpop.f32.mrf.mxu2  ;;  %v6965_v54 = vld [vmem:[#allocation21_spill] sm:$0xff] }
 0x355   : > { %v3069_v57 = vmul.f32 %v6965_v54, %v3037_v34 }
 0x356   : > { %6959 = vst [vmem:[#allocation52_spill] sm:$0xff] %v6290_v28  ;;  %v6966_v28 = vld [vmem:[#allocation26_spill] sm:$0xff] }
 0x358   : > { %3384 = vmatmul.f32.gmra.mxu3 %v3067_v47  ;;  %v6306_v47 = vpop.f32.mrf.mxu1 }
 0x35b   : > { %v2339_v42 = vpop.f32.mrf.mxu3 }
 0x35c   : > { %v6296_v45 = vadd.f32 %v2339_v42, %v6961_v48 }
 0x35e   : > { %6962 = vst [vmem:[#allocation51_spill] sm:$0xff] %v6296_v45  ;;  %v3039_v45 = vld [vmem:[#allocation2 + $0xb7] sm:$0xff] }
 0x35f   : > { %v3071_v17 = vmul.f32 %v6966_v28, %v3039_v45  ;;  %v3041_v45 = vld [vmem:[#allocation2 + $0xc7] sm:$0xff] }
 0x360   : > { %3387 = vmatmul.f32.gmra.mxu3 %v3036_v12  ;;  %v6313_v12 = vld [vmem:[%s6668_s4] ss:$0 sm:$0xff] }
 0x363   : > { %v2342_v49 = vpop.f32.mrf.mxu3 }
 0x364   : > { %v6299_v56 = vadd.f32 %v2342_v49, %v6963_v8  ;;  %v6315_v8 = vpop.f32.mrf.mxu2  ;;  %v3038_v49 = vld [vmem:[#allocation2 + $0xaf] sm:$0xff] }
 0x366   : > { %6964 = vst [vmem:[#allocation57_spill] sm:$0xff] %v6299_v56 }
 0x368   : > { %3390 = vmatmul.f32.gmra.mxu3 %v3069_v57  ;;  %v6319_v57 = vpop.f32.mrf.mxu0 }
 0x36b   : > { %v3343_v3 = vpop.f32.mrf.mxu3 }
 0x36c   : > { %v3457_v48 = vadd.f32 %v6067_v63, %v3343_v3  ;;  %v6322_v3 = vpop.f32.mrf.mxu1 }
 0x36e   : > { %v3570_v42 = vadd.f32 %v6226_v18, %v3457_v48 }
 0x370   : > { %v3697_v34 = vadd.f32 %v3570_v42, %v5964_v25  ;;  %3393 = vmatmul.f32.gmra.mxu3 %v3038_v49  ;;  %v6327_v25 = vpop.f32.mrf.mxu2  ;;  %v6331_v16 = vpop.f32.mrf.mxu0 }
 0x372   : > { %v3797_v54 = vadd.f32 %v6313_v12, %v3697_v34 }
 0x373   : > { %v3346_v56 = vpop.f32.mrf.mxu3 }
 0x374   : > { %v3829_v63 = vmax.f32 %v3797_v54, 0.0  ;;  %v3460_v18 = vadd.f32 %v6084_v27, %v3346_v56  ;;  %v6334_v56 = vpop.f32.mrf.mxu1 }
 0x376   : > { %v3573_v48 = vadd.f32 %v6239_v52, %v3460_v18  ;;  %3897 = vmatmul.f32.vlgmr.msra.gmra.mxu2 %v3829_v63  ;;  %v3040_v52 = vld [vmem:[#allocation2 + $0xbf] sm:$0xff] }
 0x378   : > { %v3698_v44 = vadd.f32 %v3573_v48, %v5978_v31  ;;  %3396 = vmatmul.f32.gmra.mxu3 %v3071_v17  ;;  %v6338_v17 = vpop.f32.mrf.mxu2 }
 0x37a   : > { %v3798_v42 = vadd.f32 %v6313_v12, %v3698_v44 }
 0x37b   : > { %v3349_v49 = vpop.f32.mrf.mxu3 }
 0x37c   : > { %v3463_v34 = vadd.f32 %v6098_v24, %v3349_v49  ;;  %v3830_v54 = vmax.f32 %v3798_v42, 0.0  ;;  %v6343_v42 = vpop.f32.mrf.mxu0 }
 0x37e   : > { %v3576_v27 = vadd.f32 %v6248_v58, %v3463_v34  ;;  %3900 = vmatmul.f32.gmra.mxu2 %v3830_v54  ;;  %v6967_v58 = vld [vmem:[#allocation33_spill] sm:$0xff] }
 0x37f   : > { %v3073_v48 = vmul.f32 %v6967_v58, %v3041_v45 }
 0x380   : > { %v3699_v28 = vadd.f32 %v3576_v27, %v5997_v36  ;;  %3399 = vmatmul.f32.gmra.mxu3 %v3040_v52  ;;  %v6346_v36 = vpop.f32.mrf.mxu1 }
 0x382   : > { %v3799_v31 = vadd.f32 %v6313_v12, %v3699_v28  ;;  %v3042_v28 = vld [vmem:[#allocation2 + $0xcf] sm:$0xff] }
 0x383   : > { %v3352_v44 = vpop.f32.mrf.mxu3 }
 0x384   : > { %v3466_v24 = vadd.f32 %v6115_v20, %v3352_v44  ;;  %v3831_v63 = vmax.f32 %v3799_v31, 0.0  ;;  %v6350_v20 = vpop.f32.mrf.mxu2  ;;  %v6354_v44 = vpop.f32.mrf.mxu0 }
 0x386   : > { %v3579_v18 = vadd.f32 %v6260_v39, %v3466_v24  ;;  %3903 = vmatmul.f32.gmra.mxu2 %v3831_v63  ;;  %v3043_v63 = vld [vmem:[#allocation2 + $0xd7] sm:$0xff] }
 0x388   : > { %v3700_v49 = vadd.f32 %v3579_v18, %v6009_v62  ;;  %3402 = vmatmul.f32.gmra.mxu3 %v3073_v48  ;;  %v6357_v45 = vpop.f32.mrf.mxu1 }
 0x38a   : > { %v3800_v34 = vadd.f32 %v6313_v12, %v3700_v49 }
 0x38b   : > { %v3355_v54 = vpop.f32.mrf.mxu3 }
 0x38c   : > { %v3469_v27 = vadd.f32 %v6131_v13, %v3355_v54  ;;  %v3832_v52 = vmax.f32 %v3800_v34, 0.0  ;;  %v6362_v49 = vpop.f32.mrf.mxu2  ;;  %v6366_v54 = vpop.f32.mrf.mxu0 }
 0x38e   : > { %v3582_v39 = vadd.f32 %v6271_v9, %v3469_v27  ;;  %3906 = vmatmul.f32.gmra.mxu2 %v3832_v52  ;;  %v6968_v9 = vld [vmem:[#allocation40_spill] sm:$0xff] }
 0x38f   : > { %v3075_v48 = vmul.f32 %v6968_v9, %v3043_v63  ;;  %v3045_v63 = vld [vmem:[#allocation2 + $0xe7] sm:$0xff] }
 0x390   : > { %v3701_v31 = vadd.f32 %v3582_v39, %v6028_v5  ;;  %3405 = vmatmul.f32.gmra.mxu3 %v3042_v28  ;;  %v3044_v28 = vld [vmem:[#allocation2 + $0xdf] sm:$0xff] }
 0x392   : > { %v3801_v62 = vadd.f32 %v6313_v12, %v3701_v31 }
 0x393   : > { %v3358_v24 = vpop.f32.mrf.mxu3 }
 0x394   : > { %v3472_v13 = vadd.f32 %v6142_v29, %v3358_v24  ;;  %v3833_v18 = vmax.f32 %v3801_v62, 0.0  ;;  %v6369_v29 = vpop.f32.mrf.mxu1  ;;  %v6373_v62 = vpop.f32.mrf.mxu2 }
 0x396   : > { %v3585_v58 = vadd.f32 %v6285_v32, %v3472_v13  ;;  %3909 = vmatmul.f32.gmra.mxu2 %v3833_v18 }
 0x398   : > { %v3702_v5 = vadd.f32 %v3585_v58, %v6040_v22  ;;  %3408 = vmatmul.f32.gmra.mxu3 %v3075_v48 }
 0x39a   : > { %v3802_v34 = vadd.f32 %v6313_v12, %v3702_v5  ;;  %v6971_v5 = vld [vmem:[#allocation109_spill] sm:$0xff] }
 0x39b   : > { %v3361_v27 = vpop.f32.mrf.mxu3 }
 0x39c   : > { %v3475_v52 = vadd.f32 %v6304_v35, %v3361_v27  ;;  %v3834_v39 = vmax.f32 %v3802_v34, 0.0  ;;  %v6377_v35 = vpop.f32.mrf.mxu0  ;;  %v6381_v48 = vpop.f32.mrf.mxu1 }
 0x39e   : > { %v3588_v32 = vadd.f32 %v6306_v47, %v3475_v52  ;;  %3912 = vmatmul.f32.gmra.mxu2 %v3834_v39  ;;  %v6969_v47 = vld [vmem:[#allocation50_spill] sm:$0xff]  ;;  %v6387_v39 = vpop.f32.mrf.mxu2 }
 0x39f   : > { %v3077_v9 = vmul.f32 %v6969_v47, %v3045_v63  ;;  %v3046_v63 = vld [vmem:[#allocation2 + $0xef] sm:$0xff] }
 0x3a0   : > { %v3703_v31 = vadd.f32 %v3588_v32, %v6059_v1  ;;  %3411 = vmatmul.f32.gmra.mxu3 %v3044_v28  ;;  %v6970_v1 = vld [vmem:[#allocation83_spill] sm:$0xff] }
 0x3a1   : > { %v2741_v34 = vadd.f32 %v6971_v5, %v6970_v1 }
 0x3a2   : > { %v3803_v22 = vadd.f32 %v6313_v12, %v3703_v31 }
 0x3a3   : > { %v3364_v24 = vpop.f32.mrf.mxu3  ;;  %v2854_v32 = vadd.f32 %v6204_v4, %v2741_v34 }
 0x3a4   : > { %v3478_v13 = vadd.f32 %v6319_v57, %v3364_v24  ;;  %v3835_v18 = vmax.f32 %v3803_v22, 0.0  ;;  %v6393_v24 = vpop.f32.mrf.mxu0  ;;  %v6397_v47 = vpop.f32.mrf.mxu1 }
 0x3a5   : > { %v2965_v31 = vadd.f32 %v2854_v32, %v6086_v23  ;;  %v6975_v32 = vld [vmem:[#allocation90_spill] sm:$0xff] }
 0x3a6   : > { %v3591_v58 = vadd.f32 %v6322_v3, %v3478_v13  ;;  %3915 = vmatmul.f32.gmra.mxu2 %v3835_v18  ;;  %v6973_v13 = vld [vmem:[#allocation56_spill] sm:$0xff]  ;;  %v6402_v5 = vpop.f32.mrf.mxu2 }
 0x3a8   : > { %v3704_v27 = vadd.f32 %v3591_v58, %v6073_v53  ;;  %3414 = vmatmul.f32.gmra.mxu3 %v3077_v9  ;;  %v6972_v53 = vld [vmem:[#allocation86_spill] sm:$0xff] }
 0x3a9   : > { %v2744_v18 = vadd.f32 %v6973_v13, %v6972_v53 }
 0x3aa   : > { %v3804_v52 = vadd.f32 %v6313_v12, %v3704_v27 }
 0x3ab   : > { %v3367_v57 = vpop.f32.mrf.mxu3  ;;  %v2857_v1 = vadd.f32 %v6215_v10, %v2744_v18 }
 0x3ac   : > { %v3481_v3 = vadd.f32 %v6331_v16, %v3367_v57  ;;  %v3836_v28 = vmax.f32 %v3804_v52, 0.0  ;;  %v3047_v16 = vld [vmem:[#allocation2 + $0xf7] sm:$0xff] }
 0x3ad   : > { %v2966_v34 = vadd.f32 %v2857_v1, %v6095_v55  ;;  %v6974_v52 = vld [vmem:[#allocation61_spill] sm:$0xff] }
 0x3ae   : > { %v3594_v22 = vadd.f32 %v6334_v56, %v3481_v3  ;;  %3918 = vmatmul.f32.gmra.mxu2 %v3836_v28  ;;  %v3079_v57 = vmul.f32 %v6974_v52, %v3047_v16  ;;  %v6976_v3 = vld [vmem:[#allocation16_spill] sm:$0xff]  ;;  %v6977_v1 = vld [vmem:[#allocation93_spill] sm:$0xff] }
 0x3af   : > { %v2747_v28 = vadd.f32 %v6976_v3, %v6975_v32 }
 0x3b0   : > { %v3705_v58 = vadd.f32 %v3594_v22, %v2965_v31  ;;  %3417 = vmatmul.f32.gmra.mxu3 %v3046_v63  ;;  %v6409_v22 = vpop.f32.mrf.mxu0 }
 0x3b1   : > { %v2860_v53 = vadd.f32 %v6228_v11, %v2747_v28 }
 0x3b2   : > { %v3805_v4 = vadd.f32 %v6313_v12, %v3705_v58  ;;  %v6418_v58 = vpop.f32.mrf.mxu2 }
 0x3b3   : > { %v3370_v9 = vpop.f32.mrf.mxu3  ;;  %v2967_v13 = vadd.f32 %v2860_v53, %v6111_v30 }
 0x3b4   : > { %v3484_v23 = vadd.f32 %v6343_v42, %v3370_v9  ;;  %v3837_v56 = vmax.f32 %v3805_v4, 0.0  ;;  %v6412_v42 = vpop.f32.mrf.mxu1  ;;  %v3048_v4 = vld [vmem:[#allocation2 + $0xff] sm:$0xff]  ;;  %v4349_v9 = vld [vmem:[#allocation2 + $0x8] sm:$0xff] }
 0x3b5   : > { %v3272_v16 = vmul.f32 0.0, %v4349_v9 }
 0x3b6   : > { %v3597_v27 = vadd.f32 %v6346_v36, %v3484_v23  ;;  %3921 = vmatmul.f32.gmra.mxu2 %v3837_v56  ;;  %v6978_v23 = vld [vmem:[#allocation113_spill] sm:$0xff] }
 0x3b7   : > { %v2750_v56 = vadd.f32 %v6978_v23, %v6977_v1  ;;  %3545 = vmatmul.f32.gmra.mxu0 %v3272_v16 }
 0x3b8   : > { %v3706_v31 = vadd.f32 %v3597_v27, %v2966_v34  ;;  %3420 = vmatmul.f32.gmra.mxu3 %v3079_v57  ;;  %v3147_v27 = vld [vmem:[#allocation2 + $0x119] sm:$0xff]  ;;  %v6423_v52 = vpop.f32.mrf.mxu0 }
 0x3b9   : > { %v3273_v11 = vmul.f32 0.0, %v3147_v27  ;;  %v2863_v57 = vadd.f32 %v6242_v26, %v2750_v56 }
 0x3ba   : > { %v3806_v10 = vadd.f32 %v6313_v12, %v3706_v31  ;;  %v6435_v26 = vpop.f32.mrf.mxu2 }
 0x3bb   : > { %v3373_v63 = vpop.f32.mrf.mxu3  ;;  %3658 = vmatmul.f32.gmra.mxu1 %v3273_v11  ;;  %v2968_v31 = vadd.f32 %v2863_v57, %v6122_v59 }
 0x3bc   : > { %v3487_v55 = vadd.f32 %v6354_v44, %v3373_v63  ;;  %v3838_v36 = vmax.f32 %v3806_v10, 0.0  ;;  %v6427_v28 = vpop.f32.mrf.mxu1  ;;  %v6979_v63 = vld [vmem:[#allocation68_spill] sm:$0xff] }
 0x3be   : > { %v3600_v18 = vadd.f32 %v6357_v45, %v3487_v55  ;;  %3924 = vmatmul.f32.gmra.mxu2 %v3838_v36  ;;  %v3049_v45 = vld [vmem:[#allocation2 + $0x107] sm:$0xff] }
 0x3bf   : > { %v3081_v53 = vmul.f32 %v6979_v63, %v3049_v45  ;;  %v3148_v55 = vld [vmem:[#allocation2 + $0x121] sm:$0xff]  ;;  %3548 = vmatmul.f32.gmra.mxu0 %v3272_v16 }
 0x3c0   : > { %v3707_v34 = vadd.f32 %v3600_v18, %v2967_v13  ;;  %3423 = vmatmul.f32.gmra.mxu3 %v3048_v4  ;;  %v3180_v36 = vmul.f32 %v5910_v46, %v3148_v55  ;;  %v6980_v13 = vld [vmem:[#allocation96_spill] sm:$0xff]  ;;  %v6981_v18 = vld [vmem:[#allocation115_spill] sm:$0xff]  ;;  %v6983_v45 = vld [vmem:[#allocation118_spill] sm:$0xff] }
 0x3c1   : > { %v2753_v4 = vadd.f32 %v6981_v18, %v6980_v13  ;;  %v6982_v16 = vld [vmem:[#allocation99_spill] sm:$0xff]  ;;  %v6985_v18 = vld [vmem:[#allocation101_spill] sm:$0xff] }
 0x3c2   : > { %v3807_v44 = vadd.f32 %v6313_v12, %v3707_v34  ;;  %v3504_v34 = vpop.f32.mrf.mxu0  ;;  %v2756_v57 = vadd.f32 %v6983_v45, %v6982_v16 }
 0x3c3   : > { %v3376_v30 = vpop.f32.mrf.mxu3 }
 0x3c4   : > { %v3490_v32 = vadd.f32 %v6366_v54, %v3376_v30  ;;  %v3839_v3 = vmax.f32 %v3807_v44, 0.0  ;;  %v3276_v54 = vmul.f32 0.0, %v3180_v36  ;;  %v3617_v11 = vpop.f32.mrf.mxu1  ;;  %v3050_v44 = vld [vmem:[#allocation2 + $0x10f] sm:$0xff]  ;;  %v3051_v30 = vld [vmem:[#allocation2 + $0x117] sm:$0xff] }
 0x3c6   : > { %v3603_v10 = vadd.f32 %v6369_v29, %v3490_v32  ;;  %3927 = vmatmul.f32.gmra.mxu2 %v3839_v3  ;;  %3661 = vmatmul.f32.gmra.mxu1 %v3276_v54  ;;  %v2866_v29 = vadd.f32 %v6250_v7, %v2753_v4  ;;  %v6984_v7 = vld [vmem:[#allocation74_spill] sm:$0xff] }
 0x3c7   : > { %v6986_v4 = vld [vmem:[#allocation54_spill] sm:$0xff] }
 0x3c8   : > { %v3708_v9 = vadd.f32 %v3603_v10, %v2968_v31  ;;  %3426 = vmatmul.f32.gmra.mxu3 %v3081_v53  ;;  %v2969_v46 = vadd.f32 %v2866_v29, %v6133_v19  ;;  %v3083_v31 = vmul.f32 %v6984_v7, %v3051_v30  ;;  %v2869_v19 = vadd.f32 %v6265_v0, %v2756_v57 }
 0x3ca   : > { %v3808_v1 = vadd.f32 %v6313_v12, %v3708_v9  ;;  %v2970_v53 = vadd.f32 %v2869_v19, %v6144_v41  ;;  %v3271_v36 = vmul.f32 0.0, %v3083_v31  ;;  %v3507_v13 = vpop.f32.mrf.mxu0  ;;  %v2759_v9 = vadd.f32 %v6986_v4, %v6985_v18 }
 0x3cb   : > { %v3379_v59 = vpop.f32.mrf.mxu3 }
 0x3cc   : > { %v3493_v23 = vadd.f32 %v6377_v35, %v3379_v59  ;;  %v3840_v56 = vmax.f32 %v3808_v1, 0.0  ;;  %v6446_v35 = vpop.f32.mrf.mxu2  ;;  %v3620_v1 = vpop.f32.mrf.mxu1  ;;  %v3052_v59 = vld [vmem:[#allocation2 + $0x11f] sm:$0xff] }
 0x3ce   : > { %v3606_v27 = vadd.f32 %v6381_v48, %v3493_v23  ;;  %3930 = vmatmul.f32.gmra.mxu2 %v3840_v56  ;;  %v3274_v56 = vmul.f32 0.0, %v3052_v59 }
 0x3d0   : > { %v3709_v32 = vadd.f32 %v3606_v27, %v2969_v46  ;;  %3429 = vmatmul.f32.gmra.mxu3 %v3050_v44  ;;  %v6987_v44 = vld [vmem:[#allocation103_spill] sm:$0xff] }
 0x3d1   : > { %v2762_v30 = vadd.f32 %v5975_v37, %v6987_v44  ;;  %v6988_v37 = vld [vmem:[#allocation105_spill] sm:$0xff] }
 0x3d2   : > { %v3809_v3 = vadd.f32 %v6313_v12, %v3709_v32  ;;  %v3510_v45 = vpop.f32.mrf.mxu0 }
 0x3d3   : > { %v3382_v10 = vpop.f32.mrf.mxu3 }
 0x3d4   : > { %v3496_v48 = vadd.f32 %v6393_v24, %v3382_v10  ;;  %v3841_v63 = vmax.f32 %v3809_v3, 0.0  ;;  %v2872_v24 = vadd.f32 %v6277_v61, %v2759_v9  ;;  %v3623_v61 = vpop.f32.mrf.mxu1  ;;  %v2765_v10 = vadd.f32 %v5995_v60, %v6988_v37 }
 0x3d6   : > { %v3609_v55 = vadd.f32 %v6397_v47, %v3496_v48  ;;  %3933 = vmatmul.f32.gmra.mxu2 %v3841_v63  ;;  %v6457_v47 = vpop.f32.mrf.mxu2  ;;  %v2971_v46 = vadd.f32 %v2872_v24, %v6154_v43 }
 0x3d8   : > { %v3710_v54 = vadd.f32 %v3609_v55, %v2970_v53  ;;  %3432 = vmatmul.f32.gmra.mxu3 %v3271_v36 }
 0x3da   : > { %v3810_v29 = vadd.f32 %v6313_v12, %v3710_v54  ;;  %v3513_v63 = vpop.f32.mrf.mxu0 }
 0x3db   : > { %v3385_v0 = vpop.f32.mrf.mxu3 }
 0x3dc   : > { %v3499_v23 = vadd.f32 %v6409_v22, %v3385_v0  ;;  %v3842_v41 = vmax.f32 %v3810_v29, 0.0  ;;  %v2875_v22 = vadd.f32 %v6287_v40, %v2762_v30  ;;  %v2878_v40 = vadd.f32 %v6293_v38, %v2765_v10  ;;  %v3626_v36 = vpop.f32.mrf.mxu1 }
 0x3de   : > { %v3612_v27 = vadd.f32 %v6412_v42, %v3499_v23  ;;  %3936 = vmatmul.f32.gmra.mxu2 %v3842_v41  ;;  %v2972_v43 = vadd.f32 %v2875_v22, %v6162_v14  ;;  %v6468_v31 = vpop.f32.mrf.mxu2  ;;  %v2973_v14 = vadd.f32 %v2878_v40, %v6172_v2  ;;  %v6990_v23 = vld [vmem:[#allocation47_spill] sm:$0xff] }
 0x3df   : > { %v2771_v41 = vadd.f32 %v6036_v6, %v6990_v23  ;;  %v6992_v40 = vld [vmem:[#allocation35_spill] sm:$0xff]  ;;  %v6995_v23 = vld [vmem:[#allocation9_spill] sm:$0xff] }
 0x3e0   : > { %v3711_v16 = vadd.f32 %v3612_v27, %v2971_v46  ;;  %3435 = vmatmul.f32.gmra.mxu3 %v3274_v56 }
 0x3e2   : > { %v3811_v57 = vadd.f32 %v6313_v12, %v3711_v16  ;;  %v3516_v0 = vpop.f32.mrf.mxu0 }
 0x3e3   : > { %v3388_v32 = vpop.f32.mrf.mxu3 }
 0x3e4   : > { %v3502_v3 = vadd.f32 %v6423_v52, %v3388_v32  ;;  %v3843_v7 = vmax.f32 %v3811_v57, 0.0 }
 0x3e6   : > { %v3615_v42 = vadd.f32 %v6427_v28, %v3502_v3  ;;  %3939 = vmatmul.f32.gmra.mxu2 %v3843_v7  ;;  %v6989_v28 = vld [vmem:[#allocation107_spill] sm:$0xff]  ;;  %v6477_v54 = vpop.f32.mrf.mxu2  ;;  %v6991_v3 = vld [vmem:[#allocation108_spill] sm:$0xff] }
 0x3e7   : > { %v2768_v4 = vadd.f32 %v6016_v21, %v6989_v28  ;;  %v6485_v21 = vld [vmem:[%s6670_s6] ss:$0 sm:$0xff] }
 0x3e8   : > { %v3712_v19 = vadd.f32 %v3615_v42, %v2972_v43 }
 0x3e9   : > { %v2881_v29 = vadd.f32 %v6301_v33, %v2768_v4 }
 0x3ea   : > { %v3812_v48 = vadd.f32 %v6313_v12, %v3712_v19  ;;  %v3519_v22 = vpop.f32.mrf.mxu0 }
 0x3eb   : > { %v3391_v53 = vpop.f32.mrf.mxu3  ;;  %v2974_v24 = vadd.f32 %v2881_v29, %v6177_v50  ;;  %v2884_v50 = vadd.f32 %v6315_v8, %v2771_v41  ;;  %v2774_v8 = vadd.f32 %v6056_v51, %v6991_v3 }
 0x3ec   : > { %v3505_v55 = vadd.f32 %v3504_v34, %v3391_v53  ;;  %v3844_v52 = vmax.f32 %v3812_v48, 0.0 }
 0x3ed   : > { %v2975_v6 = vadd.f32 %v2884_v50, %v6187_v15  ;;  %v2887_v19 = vadd.f32 %v6327_v25, %v2774_v8  ;;  %v4351_v15 = vld [vmem:[%s4492_s15 + $0x8] sm:$0xff]  ;;  %v6998_v8 = vld [vmem:[#allocation38_spill] sm:$0xff] }
 0x3ee   : > { %v3618_v18 = vadd.f32 %v3617_v11, %v3505_v55  ;;  %3942 = vmatmul.f32.gmra.mxu2 %v3844_v52  ;;  %v3629_v11 = vpop.f32.mrf.mxu1 }
 0x3ef   : > { %v2976_v55 = vadd.f32 %v2887_v19, %v6992_v40  ;;  %v4354_v40 = vld [vmem:[%s4492_s15 + $0x20] sm:$0xff] }
 0x3f0   : > { %v3713_v9 = vadd.f32 %v3618_v18, %v2973_v14  ;;  %v6993_v14 = vld [vmem:[#allocation12_spill] sm:$0xff] }
 0x3f1   : > { %v6994_v18 = vld [vmem:[#allocation24_spill] sm:$0xff] }
 0x3f2   : > { %v3813_v60 = vadd.f32 %v6313_v12, %v3713_v9  ;;  %v2777_v28 = vadd.f32 %v6994_v18, %v6993_v14  ;;  %v3522_v9 = vpop.f32.mrf.mxu0  ;;  %v7001_v14 = vld [vmem:[#allocation39_spill] sm:$0xff] }
 0x3f3   : > { %v3394_v59 = vpop.f32.mrf.mxu3 }
 0x3f4   : > { %v3508_v38 = vadd.f32 %v3507_v13, %v3394_v59  ;;  %v3845_v34 = vmax.f32 %v3813_v60, 0.0 }
 0x3f6   : > { %v3621_v2 = vadd.f32 %v3620_v1, %v3508_v38  ;;  %3945 = vmatmul.f32.gmra.mxu2 %v3845_v34  ;;  %v4350_v1 = vld [vmem:[%s4492_s15] sm:$0xff]  ;;  %v3632_v7 = vpop.f32.mrf.mxu1  ;;  %v2890_v38 = vadd.f32 %v6338_v17, %v2777_v28  ;;  %v4352_v34 = vld [vmem:[%s4492_s15 + $0x10] sm:$0xff] }
 0x3f8   : > { %v3714_v56 = vadd.f32 %v3621_v2, %v2974_v24  ;;  %v2977_v41 = vadd.f32 %v2890_v38, %v6995_v23 }
 0x3f9   : > { %v3898_v33 = vpop.f32.mrf.mxu2 }
 0x3fa   : > { %v3899_v13 = vadd.f32 %v6485_v21, %v3898_v33  ;;  %v3814_v46 = vadd.f32 %v6313_v12, %v3714_v56 }
 0x3fb   : > { %v3397_v27 = vpop.f32.mrf.mxu3 }
 0x3fc   : > { %v3994_v44 = vadd.f32 %v4350_v1, %v3899_v13  ;;  %v3511_v30 = vadd.f32 %v3510_v45, %v3397_v27  ;;  %v3846_v16 = vmax.f32 %v3814_v46, 0.0  ;;  %v6996_v13 = vld [vmem:[#allocation14_spill] sm:$0xff]  ;;  %v6997_v46 = vld [vmem:[#allocation63_spill] sm:$0xff] }
 0x3fd   : > { %v2780_v27 = vadd.f32 %v6997_v46, %v6996_v13 }
 0x3fe   : > { %v4026_v57 = vmax.f32 %v3994_v44, 0.0  ;;  %v3624_v32 = vadd.f32 %v3623_v61, %v3511_v30  ;;  %3948 = vmatmul.f32.gmra.mxu2 %v3846_v16  ;;  %v3525_v30 = vpop.f32.mrf.mxu0 }
 0x400   : > { %4058 = vst [vmem:[%s6498_s25] sm:$0xff] %v4026_v57  ;;  %v3715_v45 = vadd.f32 %v3624_v32, %v2975_v6  ;;  %v4353_v6 = vld [vmem:[%s4492_s15 + $0x18] sm:$0xff] }
 0x401   : > { %v3901_v43 = vpop.f32.mrf.mxu2 }
 0x402   : > { %v3902_v42 = vadd.f32 %v6485_v21, %v3901_v43  ;;  %v3815_v37 = vadd.f32 %v6313_v12, %v3715_v45 }
 0x403   : > { %v3400_v10 = vpop.f32.mrf.mxu3 }
 0x404   : > { %v3995_v48 = vadd.f32 %v4351_v15, %v3902_v42  ;;  %v3514_v61 = vadd.f32 %v3513_v63, %v3400_v10  ;;  %v3847_v53 = vmax.f32 %v3815_v37, 0.0  ;;  %v3635_v63 = vpop.f32.mrf.mxu1  ;;  %v6999_v37 = vld [vmem:[#allocation110_spill] sm:$0xff]  ;;  %v7000_v10 = vld [vmem:[#allocation29_spill] sm:$0xff] }
 0x405   : > { %v2783_v19 = vadd.f32 %v7000_v10, %v6999_v37  ;;  %v7008_v10 = vld [vmem:[#allocation116_spill] sm:$0xff] }
 0x406   : > { %v4027_v51 = vmax.f32 %v3995_v48, 0.0  ;;  %v3627_v52 = vadd.f32 %v3626_v36, %v3514_v61  ;;  %3951 = vmatmul.f32.gmra.mxu2 %v3847_v53 }
 0x408   : > { %4059 = vst [vmem:[%s6498_s25 + $0x8] sm:$0xff] %v4027_v51  ;;  %v3716_v4 = vadd.f32 %v3627_v52, %v2976_v55  ;;  %v3528_v52 = vpop.f32.mrf.mxu0 }
 0x409   : > { %v3904_v60 = vpop.f32.mrf.mxu2 }
 0x40a   : > { %v3905_v25 = vadd.f32 %v6485_v21, %v3904_v60  ;;  %v3816_v59 = vadd.f32 %v6313_v12, %v3716_v4 }
 0x40b   : > { %v3403_v29 = vpop.f32.mrf.mxu3 }
 0x40c   : > { %v3996_v24 = vadd.f32 %v4352_v34, %v3905_v25  ;;  %v3517_v36 = vadd.f32 %v3516_v0, %v3403_v29  ;;  %v3848_v2 = vmax.f32 %v3816_v59, 0.0  ;;  %v2893_v0 = vadd.f32 %v6350_v20, %v2780_v27  ;;  %v3638_v3 = vpop.f32.mrf.mxu1  ;;  %v7002_v25 = vld [vmem:[#allocation112_spill] sm:$0xff]  ;;  %v7003_v59 = vld [vmem:[#allocation27_spill] sm:$0xff] }
 0x40d   : > { %v2786_v29 = vadd.f32 %v7003_v59, %v7002_v25  ;;  %v7011_v25 = vld [vmem:[#allocation119_spill] sm:$0xff]  ;;  %v7012_v59 = vld [vmem:[#allocation36_spill] sm:$0xff] }
 0x40e   : > { %v4028_v56 = vmax.f32 %v3996_v24, 0.0  ;;  %v3630_v33 = vadd.f32 %v3629_v11, %v3517_v36  ;;  %3954 = vmatmul.f32.gmra.mxu2 %v3848_v2  ;;  %v2978_v45 = vadd.f32 %v2893_v0, %v6998_v8  ;;  %v4355_v2 = vld [vmem:[%s4492_s15 + $0x28] sm:$0xff] }
 0x40f   : > { %v2899_v36 = vadd.f32 %v6373_v62, %v2786_v29  ;;  %v2795_v29 = vadd.f32 %v7012_v59, %v7011_v25 }
 0x410   : > { %4060 = vst [vmem:[%s6498_s25 + $0x10] sm:$0xff] %v4028_v56  ;;  %v3717_v50 = vadd.f32 %v3630_v33, %v2977_v41  ;;  %v7004_v56 = vld [vmem:[#allocation78_spill] sm:$0xff]  ;;  %v3531_v27 = vpop.f32.mrf.mxu0 }
 0x411   : > { %v3907_v1 = vpop.f32.mrf.mxu2  ;;  %v2980_v33 = vadd.f32 %v2899_v36, %v7004_v56  ;;  %v2908_v36 = vadd.f32 %v6418_v58, %v2795_v29 }
 0x412   : > { %v3908_v44 = vadd.f32 %v6485_v21, %v3907_v1  ;;  %v3817_v17 = vadd.f32 %v6313_v12, %v3717_v50  ;;  %v7005_v50 = vld [vmem:[#allocation18_spill] sm:$0xff]  ;;  %v7006_v1 = vld [vmem:[#allocation7_spill] sm:$0xff] }
 0x413   : > { %v3406_v16 = vpop.f32.mrf.mxu3 }
 0x414   : > { %v3997_v57 = vadd.f32 %v4353_v6, %v3908_v44  ;;  %v3520_v11 = vadd.f32 %v3519_v22, %v3406_v16  ;;  %v3849_v32 = vmax.f32 %v3817_v17, 0.0  ;;  %v2896_v22 = vadd.f32 %v6362_v49, %v2783_v19  ;;  %v3641_v60 = vpop.f32.mrf.mxu1  ;;  %v7009_v19 = vld [vmem:[#allocation66_spill] sm:$0xff] }
 0x415   : > { %v2789_v44 = vadd.f32 %v7006_v1, %v7005_v50  ;;  %v7014_v50 = vld [vmem:[#allocation20_spill] sm:$0xff]  ;;  %v7015_v1 = vld [vmem:[#allocation31_spill] sm:$0xff] }
 0x416   : > { %v4029_v43 = vmax.f32 %v3997_v57, 0.0  ;;  %v3633_v42 = vadd.f32 %v3632_v7, %v3520_v11  ;;  %3957 = vmatmul.f32.gmra.mxu2 %v3849_v32  ;;  %v2979_v18 = vadd.f32 %v2896_v22, %v7001_v14  ;;  %v4356_v11 = vld [vmem:[%s4492_s15 + $0x30] sm:$0xff] }
 0x417   : > { %v2902_v57 = vadd.f32 %v6387_v39, %v2789_v44  ;;  %v2798_v44 = vadd.f32 %v7015_v1, %v7014_v50 }
 0x418   : > { %4061 = vst [vmem:[%s6498_s25 + $0x18] sm:$0xff] %v4029_v43  ;;  %v3718_v15 = vadd.f32 %v3633_v42, %v2978_v45  ;;  %v7007_v45 = vld [vmem:[#allocation42_spill] sm:$0xff] }
 0x419   : > { %v3910_v48 = vpop.f32.mrf.mxu2  ;;  %v2981_v43 = vadd.f32 %v2902_v57, %v7007_v45 }
 0x41a   : > { %v3911_v20 = vadd.f32 %v6485_v21, %v3910_v48  ;;  %v3818_v61 = vadd.f32 %v6313_v12, %v3718_v15  ;;  %v2792_v15 = vadd.f32 %v7009_v19, %v7008_v10  ;;  %v7017_v10 = vld [vmem:[#allocation19_spill] sm:$0xff]  ;;  %v7018_v19 = vld [vmem:[#allocation32_spill] sm:$0xff] }
 0x41b   : > { %v3409_v53 = vpop.f32.mrf.mxu3 }
 0x41c   : > { %v3998_v55 = vadd.f32 %v4354_v40, %v3911_v20  ;;  %v3523_v51 = vadd.f32 %v3522_v9, %v3409_v53  ;;  %v3850_v7 = vmax.f32 %v3818_v61, 0.0  ;;  %v3644_v16 = vpop.f32.mrf.mxu1  ;;  %v3534_v20 = vpop.f32.mrf.mxu0 }
 0x41e   : > { %v4030_v28 = vmax.f32 %v3998_v55, 0.0  ;;  %v3636_v4 = vadd.f32 %v3635_v63, %v3523_v51  ;;  %3960 = vmatmul.f32.gmra.mxu2 %v3850_v7  ;;  %v2905_v55 = vadd.f32 %v6402_v5, %v2792_v15  ;;  %v4357_v51 = vld [vmem:[%s4492_s15 + $0x38] sm:$0xff]  ;;  %v2801_v15 = vadd.f32 %v7018_v19, %v7017_v10 }
 0x420   : > { %4062 = vst [vmem:[%s6498_s25 + $0x20] sm:$0xff] %v4030_v28  ;;  %v3719_v38 = vadd.f32 %v3636_v4, %v2979_v18  ;;  %v7010_v18 = vld [vmem:[#allocation44_spill] sm:$0xff] }
 0x421   : > { %v3913_v34 = vpop.f32.mrf.mxu2  ;;  %v2982_v28 = vadd.f32 %v2905_v55, %v7010_v18 }
 0x422   : > { %v3914_v49 = vadd.f32 %v6485_v21, %v3913_v34  ;;  %v3819_v9 = vadd.f32 %v6313_v12, %v3719_v38 }
 0x423   : > { %v3412_v24 = vpop.f32.mrf.mxu3 }
 0x424   : > { %v3999_v23 = vadd.f32 %v4355_v2, %v3914_v49  ;;  %v3526_v41 = vadd.f32 %v3525_v30, %v3412_v24  ;;  %v3851_v63 = vmax.f32 %v3819_v9, 0.0  ;;  %v3647_v22 = vpop.f32.mrf.mxu1  ;;  %v3537_v9 = vpop.f32.mrf.mxu0  ;;  %v4358_v2 = vld [vmem:[%s4492_s15 + $0x40] sm:$0xff] }
 0x426   : > { %v4031_v13 = vmax.f32 %v3999_v23, 0.0  ;;  %v3639_v46 = vadd.f32 %v3638_v3, %v3526_v41  ;;  %3963 = vmatmul.f32.gmra.mxu2 %v3851_v63 }
 0x428   : > { %4063 = vst [vmem:[%s6498_s25 + $0x28] sm:$0xff] %v4031_v13  ;;  %v3720_v17 = vadd.f32 %v3639_v46, %v2980_v33  ;;  %v7013_v33 = vld [vmem:[#allocation11_spill] sm:$0xff] }
 0x429   : > { %v3916_v0 = vpop.f32.mrf.mxu2  ;;  %v2983_v13 = vadd.f32 %v2908_v36, %v7013_v33 }
 0x42a   : > { %v3917_v62 = vadd.f32 %v6485_v21, %v3916_v0  ;;  %v3820_v30 = vadd.f32 %v6313_v12, %v3720_v17 }
 0x42b   : > { %v3415_v6 = vpop.f32.mrf.mxu3 }
 0x42c   : > { %v4000_v32 = vadd.f32 %v4356_v11, %v3917_v62  ;;  %v3529_v3 = vadd.f32 %v3528_v52, %v3415_v6  ;;  %v3852_v8 = vmax.f32 %v3820_v30, 0.0  ;;  %v3650_v56 = vpop.f32.mrf.mxu1  ;;  %v2911_v30 = vadd.f32 %v6435_v26, %v2798_v44  ;;  %v4359_v6 = vld [vmem:[%s4492_s15 + $0x48] sm:$0xff] }
 0x42e   : > { %v4032_v42 = vmax.f32 %v4000_v32, 0.0  ;;  %v3642_v37 = vadd.f32 %v3641_v60, %v3529_v3  ;;  %3966 = vmatmul.f32.gmra.mxu2 %v3852_v8  ;;  %v3540_v3 = vpop.f32.mrf.mxu0  ;;  %v7016_v8 = vld [vmem:[#allocation53_spill] sm:$0xff] }
 0x42f   : > { %v2984_v45 = vadd.f32 %v2911_v30, %v7016_v8  ;;  %v7026_v8 = vld [vmem:[#allocation25_spill] sm:$0xff] }
 0x430   : > { %4064 = vst [vmem:[%s6498_s25 + $0x30] sm:$0xff] %v4032_v42  ;;  %v3721_v48 = vadd.f32 %v3642_v37, %v2981_v43 }
 0x431   : > { %v3919_v61 = vpop.f32.mrf.mxu2 }
 0x432   : > { %v3920_v39 = vadd.f32 %v6485_v21, %v3919_v61  ;;  %v3821_v53 = vadd.f32 %v6313_v12, %v3721_v48 }
 0x433   : > { %v3418_v40 = vpop.f32.mrf.mxu3 }
 0x434   : > { %v4001_v7 = vadd.f32 %v4357_v51, %v3920_v39  ;;  %v3532_v52 = vadd.f32 %v3531_v27, %v3418_v40  ;;  %v3853_v14 = vmax.f32 %v3821_v53, 0.0  ;;  %v3653_v37 = vpop.f32.mrf.mxu1  ;;  %v2914_v53 = vadd.f32 %v6446_v35, %v2801_v15 }
 0x436   : > { %v4033_v4 = vmax.f32 %v4001_v7, 0.0  ;;  %v3645_v60 = vadd.f32 %v3644_v16, %v3532_v52  ;;  %3969 = vmatmul.f32.gmra.mxu2 %v3853_v14  ;;  %v7019_v7 = vld [vmem:[#allocation45_spill] sm:$0xff] }
 0x437   : > { %v2985_v52 = vadd.f32 %v2914_v53, %v7019_v7 }
 0x438   : > { %4065 = vst [vmem:[%s6498_s25 + $0x38] sm:$0xff] %v4033_v4  ;;  %v3722_v38 = vadd.f32 %v3645_v60, %v2982_v28  ;;  %v3543_v28 = vpop.f32.mrf.mxu0  ;;  %v7020_v4 = vld [vmem:[#allocation59_spill] sm:$0xff] }
 0x439   : > { %v3922_v34 = vpop.f32.mrf.mxu2  ;;  %v7021_v60 = vld [vmem:[#allocation71_spill] sm:$0xff] }
 0x43a   : > { %v3923_v49 = vadd.f32 %v6485_v21, %v3922_v34  ;;  %v3822_v5 = vadd.f32 %v6313_v12, %v3722_v38  ;;  %v2804_v25 = vadd.f32 %v7021_v60, %v7020_v4 }
 0x43b   : > { %v3421_v24 = vpop.f32.mrf.mxu3 }
 0x43c   : > { %v4002_v23 = vadd.f32 %v4358_v2, %v3923_v49  ;;  %v3535_v41 = vadd.f32 %v3534_v20, %v3421_v24  ;;  %v3854_v63 = vmax.f32 %v3822_v5, 0.0  ;;  %v3656_v29 = vpop.f32.mrf.mxu1  ;;  %v2917_v5 = vadd.f32 %v6457_v47, %v2804_v25 }
 0x43e   : > { %v4034_v46 = vmax.f32 %v4002_v23, 0.0  ;;  %v3648_v27 = vadd.f32 %v3647_v22, %v3535_v41  ;;  %3972 = vmatmul.f32.gmra.mxu2 %v3854_v63  ;;  %v4360_v22 = vld [vmem:[%s4492_s15 + $0x50] sm:$0xff] }
 0x43f   : > { %v7022_v23 = vld [vmem:[#allocation52_spill] sm:$0xff] }
 0x440   : > { %4066 = vst [vmem:[%s6498_s25 + $0x40] sm:$0xff] %v4034_v46  ;;  %v3723_v17 = vadd.f32 %v3648_v27, %v2983_v13  ;;  %v2986_v41 = vadd.f32 %v2917_v5, %v7022_v23  ;;  %v3546_v33 = vpop.f32.mrf.mxu0  ;;  %v7023_v13 = vld [vmem:[#allocation30_spill] sm:$0xff]  ;;  %v7024_v46 = vld [vmem:[#allocation37_spill] sm:$0xff] }
 0x441   : > { %v3925_v16 = vpop.f32.mrf.mxu2  ;;  %v2807_v27 = vadd.f32 %v7024_v46, %v7023_v13 }
 0x442   : > { %v3926_v58 = vadd.f32 %v6485_v21, %v3925_v16  ;;  %v3823_v0 = vadd.f32 %v6313_v12, %v3723_v17 }
 0x443   : > { %v3424_v62 = vpop.f32.mrf.mxu3 }
 0x444   : > { %v4003_v57 = vadd.f32 %v4359_v6, %v3926_v58  ;;  %v3538_v11 = vadd.f32 %v3537_v9, %v3424_v62  ;;  %v3855_v32 = vmax.f32 %v3823_v0, 0.0  ;;  %v4361_v9 = vld [vmem:[%s4492_s15 + $0x58] sm:$0xff]  ;;  %v3659_v44 = vpop.f32.mrf.mxu1  ;;  %v2920_v58 = vadd.f32 %v6468_v31, %v2807_v27  ;;  %v4362_v0 = vld [vmem:[%s4492_s15 + $0x60] sm:$0xff] }
 0x446   : > { %v4035_v43 = vmax.f32 %v4003_v57, 0.0  ;;  %v3651_v42 = vadd.f32 %v3650_v56, %v3538_v11  ;;  %3975 = vmatmul.f32.gmra.mxu2 %v3855_v32  ;;  %v7025_v57 = vld [vmem:[#allocation51_spill] sm:$0xff] }
 0x447   : > { %v2987_v11 = vadd.f32 %v2920_v58, %v7025_v57  ;;  %v4370_v58 = vld [vmem:[%s4492_s15 + $0xa0] sm:$0xff]  ;;  %v4371_v57 = vld [vmem:[%s4492_s15 + $0xa8] sm:$0xff] }
 0x448   : > { %4067 = vst [vmem:[%s6498_s25 + $0x48] sm:$0xff] %v4035_v43  ;;  %v3724_v48 = vadd.f32 %v3651_v42, %v2984_v45  ;;  %v7027_v45 = vld [vmem:[#allocation43_spill] sm:$0xff]  ;;  %v3549_v10 = vpop.f32.mrf.mxu0 }
 0x449   : > { %v3928_v20 = vpop.f32.mrf.mxu2  ;;  %v2810_v43 = vadd.f32 %v7027_v45, %v7026_v8  ;;  %v4372_v45 = vld [vmem:[%s4492_s15 + $0xb0] sm:$0xff] }
 0x44a   : > { %v3929_v26 = vadd.f32 %v6485_v21, %v3928_v20  ;;  %v3824_v61 = vadd.f32 %v6313_v12, %v3724_v48 }
 0x44b   : > { %v3427_v39 = vpop.f32.mrf.mxu3  ;;  %v2923_v20 = vadd.f32 %v6477_v54, %v2810_v43 }
 0x44c   : > { %v4004_v40 = vadd.f32 %v4360_v22, %v3929_v26  ;;  %v3541_v55 = vadd.f32 %v3540_v3, %v3427_v39  ;;  %v3856_v51 = vmax.f32 %v3824_v61, 0.0  ;;  %v3662_v48 = vpop.f32.mrf.mxu1  ;;  %v4363_v26 = vld [vmem:[%s4492_s15 + $0x68] sm:$0xff]  ;;  %v7028_v22 = vld [vmem:[#allocation57_spill] sm:$0xff] }
 0x44e   : > { %v4036_v14 = vmax.f32 %v4004_v40, 0.0  ;;  %v3654_v18 = vadd.f32 %v3653_v37, %v3541_v55  ;;  %3978 = vmatmul.f32.gmra.mxu2 %v3856_v51  ;;  %v2988_v40 = vadd.f32 %v2923_v20, %v7028_v22 }
 0x450   : > { %4068 = vst [vmem:[%s6498_s25 + $0x50] sm:$0xff] %v4036_v14  ;;  %v3725_v59 = vadd.f32 %v3654_v18, %v2985_v52  ;;  %v4364_v18 = vld [vmem:[%s4492_s15 + $0x70] sm:$0xff] }
 0x451   : > { %v3931_v38 = vpop.f32.mrf.mxu2 }
 0x452   : > { %v3932_v35 = vadd.f32 %v6485_v21, %v3931_v38  ;;  %v3825_v34 = vadd.f32 %v6313_v12, %v3725_v59 }
 0x453   : > { %v3430_v49 = vpop.f32.mrf.mxu3 }
 0x454   : > { %v4005_v24 = vadd.f32 %v4361_v9, %v3932_v35  ;;  %v3544_v36 = vadd.f32 %v3543_v28, %v3430_v49  ;;  %v3857_v2 = vmax.f32 %v3825_v34, 0.0  ;;  %v4366_v49 = vld [vmem:[%s4492_s15 + $0x80] sm:$0xff] }
 0x456   : > { %v4037_v63 = vmax.f32 %v4005_v24, 0.0  ;;  %v3657_v56 = vadd.f32 %v3656_v29, %v3544_v36  ;;  %3981 = vmatmul.f32.gmra.mxu2 %v3857_v2  ;;  %v4365_v29 = vld [vmem:[%s4492_s15 + $0x78] sm:$0xff]  ;;  %v4367_v2 = vld [vmem:[%s4492_s15 + $0x88] sm:$0xff] }
 0x458   : > { %4069 = vst [vmem:[%s6498_s25 + $0x58] sm:$0xff] %v4037_v63  ;;  %v3726_v50 = vadd.f32 %v3657_v56, %v2986_v41 }
 0x459   : > { %v3934_v1 = vpop.f32.mrf.mxu2 }
 0x45a   : > { %v3935_v47 = vadd.f32 %v6485_v21, %v3934_v1  ;;  %v3826_v17 = vadd.f32 %v6313_v12, %v3726_v50  ;;  %v4369_v1 = vld [vmem:[%s4492_s15 + $0x98] sm:$0xff] }
 0x45b   : > { %v3433_v16 = vpop.f32.mrf.mxu3 }
 0x45c   : > { %v4006_v62 = vadd.f32 %v4362_v0, %v3935_v47  ;;  %v3547_v30 = vadd.f32 %v3546_v33, %v3433_v16  ;;  %v3858_v6 = vmax.f32 %v3826_v17, 0.0  ;;  %v4368_v33 = vld [vmem:[%s4492_s15 + $0x90] sm:$0xff] }
 0x45e   : > { %v4038_v32 = vmax.f32 %v4006_v62, 0.0  ;;  %v3660_v3 = vadd.f32 %v3659_v44, %v3547_v30  ;;  %3984 = vmatmul.f32.gmra.mxu2 %v3858_v6 }
 0x460   : > { %4070 = vst [vmem:[%s6498_s25 + $0x60] sm:$0xff] %v4038_v32  ;;  %v3727_v42 = vadd.f32 %v3660_v3, %v2987_v11 }
 0x461   : > { %v3937_v37 = vpop.f32.mrf.mxu2 }
 0x462   : > { %v3938_v31 = vadd.f32 %v6485_v21, %v3937_v37  ;;  %v3827_v19 = vadd.f32 %v6313_v12, %v3727_v42 }
 0x463   : > { %v3436_v15 = vpop.f32.mrf.mxu3 }
 0x464   : > { %v4007_v61 = vadd.f32 %v4363_v26, %v3938_v31  ;;  %v3550_v39 = vadd.f32 %v3549_v10, %v3436_v15  ;;  %v3859_v53 = vmax.f32 %v3827_v19, 0.0  ;;  %v4373_v31 = vld [vmem:[%s4492_s15 + $0xb8] sm:$0xff]  ;;  %v4374_v26 = vld [vmem:[%s4492_s15 + $0xc0] sm:$0xff] }
 0x466   : > { %v4039_v55 = vmax.f32 %v4007_v61, 0.0  ;;  %v3663_v51 = vadd.f32 %v3662_v48, %v3550_v39  ;;  %3987 = vmatmul.f32.gmra.mxu2 %v3859_v53 }
 0x468   : > { %4071 = vst [vmem:[%s6498_s25 + $0x68] sm:$0xff] %v4039_v55  ;;  %v3728_v7 = vadd.f32 %v3663_v51, %v2988_v40  ;;  %v4375_v40 = vld [vmem:[%s4492_s15 + $0xc8] sm:$0xff] }
 0x469   : > { %v3940_v52 = vpop.f32.mrf.mxu2 }
 0x46a   : > { %v3941_v14 = vadd.f32 %v6485_v21, %v3940_v52  ;;  %v3828_v54 = vadd.f32 %v6313_v12, %v3728_v7 }
 0x46c   : > { %v4008_v28 = vadd.f32 %v4364_v18, %v3941_v14  ;;  %v3860_v4 = vmax.f32 %v3828_v54, 0.0  ;;  %v4376_v14 = vld [vmem:[%s4492_s15 + $0xd0] sm:$0xff] }
 0x46e   : > { %v4040_v60 = vmax.f32 %v4008_v28, 0.0  ;;  %3990 = vmatmul.f32.gmra.mxu2 %v3860_v4 }
 0x470   : > { %4072 = vst [vmem:[%s6498_s25 + $0x70] sm:$0xff] %v4040_v60  ;;  %v4377_v60 = vld [vmem:[%s4492_s15 + $0xd8] sm:$0xff] }
 0x471   : > { %v3943_v25 = vpop.f32.mrf.mxu2 }
 0x472   : > { %v3944_v59 = vadd.f32 %v6485_v21, %v3943_v25 }
 0x474   : > { %v4009_v38 = vadd.f32 %v4365_v29, %v3944_v59 }
 0x476   : > { %v4041_v35 = vmax.f32 %v4009_v38, 0.0 }
 0x478   : > { %4073 = vst [vmem:[%s6498_s25 + $0x78] sm:$0xff] %v4041_v35  ;;  %v4378_v35 = vld [vmem:[%s4492_s15 + $0xe0] sm:$0xff] }
 0x479   : > { %v3946_v34 = vpop.f32.mrf.mxu2 }
 0x47a   : > { %v3947_v12 = vadd.f32 %v6485_v21, %v3946_v34 }
 0x47c   : > { %v4010_v5 = vadd.f32 %v4366_v49, %v3947_v12 }
 0x47e   : > { %v4042_v9 = vmax.f32 %v4010_v5, 0.0 }
 0x480   : > { %4074 = vst [vmem:[%s6498_s25 + $0x80] sm:$0xff] %v4042_v9  ;;  %v4379_v9 = vld [vmem:[%s4492_s15 + $0xe8] sm:$0xff] }
 0x481   : > { %v3949_v24 = vpop.f32.mrf.mxu2 }
 0x482   : > { %v3950_v36 = vadd.f32 %v6485_v21, %v3949_v24 }
 0x484   : > { %v4011_v23 = vadd.f32 %v4367_v2, %v3950_v36 }
 0x486   : > { %v4043_v41 = vmax.f32 %v4011_v23, 0.0 }
 0x488   : > { %4075 = vst [vmem:[%s6498_s25 + $0x88] sm:$0xff] %v4043_v41  ;;  %v4380_v41 = vld [vmem:[%s4492_s15 + $0xf0] sm:$0xff] }
 0x489   : > { %v3952_v63 = vpop.f32.mrf.mxu2 }
 0x48a   : > { %v3953_v56 = vadd.f32 %v6485_v21, %v3952_v63 }
 0x48c   : > { %v4012_v13 = vadd.f32 %v4368_v33, %v3953_v56 }
 0x48e   : > { %v4044_v46 = vmax.f32 %v4012_v13, 0.0 }
 0x490   : > { %4076 = vst [vmem:[%s6498_s25 + $0x90] sm:$0xff] %v4044_v46  ;;  %v4381_v46 = vld [vmem:[%s4492_s15 + $0xf8] sm:$0xff] }
 0x491   : > { %v3955_v27 = vpop.f32.mrf.mxu2 }
 0x492   : > { %v3956_v50 = vadd.f32 %v6485_v21, %v3955_v27 }
 0x494   : > { %v4013_v44 = vadd.f32 %v4369_v1, %v3956_v50 }
 0x496   : > { %v4045_v47 = vmax.f32 %v4013_v44, 0.0 }
 0x498   : > { %4077 = vst [vmem:[%s6498_s25 + $0x98] sm:$0xff] %v4045_v47 }
 0x499   : > { %v3958_v17 = vpop.f32.mrf.mxu2 }
 0x49a   : > { %v3959_v16 = vadd.f32 %v6485_v21, %v3958_v17 }
 0x49c   : > { %v4014_v0 = vadd.f32 %v4370_v58, %v3959_v16 }
 0x49e   : > { %v4046_v62 = vmax.f32 %v4014_v0, 0.0 }
 0x4a0   : > { %4078 = vst [vmem:[%s6498_s25 + $0xa0] sm:$0xff] %v4046_v62 }
 0x4a1   : > { %v3961_v30 = vpop.f32.mrf.mxu2 }
 0x4a2   : > { %v3962_v6 = vadd.f32 %v6485_v21, %v3961_v30 }
 0x4a4   : > { %v4015_v11 = vadd.f32 %v4371_v57, %v3962_v6 }
 0x4a6   : > { %v4047_v32 = vmax.f32 %v4015_v11, 0.0 }
 0x4a8   : > { %4079 = vst [vmem:[%s6498_s25 + $0xa8] sm:$0xff] %v4047_v32 }
 0x4a9   : > { %v3964_v3 = vpop.f32.mrf.mxu2 }
 0x4aa   : > { %v3965_v8 = vadd.f32 %v6485_v21, %v3964_v3 }
 0x4ac   : > { %v4016_v43 = vadd.f32 %v4372_v45, %v3965_v8 }
 0x4ae   : > { %v4048_v42 = vmax.f32 %v4016_v43, 0.0 }
 0x4b0   : > { %4080 = vst [vmem:[%s6498_s25 + $0xb0] sm:$0xff] %v4048_v42 }
 0x4b1   : > { %v3967_v37 = vpop.f32.mrf.mxu2 }
 0x4b2   : > { %v3968_v10 = vadd.f32 %v6485_v21, %v3967_v37 }
 0x4b4   : > { %v4017_v19 = vadd.f32 %v4373_v31, %v3968_v10 }
 0x4b6   : > { %v4049_v15 = vmax.f32 %v4017_v19, 0.0 }
 0x4b8   : > { %4081 = vst [vmem:[%s6498_s25 + $0xb8] sm:$0xff] %v4049_v15 }
 0x4b9   : > { %v3970_v48 = vpop.f32.mrf.mxu2 }
 0x4ba   : > { %v3971_v20 = vadd.f32 %v6485_v21, %v3970_v48 }
 0x4bc   : > { %v4018_v61 = vadd.f32 %v4374_v26, %v3971_v20 }
 0x4be   : > { %v4050_v39 = vmax.f32 %v4018_v61, 0.0 }
 0x4c0   : > { %4082 = vst [vmem:[%s6498_s25 + $0xc0] sm:$0xff] %v4050_v39 }
 0x4c1   : > { %v3973_v53 = vpop.f32.mrf.mxu2 }
 0x4c2   : > { %v3974_v22 = vadd.f32 %v6485_v21, %v3973_v53 }
 0x4c4   : > { %v4019_v55 = vadd.f32 %v4375_v40, %v3974_v22 }
 0x4c6   : > { %v4051_v51 = vmax.f32 %v4019_v55, 0.0 }
 0x4c8   : > { %4083 = vst [vmem:[%s6498_s25 + $0xc8] sm:$0xff] %v4051_v51 }
 0x4c9   : > { %v3976_v7 = vpop.f32.mrf.mxu2 }
 0x4ca   : > { %v3977_v52 = vadd.f32 %v6485_v21, %v3976_v7 }
 0x4cc   : > { %v4020_v54 = vadd.f32 %v4376_v14, %v3977_v52 }
 0x4ce   : > { %v4052_v18 = vmax.f32 %v4020_v54, 0.0 }
 0x4d0   : > { %4084 = vst [vmem:[%s6498_s25 + $0xd0] sm:$0xff] %v4052_v18 }
 0x4d1   : > { %v3979_v28 = vpop.f32.mrf.mxu2 }
 0x4d2   : > { %v3980_v4 = vadd.f32 %v6485_v21, %v3979_v28 }
 0x4d4   : > { %v4021_v25 = vadd.f32 %v4377_v60, %v3980_v4 }
 0x4d6   : > { %v4053_v59 = vmax.f32 %v4021_v25, 0.0 }
 0x4d8   : > { %4085 = vst [vmem:[%s6498_s25 + $0xd8] sm:$0xff] %v4053_v59 }
 0x4d9   : > { %v3982_v29 = vpop.f32.mrf.mxu2 }
 0x4da   : > { %v3983_v38 = vadd.f32 %v6485_v21, %v3982_v29 }
 0x4dc   : > { %v4022_v34 = vadd.f32 %v4378_v35, %v3983_v38 }
 0x4de   : > { %v4054_v12 = vmax.f32 %v4022_v34, 0.0 }
 0x4e0   : > { %4086 = vst [vmem:[%s6498_s25 + $0xe0] sm:$0xff] %v4054_v12 }
 0x4e1   : > { %v3985_v49 = vpop.f32.mrf.mxu2 }
 0x4e2   : > { %v3986_v5 = vadd.f32 %v6485_v21, %v3985_v49 }
 0x4e4   : > { %v4023_v24 = vadd.f32 %v4379_v9, %v3986_v5 }
 0x4e6   : > { %v4055_v36 = vmax.f32 %v4023_v24, 0.0 }
 0x4e8   : > { %4087 = vst [vmem:[%s6498_s25 + $0xe8] sm:$0xff] %v4055_v36 }
 0x4e9   : > { %v3988_v2 = vpop.f32.mrf.mxu2 }
 0x4ea   : > { %v3989_v23 = vadd.f32 %v6485_v21, %v3988_v2 }
 0x4ec   : > { %v4024_v63 = vadd.f32 %v4380_v41, %v3989_v23 }
 0x4ee   : > { %v4056_v56 = vmax.f32 %v4024_v63, 0.0 }
 0x4f0   : > { %4088 = vst [vmem:[%s6498_s25 + $0xf0] sm:$0xff] %v4056_v56 }
 0x4f1   : > { %v3991_v33 = vpop.f32.mrf.mxu2 }
 0x4f2   : > { %v3992_v13 = vadd.f32 %v6485_v21, %v3991_v33 }
 0x4f4   : > { %v4025_v27 = vadd.f32 %v4381_v46, %v3992_v13 }
 0x4f6   : > { %v4057_v50 = vmax.f32 %v4025_v27, 0.0 }
 0x4f8   : > { %4089 = vst [vmem:[%s6498_s25 + $0xf8] sm:$0xff] %v4057_v50 }
 0x4f9 PF: > { %s17_s24 = sadd.s32 1, %s4388_s24  }
 0x4fa   : > { %p14_p4 = scmp.ge.s32.totalorder %s17_s24, 6  }
 0x4fc   :  { %16 = sbr.rel (!%p14_p4) target bundleno = 1 (0x1), region = 80 }

</bundles_post_ra>
